<compile_context>
chip_gen: v7x
topology: tpu7x:2x2x1
jax: 0.10.0
libtpu: 0.0.40
codegen_flags: <defaults>
</compile_context>

<pallas_src>
import math
from functools import partial

import jax
import jax.numpy as jnp
from jax.experimental import pallas as pl
from jax.experimental.pallas import tpu as pltpu


# ----------------------------------------------------------------------------
# Kernel: (optional LayerNorm) -> fused QKV proj -> per-head softmax attention
#         -> single out-proj matmul -> residual add.  Gridless, all in VMEM.
# ----------------------------------------------------------------------------
def attention_kernel(*refs, batch, seq, num_heads, pre_norm):
    if pre_norm:
        x_ref, w_ref, b_ref, lnw_ref, lnb_ref, o_ref = refs
    else:
        x_ref, w_ref, b_ref, o_ref = refs
        lnw_ref = lnb_ref = None

    chans = x_ref.shape[1]                      # x_ref: (B, C, S)
    dh = chans // num_heads

    # Packed parameters: weights (C, 4C) = [Wq^T*scale | Wk^T | Wv^T | Wo^T],
    # biases (1, 4C) = [bq*scale | bk | bv | bo].
    w_all = w_ref[...].astype(jnp.float32)
    b_all = b_ref[...].astype(jnp.float32)
    w_qkv = w_all[:, : 3 * chans]               # (C, 3C)
    w_o = w_all[:, 3 * chans:]                  # (C, C)
    b_qkv = b_all[:, : 3 * chans]               # (1, 3C)
    b_o = b_all[:, 3 * chans:]                  # (1, C)

    # NCHW (B, C, S) -> token-major (B*S, C): per-batch 2-D XLU transposes.
    # Keeps the wrapper free of an activation-sized HBM transpose pass.
    x2 = jnp.concatenate(
        [x_ref[b, :, :].astype(jnp.float32).T for b in range(batch)], axis=0)

    h = x2
    if pre_norm:                                # static flag (default: False)
        mu = jnp.mean(h, axis=-1, keepdims=True)
        var = jnp.mean(jnp.square(h - mu), axis=-1, keepdims=True)
        h = (h - mu) * jax.lax.rsqrt(var + 1e-5)
        h = (h * lnw_ref[...].astype(jnp.float32)
             + lnb_ref[...].astype(jnp.float32))

    # Fused Q/K/V projection: one (B*S, C) x (C, 3C) MXU matmul.
    qkv = jnp.dot(h, w_qkv, preferred_element_type=jnp.float32) + b_qkv

    # Per-head attention.  Heads are a small static unroll; each head is a pair
    # of 3-D einsums batched over B (clean Mosaic batched-matmul lowering).
    head_outs = []
    for hd in range(num_heads):
        lo = hd * dh
        qh = qkv[:, lo:lo + dh].reshape(batch, seq, dh)            # pre-scaled
        kh = qkv[:, chans + lo:chans + lo + dh].reshape(batch, seq, dh)
        vh = qkv[:, 2 * chans + lo:2 * chans + lo + dh].reshape(batch, seq, dh)

        s = jnp.einsum("bqd,bkd->bqk", qh, kh,
                       preferred_element_type=jnp.float32)         # (B, S, S)
        s = s - jnp.max(s, axis=-1, keepdims=True)                 # stable
        e = jnp.exp(s)
        p = e * pl.reciprocal(jnp.sum(e, axis=-1, keepdims=True),
                              approx=True)                         # EUP recip
        oh = jnp.einsum("bqk,bkd->bqd", p, vh,
                        preferred_element_type=jnp.float32)        # (B, S, dh)
        head_outs.append(oh.reshape(batch * seq, dh))

    attn = jnp.concatenate(head_outs, axis=1)                      # (B*S, C)

    # Residual + out_proj bias + ONE full-width output projection matmul.
    out = x2 + b_o + jnp.dot(attn, w_o, preferred_element_type=jnp.float32)

    # Lane-dense (B, C, S) store (already NCHW): per-batch XLU transposes,
    # avoids 32-lane masked stores and the wrapper-side output transpose.
    out_b = out.reshape(batch, seq, chans)
    for b in range(batch):
        o_ref[b, :, :] = out_b[b].T.astype(o_ref.dtype)


# ----------------------------------------------------------------------------
# Wrapper (parameter packing + pallas_call; no activation transposes in HBM)
# ----------------------------------------------------------------------------
def attention_wrapper_forward(x, in_proj_w, in_proj_b, out_proj_w, out_proj_b,
                              num_heads, pre_norm=False,
                              ln_weight=None, ln_bias=None):
    """x: (B, C, H, W) NCHW.  Returns residual + GlobalAttention(x), NCHW."""
    B, C, H, W = x.shape
    S = H * W
    assert C % num_heads == 0
    dh = C // num_heads
    scale = 1.0 / math.sqrt(dh)

    # Pack all projection params into one lane-dense weight slab and one bias
    # slab (the 1/sqrt(dh) q-scale is folded into the tiny weight/bias here).
    wq_t = jnp.transpose(in_proj_w[0 * C:1 * C, :]) * scale
    wk_t = jnp.transpose(in_proj_w[1 * C:2 * C, :])
    wv_t = jnp.transpose(in_proj_w[2 * C:3 * C, :])
    wo_t = jnp.transpose(out_proj_w)
    w_all = jnp.concatenate([wq_t, wk_t, wv_t, wo_t], axis=1)        # (C, 4C)
    b_all = jnp.concatenate([in_proj_b[:C] * scale, in_proj_b[C:],
                             out_proj_b]).reshape(1, 4 * C)          # (1, 4C)

    x_ncs = x.reshape(B, C, S)      # NCHW -> (B, C, S): free, no HBM pass

    args = [x_ncs, w_all, b_all]
    if pre_norm:
        if ln_weight is None:
            ln_weight = jnp.ones((C,), x.dtype)
        if ln_bias is None:
            ln_bias = jnp.zeros((C,), x.dtype)
        args += [ln_weight.reshape(1, C), ln_bias.reshape(1, C)]

    kernel = partial(attention_kernel, batch=B, seq=S,
                     num_heads=num_heads, pre_norm=pre_norm)
    vmem = pl.BlockSpec(memory_space=pltpu.MemorySpace.VMEM)

    # Gridless single shot: everything fits VMEM at these shapes.  (For large
    # shapes, add a parallel batch/query-tile grid so v7x's 2nd TC is used.)
    out_ncs = pl.pallas_call(
        kernel,
        out_shape=jax.ShapeDtypeStruct((B, C, S), x.dtype),
        in_specs=[vmem] * len(args),
        out_specs=vmem,
    )(*args)

    return out_ncs.reshape(B, C, H, W)


# ----------------------------------------------------------------------------
# Pure-JAX reference (mirrors torch.nn.MultiheadAttention + residual)
# ----------------------------------------------------------------------------
def reference_forward(x, in_proj_w, in_proj_b, out_proj_w, out_proj_b,
                      num_heads, pre_norm=False, ln_weight=None, ln_bias=None):
    B, C, H, W = x.shape
    S = H * W
    dh = C // num_heads
    xf = jnp.transpose(x, (0, 2, 3, 1)).reshape(B, S, C)
    h = xf
    if pre_norm:
        mu = jnp.mean(h, -1, keepdims=True)
        var = jnp.mean(jnp.square(h - mu), -1, keepdims=True)
        h = (h - mu) / jnp.sqrt(var + 1e-5) * ln_weight + ln_bias
    q = (h @ in_proj_w[:C].T + in_proj_b[:C]) * (1.0 / math.sqrt(dh))
    k = h @ in_proj_w[C:2 * C].T + in_proj_b[C:2 * C]
    v = h @ in_proj_w[2 * C:].T + in_proj_b[2 * C:]
    qh = q.reshape(B, S, num_heads, dh).transpose(0, 2, 1, 3)
    kh = k.reshape(B, S, num_heads, dh).transpose(0, 2, 1, 3)
    vh = v.reshape(B, S, num_heads, dh).transpose(0, 2, 1, 3)
    s = jnp.einsum("bhqd,bhkd->bhqk", qh, kh)
    p = jax.nn.softmax(s, axis=-1)
    o = jnp.einsum("bhqk,bhkd->bhqd", p, vh)
    o = o.transpose(0, 2, 1, 3).reshape(B, S, C)
    o = o @ out_proj_w.T + out_proj_b
    out = xf + o
    return jnp.transpose(out.reshape(B, H, W, C), (0, 3, 1, 2))


# ----------------------------------------------------------------------------
# Main
# ----------------------------------------------------------------------------
if __name__ == "__main__":
    key = jax.random.PRNGKey(0)
    kx, kw, kb, kow, kob = jax.random.split(key, 5)

    # Small shapes consistent with the module: NCHW input, C divisible by heads.
    B, C, H, W = 2, 32, 8, 8
    HEADS = 4

    x = jax.random.normal(kx, (B, C, H, W), dtype=jnp.float32)
    in_proj_w = 0.05 * jax.random.normal(kw, (3 * C, C), dtype=jnp.float32)
    in_proj_b = 0.05 * jax.random.normal(kb, (3 * C,), dtype=jnp.float32)
    out_proj_w = 0.05 * jax.random.normal(kow, (C, C), dtype=jnp.float32)
    out_proj_b = 0.05 * jax.random.normal(kob, (C,), dtype=jnp.float32)

    out = attention_wrapper_forward(x, in_proj_w, in_proj_b,
                                    out_proj_w, out_proj_b, HEADS)
    out = jax.block_until_ready(out)

    assert out.shape == (B, C, H, W)
    assert bool(jnp.all(jnp.isfinite(out)))

    ref = reference_forward(x, in_proj_w, in_proj_b, out_proj_w, out_proj_b, HEADS)
    max_err = float(jnp.max(jnp.abs(out - ref)))
    assert max_err < 1e-2, f"max abs error vs reference too large: {max_err}"

    print("KERNEL_OK")
</pallas_src>

<mosaic_0001>
module attributes {stable_mosaic.version = 11 : i64} {
  func.func @attention_kernel(%arg0: memref<2x32x64xf32, #tpu.memory_space<vmem>>, %arg1: memref<32x128xf32, #tpu.memory_space<vmem>>, %arg2: memref<1x128xf32, #tpu.memory_space<vmem>>, %arg3: memref<2x32x64xf32, #tpu.memory_space<vmem>>) attributes {dimension_semantics = [], scalar_prefetch = 0 : i64, scratch_operands = 0 : i64, tpu.core_type = #tpu.core_type<tc>} {
    %c0 = arith.constant 0 : index
    %c0_0 = arith.constant 0 : index
    %0 = vector.load %arg1[%c0, %c0_0] : memref<32x128xf32, #tpu.memory_space<vmem>>, vector<32x128xf32>
    %c0_1 = arith.constant 0 : index
    %c0_2 = arith.constant 0 : index
    %1 = vector.load %arg2[%c0_1, %c0_2] : memref<1x128xf32, #tpu.memory_space<vmem>>, vector<1x128xf32>
    %2 = vector.extract_strided_slice %0 {offsets = [0, 0], sizes = [32, 96], strides = [1, 1]} : vector<32x128xf32> to vector<32x96xf32>
    %3 = vector.extract_strided_slice %0 {offsets = [0, 96], sizes = [32, 32], strides = [1, 1]} : vector<32x128xf32> to vector<32x32xf32>
    %4 = vector.extract_strided_slice %1 {offsets = [0, 0], sizes = [1, 96], strides = [1, 1]} : vector<1x128xf32> to vector<1x96xf32>
    %5 = vector.extract_strided_slice %1 {offsets = [0, 96], sizes = [1, 32], strides = [1, 1]} : vector<1x128xf32> to vector<1x32xf32>
    %c0_3 = arith.constant 0 : index
    %c0_4 = arith.constant 0 : index
    %c0_5 = arith.constant 0 : index
    %6 = vector.load %arg0[%c0_3, %c0_4, %c0_5] : memref<2x32x64xf32, #tpu.memory_space<vmem>>, vector<1x32x64xf32>
    %7 = vector.shape_cast %6 : vector<1x32x64xf32> to vector<32x64xf32>
    %8 = tpu.transpose %7, [1, 0] : vector<32x64xf32> -> vector<64x32xf32>
    %c1 = arith.constant 1 : index
    %c0_6 = arith.constant 0 : index
    %c0_7 = arith.constant 0 : index
    %9 = vector.load %arg0[%c1, %c0_6, %c0_7] : memref<2x32x64xf32, #tpu.memory_space<vmem>>, vector<1x32x64xf32>
    %10 = vector.shape_cast %9 : vector<1x32x64xf32> to vector<32x64xf32>
    %11 = tpu.transpose %10, [1, 0] : vector<32x64xf32> -> vector<64x32xf32>
    %12 = tpu.concatenate %8, %11 in 0 : vector<64x32xf32>, vector<64x32xf32> -> vector<128x32xf32>
    %cst = arith.constant dense<0.000000e+00> : vector<128x96xf32>
    %13 = tpu.matmul %12, %2, %cst {dimension_numbers = #tpu.dot_dimension_numbers<[1], [0], [0], [1], [0, 0, 1, 1], [], []>} : vector<128x32xf32>, vector<32x96xf32>, vector<128x96xf32> -> vector<128x96xf32>
    %14 = vector.broadcast %4 : vector<1x96xf32> to vector<128x96xf32>
    %15 = arith.addf %13, %14 : vector<128x96xf32>
    %16 = vector.extract_strided_slice %15 {offsets = [0, 0], sizes = [128, 8], strides = [1, 1]} : vector<128x96xf32> to vector<128x8xf32>
    %17 = vector.shape_cast %16 : vector<128x8xf32> to vector<2x64x8xf32>
    %18 = vector.extract_strided_slice %15 {offsets = [0, 32], sizes = [128, 8], strides = [1, 1]} : vector<128x96xf32> to vector<128x8xf32>
    %19 = vector.shape_cast %18 : vector<128x8xf32> to vector<2x64x8xf32>
    %20 = vector.extract_strided_slice %15 {offsets = [0, 64], sizes = [128, 8], strides = [1, 1]} : vector<128x96xf32> to vector<128x8xf32>
    %21 = vector.shape_cast %20 : vector<128x8xf32> to vector<2x64x8xf32>
    "tpu.trace_start"() <{level = 10 : i32, message = "bqd,bkd->bqk"}> : () -> ()
    %cst_8 = arith.constant dense<0.000000e+00> : vector<2x64x64xf32>
    %22 = tpu.matmul %17, %19, %cst_8 {dimension_numbers = #tpu.dot_dimension_numbers<[2], [2], [1], [1], [0, 0, 0, 1, 1, 1], [0], [0]>} : vector<2x64x8xf32>, vector<2x64x8xf32>, vector<2x64x64xf32> -> vector<2x64x64xf32>
    "tpu.trace_stop"() : () -> ()
    %cst_9 = arith.constant dense<0xFF800000> : vector<2x64xf32>
    %23 = vector.multi_reduction <maximumf>, %22, %cst_9 [2] : vector<2x64x64xf32> to vector<2x64xf32>
    %24 = vector.shape_cast %23 : vector<2x64xf32> to vector<2x64x1xf32>
    %25 = vector.broadcast %24 : vector<2x64x1xf32> to vector<2x64x64xf32>
    %26 = arith.subf %22, %25 : vector<2x64x64xf32>
    %27 = math.exp %26 : vector<2x64x64xf32>
    %cst_10 = arith.constant dense<0.000000e+00> : vector<2x64xf32>
    %28 = vector.multi_reduction <add>, %27, %cst_10 [2] : vector<2x64x64xf32> to vector<2x64xf32>
    %29 = vector.shape_cast %28 : vector<2x64xf32> to vector<2x64x1xf32>
    %30 = tpu.reciprocal %29 {approx = true} : vector<2x64x1xf32> -> vector<2x64x1xf32>
    %31 = vector.broadcast %30 : vector<2x64x1xf32> to vector<2x64x64xf32>
    %32 = arith.mulf %27, %31 : vector<2x64x64xf32>
    "tpu.trace_start"() <{level = 10 : i32, message = "bqk,bkd->bqd"}> : () -> ()
    %cst_11 = arith.constant dense<0.000000e+00> : vector<2x64x8xf32>
    %33 = tpu.matmul %32, %21, %cst_11 {dimension_numbers = #tpu.dot_dimension_numbers<[2], [1], [1], [2], [0, 0, 0, 1, 1, 2], [0], [0]>} : vector<2x64x64xf32>, vector<2x64x8xf32>, vector<2x64x8xf32> -> vector<2x64x8xf32>
    "tpu.trace_stop"() : () -> ()
    %34 = vector.shape_cast %33 : vector<2x64x8xf32> to vector<128x8xf32>
    %35 = vector.extract_strided_slice %15 {offsets = [0, 8], sizes = [128, 8], strides = [1, 1]} : vector<128x96xf32> to vector<128x8xf32>
    %36 = vector.shape_cast %35 : vector<128x8xf32> to vector<2x64x8xf32>
    %37 = vector.extract_strided_slice %15 {offsets = [0, 40], sizes = [128, 8], strides = [1, 1]} : vector<128x96xf32> to vector<128x8xf32>
    %38 = vector.shape_cast %37 : vector<128x8xf32> to vector<2x64x8xf32>
    %39 = vector.extract_strided_slice %15 {offsets = [0, 72], sizes = [128, 8], strides = [1, 1]} : vector<128x96xf32> to vector<128x8xf32>
    %40 = vector.shape_cast %39 : vector<128x8xf32> to vector<2x64x8xf32>
    "tpu.trace_start"() <{level = 10 : i32, message = "bqd,bkd->bqk"}> : () -> ()
    %cst_12 = arith.constant dense<0.000000e+00> : vector<2x64x64xf32>
    %41 = tpu.matmul %36, %38, %cst_12 {dimension_numbers = #tpu.dot_dimension_numbers<[2], [2], [1], [1], [0, 0, 0, 1, 1, 1], [0], [0]>} : vector<2x64x8xf32>, vector<2x64x8xf32>, vector<2x64x64xf32> -> vector<2x64x64xf32>
    "tpu.trace_stop"() : () -> ()
    %cst_13 = arith.constant dense<0xFF800000> : vector<2x64xf32>
    %42 = vector.multi_reduction <maximumf>, %41, %cst_13 [2] : vector<2x64x64xf32> to vector<2x64xf32>
    %43 = vector.shape_cast %42 : vector<2x64xf32> to vector<2x64x1xf32>
    %44 = vector.broadcast %43 : vector<2x64x1xf32> to vector<2x64x64xf32>
    %45 = arith.subf %41, %44 : vector<2x64x64xf32>
    %46 = math.exp %45 : vector<2x64x64xf32>
    %cst_14 = arith.constant dense<0.000000e+00> : vector<2x64xf32>
    %47 = vector.multi_reduction <add>, %46, %cst_14 [2] : vector<2x64x64xf32> to vector<2x64xf32>
    %48 = vector.shape_cast %47 : vector<2x64xf32> to vector<2x64x1xf32>
    %49 = tpu.reciprocal %48 {approx = true} : vector<2x64x1xf32> -> vector<2x64x1xf32>
    %50 = vector.broadcast %49 : vector<2x64x1xf32> to vector<2x64x64xf32>
    %51 = arith.mulf %46, %50 : vector<2x64x64xf32>
    "tpu.trace_start"() <{level = 10 : i32, message = "bqk,bkd->bqd"}> : () -> ()
    %cst_15 = arith.constant dense<0.000000e+00> : vector<2x64x8xf32>
    %52 = tpu.matmul %51, %40, %cst_15 {dimension_numbers = #tpu.dot_dimension_numbers<[2], [1], [1], [2], [0, 0, 0, 1, 1, 2], [0], [0]>} : vector<2x64x64xf32>, vector<2x64x8xf32>, vector<2x64x8xf32> -> vector<2x64x8xf32>
    "tpu.trace_stop"() : () -> ()
    %53 = vector.shape_cast %52 : vector<2x64x8xf32> to vector<128x8xf32>
    %54 = vector.extract_strided_slice %15 {offsets = [0, 16], sizes = [128, 8], strides = [1, 1]} : vector<128x96xf32> to vector<128x8xf32>
    %55 = vector.shape_cast %54 : vector<128x8xf32> to vector<2x64x8xf32>
    %56 = vector.extract_strided_slice %15 {offsets = [0, 48], sizes = [128, 8], strides = [1, 1]} : vector<128x96xf32> to vector<128x8xf32>
    %57 = vector.shape_cast %56 : vector<128x8xf32> to vector<2x64x8xf32>
    %58 = vector.extract_strided_slice %15 {offsets = [0, 80], sizes = [128, 8], strides = [1, 1]} : vector<128x96xf32> to vector<128x8xf32>
    %59 = vector.shape_cast %58 : vector<128x8xf32> to vector<2x64x8xf32>
    "tpu.trace_start"() <{level = 10 : i32, message = "bqd,bkd->bqk"}> : () -> ()
    %cst_16 = arith.constant dense<0.000000e+00> : vector<2x64x64xf32>
    %60 = tpu.matmul %55, %57, %cst_16 {dimension_numbers = #tpu.dot_dimension_numbers<[2], [2], [1], [1], [0, 0, 0, 1, 1, 1], [0], [0]>} : vector<2x64x8xf32>, vector<2x64x8xf32>, vector<2x64x64xf32> -> vector<2x64x64xf32>
    "tpu.trace_stop"() : () -> ()
    %cst_17 = arith.constant dense<0xFF800000> : vector<2x64xf32>
    %61 = vector.multi_reduction <maximumf>, %60, %cst_17 [2] : vector<2x64x64xf32> to vector<2x64xf32>
    %62 = vector.shape_cast %61 : vector<2x64xf32> to vector<2x64x1xf32>
    %63 = vector.broadcast %62 : vector<2x64x1xf32> to vector<2x64x64xf32>
    %64 = arith.subf %60, %63 : vector<2x64x64xf32>
    %65 = math.exp %64 : vector<2x64x64xf32>
    %cst_18 = arith.constant dense<0.000000e+00> : vector<2x64xf32>
    %66 = vector.multi_reduction <add>, %65, %cst_18 [2] : vector<2x64x64xf32> to vector<2x64xf32>
    %67 = vector.shape_cast %66 : vector<2x64xf32> to vector<2x64x1xf32>
    %68 = tpu.reciprocal %67 {approx = true} : vector<2x64x1xf32> -> vector<2x64x1xf32>
    %69 = vector.broadcast %68 : vector<2x64x1xf32> to vector<2x64x64xf32>
    %70 = arith.mulf %65, %69 : vector<2x64x64xf32>
    "tpu.trace_start"() <{level = 10 : i32, message = "bqk,bkd->bqd"}> : () -> ()
    %cst_19 = arith.constant dense<0.000000e+00> : vector<2x64x8xf32>
    %71 = tpu.matmul %70, %59, %cst_19 {dimension_numbers = #tpu.dot_dimension_numbers<[2], [1], [1], [2], [0, 0, 0, 1, 1, 2], [0], [0]>} : vector<2x64x64xf32>, vector<2x64x8xf32>, vector<2x64x8xf32> -> vector<2x64x8xf32>
    "tpu.trace_stop"() : () -> ()
    %72 = vector.shape_cast %71 : vector<2x64x8xf32> to vector<128x8xf32>
    %73 = vector.extract_strided_slice %15 {offsets = [0, 24], sizes = [128, 8], strides = [1, 1]} : vector<128x96xf32> to vector<128x8xf32>
    %74 = vector.shape_cast %73 : vector<128x8xf32> to vector<2x64x8xf32>
    %75 = vector.extract_strided_slice %15 {offsets = [0, 56], sizes = [128, 8], strides = [1, 1]} : vector<128x96xf32> to vector<128x8xf32>
    %76 = vector.shape_cast %75 : vector<128x8xf32> to vector<2x64x8xf32>
    %77 = vector.extract_strided_slice %15 {offsets = [0, 88], sizes = [128, 8], strides = [1, 1]} : vector<128x96xf32> to vector<128x8xf32>
    %78 = vector.shape_cast %77 : vector<128x8xf32> to vector<2x64x8xf32>
    "tpu.trace_start"() <{level = 10 : i32, message = "bqd,bkd->bqk"}> : () -> ()
    %cst_20 = arith.constant dense<0.000000e+00> : vector<2x64x64xf32>
    %79 = tpu.matmul %74, %76, %cst_20 {dimension_numbers = #tpu.dot_dimension_numbers<[2], [2], [1], [1], [0, 0, 0, 1, 1, 1], [0], [0]>} : vector<2x64x8xf32>, vector<2x64x8xf32>, vector<2x64x64xf32> -> vector<2x64x64xf32>
    "tpu.trace_stop"() : () -> ()
    %cst_21 = arith.constant dense<0xFF800000> : vector<2x64xf32>
    %80 = vector.multi_reduction <maximumf>, %79, %cst_21 [2] : vector<2x64x64xf32> to vector<2x64xf32>
    %81 = vector.shape_cast %80 : vector<2x64xf32> to vector<2x64x1xf32>
    %82 = vector.broadcast %81 : vector<2x64x1xf32> to vector<2x64x64xf32>
    %83 = arith.subf %79, %82 : vector<2x64x64xf32>
    %84 = math.exp %83 : vector<2x64x64xf32>
    %cst_22 = arith.constant dense<0.000000e+00> : vector<2x64xf32>
    %85 = vector.multi_reduction <add>, %84, %cst_22 [2] : vector<2x64x64xf32> to vector<2x64xf32>
    %86 = vector.shape_cast %85 : vector<2x64xf32> to vector<2x64x1xf32>
    %87 = tpu.reciprocal %86 {approx = true} : vector<2x64x1xf32> -> vector<2x64x1xf32>
    %88 = vector.broadcast %87 : vector<2x64x1xf32> to vector<2x64x64xf32>
    %89 = arith.mulf %84, %88 : vector<2x64x64xf32>
    "tpu.trace_start"() <{level = 10 : i32, message = "bqk,bkd->bqd"}> : () -> ()
    %cst_23 = arith.constant dense<0.000000e+00> : vector<2x64x8xf32>
    %90 = tpu.matmul %89, %78, %cst_23 {dimension_numbers = #tpu.dot_dimension_numbers<[2], [1], [1], [2], [0, 0, 0, 1, 1, 2], [0], [0]>} : vector<2x64x64xf32>, vector<2x64x8xf32>, vector<2x64x8xf32> -> vector<2x64x8xf32>
    "tpu.trace_stop"() : () -> ()
    %91 = vector.shape_cast %90 : vector<2x64x8xf32> to vector<128x8xf32>
    %92 = tpu.concatenate %34, %53, %72, %91 in 1 : vector<128x8xf32>, vector<128x8xf32>, vector<128x8xf32>, vector<128x8xf32> -> vector<128x32xf32>
    %93 = vector.broadcast %5 : vector<1x32xf32> to vector<128x32xf32>
    %94 = arith.addf %12, %93 : vector<128x32xf32>
    %cst_24 = arith.constant dense<0.000000e+00> : vector<128x32xf32>
    %95 = tpu.matmul %92, %3, %cst_24 {dimension_numbers = #tpu.dot_dimension_numbers<[1], [0], [0], [1], [0, 0, 1, 1], [], []>} : vector<128x32xf32>, vector<32x32xf32>, vector<128x32xf32> -> vector<128x32xf32>
    %96 = arith.addf %94, %95 : vector<128x32xf32>
    %97 = vector.shape_cast %96 : vector<128x32xf32> to vector<2x64x32xf32>
    %98 = vector.extract_strided_slice %97 {offsets = [0, 0, 0], sizes = [1, 64, 32], strides = [1, 1, 1]} : vector<2x64x32xf32> to vector<1x64x32xf32>
    %99 = vector.shape_cast %98 : vector<1x64x32xf32> to vector<64x32xf32>
    %100 = tpu.transpose %99, [1, 0] : vector<64x32xf32> -> vector<32x64xf32>
    %c0_25 = arith.constant 0 : index
    %c0_26 = arith.constant 0 : index
    %c0_27 = arith.constant 0 : index
    %101 = vector.load %arg3[%c0_25, %c0_26, %c0_27] : memref<2x32x64xf32, #tpu.memory_space<vmem>>, vector<1x32x64xf32>
    %102 = vector.shape_cast %101 : vector<1x32x64xf32> to vector<32x64xf32>
    %103 = vector.shape_cast %100 : vector<32x64xf32> to vector<1x32x64xf32>
    tpu.vector_store %arg3[%c0_25, %c0_26, %c0_27], %103 {strides = array<i32>} : memref<2x32x64xf32, #tpu.memory_space<vmem>>, vector<1x32x64xf32>,
    %104 = vector.extract_strided_slice %97 {offsets = [1, 0, 0], sizes = [1, 64, 32], strides = [1, 1, 1]} : vector<2x64x32xf32> to vector<1x64x32xf32>
    %105 = vector.shape_cast %104 : vector<1x64x32xf32> to vector<64x32xf32>
    %106 = tpu.transpose %105, [1, 0] : vector<64x32xf32> -> vector<32x64xf32>
    %c1_28 = arith.constant 1 : index
    %c0_29 = arith.constant 0 : index
    %c0_30 = arith.constant 0 : index
    %107 = vector.load %arg3[%c1_28, %c0_29, %c0_30] : memref<2x32x64xf32, #tpu.memory_space<vmem>>, vector<1x32x64xf32>
    %108 = vector.shape_cast %107 : vector<1x32x64xf32> to vector<32x64xf32>
    %109 = vector.shape_cast %106 : vector<32x64xf32> to vector<1x32x64xf32>
    tpu.vector_store %arg3[%c1_28, %c0_29, %c0_30], %109 {strides = array<i32>} : memref<2x32x64xf32, #tpu.memory_space<vmem>>, vector<1x32x64xf32>,
    return
  }
}

</mosaic_0001>

<bundles_post_ra>
// kernel: tpu_custom_call.1
= control target key start
LH: loop header
LB: loop body
LE: loop exit
PB: predicated region body
PF: predicated region fallthrough
CT: control target
= control target key end

     0   :  { %8 = vsyncpa [#allocation3], 0  ;;  %s8023_s0 = inlined_call_operand.hbm [shape: f32[2,32,64], index: 0, kind: input, shape index: {}]   ;;  %s8024_s1 = inlined_call_operand.hbm [shape: f32[32,128], index: 1, kind: input, shape index: {}]   ;;  %s8025_s2 = inlined_call_operand.vmem [shape: f32[1,128], index: 2, kind: input, shape index: {}]   ;;  %s8026_s3 = inlined_call_operand.hbm [shape: f32[2,32,64], index: 3, kind: output, shape index: {}]  }
   0x1   :  { %9 = vsyncpa [#allocation6], 0 }
   0x2   :  { %10 = vsyncpa [#allocation4], 0  ;;  %s6216_s12 = smov [#allocation2]   ;;  %s6144_s16 = scalar_lea.hbm %s8023_s0, 1024 }
   0x3   :  { %s16_s13 = sshll.u32 %s6216_s12, 4  ;;  %p6145_p0 = scmp.ne.s32.totalorder %s8023_s0, %s6144_s16  ;;  %s17_s13 = int_to_ptr.vmem [resolvable:$true] %s16_s13 }
   0x4   :  { %p6148_p1 = scmp.lt.u32.totalorder %s6144_s16, %s8023_s0 }
   0x6   :  { %p6150_p2 = pnand %p6148_p1, %p6145_p0 }
   0x8   :  { %6153 = shalt.err (!%p6150_p2)
}
   0x9   :  { %s6154_s21 = scalar_lea.vmem %s17_s13, 1024  ;;  %p6159_p4 = scmp.lt.s32.totalorder %s17_s13, %s17_s13 }
   0xa   :  { %p6155_p3 = scmp.ne.s32.totalorder %s17_s13, %s6154_s21  ;;  %p6160_p5 = scmp.lt.s32.totalorder %s6154_s21, %s6154_s21 }
   0xc   :  { %p6161_p6 = por %p6160_p5, %p6159_p4 }
   0xe   :  { %p6162_p7 = pnand %p6161_p6, %p6155_p3 }
  0x10   :  { %6165 = shalt.err (!%p6162_p7)
}
  0x11   :  { %s6217_s22 = smov 128   ;;  %s6218_s23 = smov 8  }
  0x12   :  { %22 = dma.hbm_to_vmem [thread:$0]  %s8023_s0, 1024, %s17_s13, [#allocation3], %s6217_s22, %s6217_s22, %s6218_s23  }
  0x13   :  { %s6219_s26 = smov [#allocation5]   ;;  %s6166_s30 = scalar_lea.hbm %s8024_s1, 512 }
  0x14   :  { %s28_s27 = sshll.u32 %s6219_s26, 4  ;;  %p6167_p8 = scmp.ne.s32.totalorder %s8024_s1, %s6166_s30  ;;  %s29_s27 = int_to_ptr.vmem [resolvable:$true] %s28_s27 }
  0x15   :  { %p6170_p9 = scmp.lt.u32.totalorder %s6166_s30, %s8024_s1 }
  0x17   :  { %p6172_p10 = pnand %p6170_p9, %p6167_p8 }
  0x19   :  { %6175 = shalt.err (!%p6172_p10)
}
  0x1a   :  { %s6176_s8 = scalar_lea.vmem %s29_s27, 512  ;;  %p6181_p12 = scmp.lt.s32.totalorder %s29_s27, %s29_s27 }
  0x1b   :  { %p6177_p11 = scmp.ne.s32.totalorder %s29_s27, %s6176_s8  ;;  %p6182_p13 = scmp.lt.s32.totalorder %s6176_s8, %s6176_s8 }
  0x1d   :  { %p6183_p0 = por %p6182_p13, %p6181_p12 }
  0x1f   :  { %p6184_p1 = pnand %p6183_p0, %p6177_p11 }
  0x21   :  { %6187 = shalt.err (!%p6184_p1)
}
  0x22   :  { %34 = dma.hbm_to_vmem [thread:$0]  %s8024_s1, 512, %s29_s27, [#allocation6], %s6217_s22, %s6217_s22, %s6218_s23  }
  0x23   :  { %6210 = dma.done.wait [#allocation3], 1024  }
  0x24   :  { %6211 = vsyncadd [#allocation3], 4294966272 }
  0x25   :  { %6212 = dma.done.wait [#allocation6], 512  }
  0x26   :  { %6213 = vsyncadd [#allocation6], 4294966784  ;;  %v48_v0 = vld [vmem:[#allocation2] sm:$0xff]  ;;  %v49_v2 = vld [vmem:[#allocation2 + $0x8] sm:$0xff]  ;;  %vm127_vm0 = vcmask 261120   ;;  %vm345_vm1 = vcmask 64512  }
  0x27   :  { %52 = vxpose.xlu0.b32.start [1/4] (short) (narrow) %v48_v0, 64  ;;  %v85_v1 = vld [vmem:[#allocation2 + $0x20] sm:$0xff]  ;;  %v86_v3 = vld [vmem:[#allocation2 + $0x28] sm:$0xff]  ;;  %v6289_v6 = vld [vmem:[#allocation5 + $0x10] sm:$0xff]  ;;  %s6220_s11 = smov 96   ;;  %s6221_s12 = smov 64  }
  0x28   :  { %89 = vxpose.xlu1.b32.start [1/4] (short) (narrow) %v85_v1, 64  ;;  %v6285_v4 = vld [vmem:[#allocation5] sm:$0xff]  ;;  %v6287_v5 = vld [vmem:[#allocation5 + $0x8] sm:$0xff]  ;;  %8051 = vst [vmem:[#allocation13_spill] sm:$0xff] %v6289_v6  ;;  %v6291_v7 = vld [vmem:[#allocation5 + $0x18] sm:$0xff]  ;;  %s6222_s13 = smov 88  }
  0x29   :  { %8049 = vst [vmem:[#allocation11_spill] sm:$0xff] %v6285_v4  ;;  %8050 = vst [vmem:[#allocation12_spill] sm:$0xff] %v6287_v5  ;;  %v5197_v9 = vpack.c.bf16 %v6287_v5, %v6285_v4  ;;  %v5201_v11 = vpack.c.bf16 %v6291_v7, %v6289_v6  ;;  %v50_v12 = vld [vmem:[#allocation2 + $0x10] sm:$0xff]  ;;  %v51_v14 = vld [vmem:[#allocation2 + $0x18] sm:$0xff]  ;;  %vm644_vm3 = vcmask 523264   ;;  %s6223_s14 = smov 120  }
  0x2a   :  { %8052 = vst [vmem:[#allocation14_spill] sm:$0xff] %v6291_v7  ;;  %v87_v13 = vld [vmem:[#allocation2 + $0x30] sm:$0xff]  ;;  %v88_v15 = vld [vmem:[#allocation2 + $0x38] sm:$0xff]  ;;  %v4164_v32 = vld [vmem:[%s8025_s2] ss:$0 sm:$0xff]  ;;  %s6224_s15 = smov 56  }
  0x2b   :  { %53 = vxpose.xlu0.b32.cont [2/4] (short) (narrow) %v49_v2, 64  ;;  %5198 = vmatprep.subr.bf16.mxu0 %v5197_v9  ;;  %vm6476_vm2 = vmpackc.low %vm345_vm1, %vm345_vm1  ;;  %s6225_s16 = smov 80   ;;  %s6226_s17 = smov 112   ;;  %vm3795_vm4 = vcmask 130048   ;;  %vm3812_vm5 = vcmask 195584  }
  0x2c   :  { %90 = vxpose.xlu1.b32.cont [2/4] (short) (narrow) %v86_v3, 64  ;;  %5200 = vmatpush3.bf16.msra.mxu0 %v5197_v9  ;;  %s6227_s18 = smov 48   ;;  %s6228_s19 = smov 72  }
  0x2d   :  { %5202 = vmatprep.subr.bf16.mxu0 %v5201_v11  ;;  %s6229_s20 = smov 104   ;;  %s6230_s21 = smov 40  }
  0x2e   :  { %s6231_s24 = smov 32   ;;  %s6232_s25 = smov 16  }
  0x2f   :  { %54 = vxpose.xlu0.b32.cont [3/4] (short) (narrow) %v50_v12, 64  ;;  %s6233_s26 = smov 24  }
  0x30   :  { %91 = vxpose.xlu1.b32.cont [3/4] (short) (narrow) %v87_v13, 64  ;;  %5204 = vmatpush3.bf16.msra.mxu0 %v5201_v11 }
  0x33   :  { %55 = vxpose.xlu0.b32.end [4/4] (short) (narrow) %v51_v14, 64 }
  0x34   :  { %92 = vxpose.xlu1.b32.end [4/4] (short) (narrow) %v88_v15, 64 }
  0xa7   :  { %v6301_v16 = vpop.trf.xlu0 }
  0xa8   :  { %8053 = vst [vmem:[#allocation15_spill] sm:$0xff] %v6301_v16  ;;  %4693 = vmatprep.mubr.msk.f32.mxu0 %vm127_vm0, %v6301_v16  ;;  %v6305_v17 = vpop.trf.xlu1 }
  0xa9   :  { %8054 = vst [vmem:[#allocation16_spill] sm:$0xff] %v6305_v17 }
  0xab   :  { %v6307_v18 = vpop.trf.xlu0 }
  0xac   :  { %8055 = vst [vmem:[#allocation17_spill] sm:$0xff] %v6307_v18  ;;  %4694 = vmatmul.mubr.msk.f32.vlgmr.msra.gmra.mrb[0].mxu0 %vm127_vm0, %v6307_v18  ;;  %v6311_v19 = vpop.trf.xlu1 }
  0xad   :  { %8056 = vst [vmem:[#allocation18_spill] sm:$0xff] %v6311_v19 }
  0xaf   :  { %v6313_v20 = vpop.trf.xlu0 }
  0xb0   :  { %8057 = vst [vmem:[#allocation19_spill] sm:$0xff] %v6313_v20  ;;  %4696 = vmatprep.mubr.msk.f32.mxu0 %vm127_vm0, %v6313_v20  ;;  %v6319_v22 = vpop.trf.xlu1 }
  0xb1   :  { %8059 = vst [vmem:[#allocation21_spill] sm:$0xff] %v6319_v22 }
  0xb3   :  { %v6317_v21 = vpop.trf.xlu0 }
  0xb4   :  { %8058 = vst [vmem:[#allocation20_spill] sm:$0xff] %v6317_v21  ;;  %4697 = vmatmul.mubr.msk.f32.gmra.mrb[2].mxu0 %vm127_vm0, %v6317_v21  ;;  %v6327_v24 = vpop.trf.xlu1 }
  0xb5   :  { %8061 = vst [vmem:[#allocation23_spill] sm:$0xff] %v6327_v24 }
  0xb7   :  { %v6323_v23 = vpop.trf.xlu0 }
  0xb8   :  { %8060 = vst [vmem:[#allocation22_spill] sm:$0xff] %v6323_v23  ;;  %4699 = vmatprep.mubr.msk.f32.mxu0 %vm127_vm0, %v6323_v23  ;;  %v6335_v27 = vpop.trf.xlu1 }
  0xb9   :  { %8064 = vst [vmem:[#allocation26_spill] sm:$0xff] %v6335_v27 }
  0xbb   :  { %v6329_v25 = vpop.trf.xlu0 }
  0xbc   :  { %8062 = vst [vmem:[#allocation24_spill] sm:$0xff] %v6329_v25  ;;  %4700 = vmatmul.mubr.msk.f32.gmra.mrb[4].mxu0 %vm127_vm0, %v6329_v25  ;;  %v6345_v29 = vpop.trf.xlu1 }
  0xbd   :  { %8066 = vst [vmem:[#allocation28_spill] sm:$0xff] %v6345_v29 }
  0xbf   :  { %v6333_v26 = vpop.trf.xlu0 }
  0xc0   :  { %8063 = vst [vmem:[#allocation25_spill] sm:$0xff] %v6333_v26  ;;  %4702 = vmatprep.mubr.msk.f32.mxu0 %vm127_vm0, %v6333_v26  ;;  %v6351_v30 = vpop.trf.xlu1 }
  0xc1   :  { %8067 = vst [vmem:[#allocation29_spill] sm:$0xff] %v6351_v30 }
  0xc3   :  { %v6339_v28 = vpop.trf.xlu0 }
  0xc4   :  { %8065 = vst [vmem:[#allocation27_spill] sm:$0xff] %v6339_v28  ;;  %4703 = vmatmul.mubr.msk.f32.gmra.mrb[6].mxu0 %vm127_vm0, %v6339_v28  ;;  %v6359_v31 = vpop.trf.xlu1 }
  0xc5   :  { %4705 = vmatprep.mubr.msk.f32.mxu0 %vm127_vm0, %v6305_v17  ;;  %8068 = vst [vmem:[#allocation30_spill] sm:$0xff] %v6359_v31 }
  0xc8   :  { %4706 = vmatmul.mubr.msk.f32.gmra.mrb[8].mxu0 %vm127_vm0, %v6311_v19 }
  0xc9   :  { %4708 = vmatprep.mubr.msk.f32.mxu0 %vm127_vm0, %v6319_v22 }
  0xcc   :  { %4709 = vmatmul.mubr.msk.f32.gmra.mrb[10].mxu0 %vm127_vm0, %v6327_v24 }
  0xcd   :  { %4711 = vmatprep.mubr.msk.f32.mxu0 %vm127_vm0, %v6335_v27 }
  0xd0   :  { %4712 = vmatmul.mubr.msk.f32.gmra.mrb[12].mxu0 %vm127_vm0, %v6345_v29 }
  0xd1   :  { %4714 = vmatprep.mubr.msk.f32.mxu0 %vm127_vm0, %v6351_v30 }
  0xd4   :  { %4715 = vmatmul.mubr.msk.f32.gmra.mrb[14].mxu0 %vm127_vm0, %v6359_v31 }
 0x17f   :  { %v4695_v33 = vpop.f32.mrb[0].mxu0 }
 0x180   :  { %v6368_v34 = vadd.f32 %v4695_v33, %v4164_v32  ;;  %v242_v35 = vpop.f32.mrb[1].mxu0 }
 0x181   :  { %v6370_v36 = vadd.f32 %v4164_v32, %v242_v35 }
 0x183   :  { %8069 = vst [vmem:[#allocation31_spill] sm:$0xff] %v6370_v36  ;;  %4733 = vmatprep.mubr.msk.f32.mxu1 %vm345_vm1, %v6370_v36  ;;  %v6376_v37 = vpack.i.bf16 %v6368_v34, %v6370_v36 }
 0x185   :  { %5558 = vrot.lane.b32.xlu0 %v6376_v37, %s6220_s11 }
 0x187   :  { %v4698_v38 = vpop.f32.mrb[2].mxu0 }
 0x188   :  { %v6380_v39 = vadd.f32 %v4698_v38, %v4164_v32  ;;  %v252_v40 = vpop.f32.mrb[3].mxu0 }
 0x189   :  { %v6382_v41 = vadd.f32 %v4164_v32, %v252_v40 }
 0x18b   :  { %v6386_v42 = vpack.i.bf16 %v6380_v39, %v6382_v41 }
 0x18d   :  { %5563 = vrot.lane.b32.xlu1 %v6386_v42, %s6220_s11 }
 0x18f   :  { %v4701_v43 = vpop.f32.mrb[4].mxu0 }
 0x190   :  { %v6390_v44 = vadd.f32 %v4701_v43, %v4164_v32  ;;  %v262_v45 = vpop.f32.mrb[5].mxu0 }
 0x191   :  { %v6392_v46 = vadd.f32 %v4164_v32, %v262_v45 }
 0x193   :  { %v6396_v47 = vpack.i.bf16 %v6390_v44, %v6392_v46 }
 0x195   :  { %5568 = vrot.lane.b32.xlu1 %v6396_v47, %s6220_s11 }
 0x197   :  { %v4704_v48 = vpop.f32.mrb[6].mxu0 }
 0x198   :  { %v272_v49 = vpop.f32.mrb[7].mxu0  ;;  %v6404_v54 = vadd.f32 %v4704_v48, %v4164_v32 }
 0x199   :  { %v6406_v55 = vadd.f32 %v4164_v32, %v272_v49 }
 0x19b   :  { %v4707_v50 = vpop.f32.mrb[8].mxu0  ;;  %v6422_v62 = vpack.i.bf16 %v6404_v54, %v6406_v55 }
 0x19c   :  { %v6400_v51 = vadd.f32 %v4707_v50, %v4164_v32  ;;  %v282_v52 = vpop.f32.mrb[9].mxu0 }
 0x19d   :  { %v6402_v53 = vadd.f32 %v4164_v32, %v282_v52 }
 0x19f   :  { %4761 = vmatprep.mubr.msk.f32.mxu0 %vm345_vm1, %v6402_v53  ;;  %v4710_v56 = vpop.f32.mrb[10].mxu0  ;;  %v6412_v57 = vpack.i.bf16 %v6400_v51, %v6402_v53 }
 0x1a0   :  { %v6414_v58 = vadd.f32 %v4710_v56, %v4164_v32  ;;  %v292_v59 = vpop.f32.mrb[11].mxu0 }
 0x1a1   :  { %5573 = vrot.lane.b32.xlu1 %v6412_v57, %s6220_s11  ;;  %v6418_v60 = vadd.f32 %v4164_v32, %v292_v59 }
 0x1a3   :  { %v4713_v61 = vpop.f32.mrb[12].mxu0  ;;  %v6426_v63 = vpack.i.bf16 %v6414_v58, %v6418_v60 }
 0x1a4   :  { %v6428_v0 = vadd.f32 %v4713_v61, %v4164_v32  ;;  %v302_v1 = vpop.f32.mrb[13].mxu0 }
 0x1a5   :  { %v6430_v2 = vadd.f32 %v4164_v32, %v302_v1  ;;  %5578 = vrot.lane.b32.xlu1 %v6422_v62, %s6220_s11  ;;  %5583 = vrot.lane.b32.xlu0 %v6426_v63, %s6220_s11 }
 0x1a7   :  { %v4716_v3 = vpop.f32.mrb[14].mxu0  ;;  %v6438_v9 = vpack.i.bf16 %v6428_v0, %v6430_v2 }
 0x1a8   :  { %v6440_v11 = vadd.f32 %v4716_v3, %v4164_v32  ;;  %v312_v12 = vpop.f32.mrb[15].mxu0 }
 0x1a9   :  { %v6442_v13 = vadd.f32 %v4164_v32, %v312_v12  ;;  %5588 = vrot.lane.b32.xlu1 %v6438_v9, %s6220_s11 }
 0x1ab   :  { %v6448_v14 = vpack.i.bf16 %v6440_v11, %v6442_v13 }
 0x1ad   :  { %5603 = vrot.lane.b32.xlu1 %v6386_v42, %s6221_s12  ;;  %5593 = vrot.lane.b32.xlu0 %v6448_v14, %s6220_s11 }
 0x1b1   :  { %5608 = vrot.lane.b32.xlu1 %v6396_v47, %s6221_s12  ;;  %5598 = vrot.lane.b32.xlu0 %v6376_v37, %s6221_s12 }
 0x1b5   :  { %5613 = vrot.lane.b32.xlu1 %v6422_v62, %s6221_s12  ;;  %5618 = vrot.lane.b32.xlu0 %v6412_v57, %s6221_s12 }
 0x1b9   :  { %5623 = vrot.lane.b32.xlu1 %v6426_v63, %s6221_s12  ;;  %5628 = vrot.lane.b32.xlu0 %v6376_v37, %s6222_s13 }
 0x1bd   :  { %5648 = vrot.lane.b32.xlu1 %v6412_v57, %s6222_s13  ;;  %5633 = vrot.lane.b32.xlu0 %v6438_v9, %s6221_s12 }
 0x1c1   :  { %5658 = vrot.lane.b32.xlu1 %v6426_v63, %s6222_s13  ;;  %5638 = vrot.lane.b32.xlu0 %v6386_v42, %s6222_s13 }
 0x1c5   :  { %5663 = vrot.lane.b32.xlu1 %v6438_v9, %s6222_s13  ;;  %5643 = vrot.lane.b32.xlu0 %v6396_v47, %s6222_s13 }
 0x1c9   :  { %5668 = vrot.lane.b32.xlu1 %v6448_v14, %s6221_s12  ;;  %5653 = vrot.lane.b32.xlu0 %v6422_v62, %s6222_s13 }
 0x1f7   :  { %v5559_v15 = vpop.permute.xlu0 %5558 }
 0x1f8   :  { %v5561_v32 = vunpack.i.h.bf16 %v5559_v15  ;;  %v5560_v33 = vunpack.i.l.bf16 %v5559_v15 }
 0x1fa   :  { %v5205_v38 = vpack.c.bf16 %v5561_v32, %v5560_v33 }
 0x1fc   :  { %5207 = vmatprep.subr.msk.bf16.mxu1 %vm6476_vm2, %v5205_v38 }
 0x1fd   :  { %5210 = vmatpush3.bf16.xpose.msk.msra.mxu1 %vm6476_vm2, %v5205_v38 }
 0x1ff   :  { %v5564_v40 = vpop.permute.xlu1 %5563 }
 0x200   :  { %v5566_v43 = vunpack.i.h.bf16 %v5564_v40  ;;  %v5565_v45 = vunpack.i.l.bf16 %v5564_v40 }
 0x202   :  { %v5211_v48 = vpack.c.bf16 %v5566_v43, %v5565_v45 }
 0x204   :  { %5213 = vmatprep.subr.msk.bf16.mxu1 %vm6476_vm2, %v5211_v48 }
 0x205   :  { %5216 = vmatpush3.bf16.xpose.msk.msra.mxu1 %vm6476_vm2, %v5211_v48 }
 0x207   :  { %v5569_v49 = vpop.permute.xlu1 %5568 }
 0x208   :  { %v5571_v50 = vunpack.i.h.bf16 %v5569_v49  ;;  %v5570_v52 = vunpack.i.l.bf16 %v5569_v49 }
 0x20a   :  { %v5217_v56 = vpack.c.bf16 %v5571_v50, %v5570_v52 }
 0x20c   :  { %5219 = vmatprep.subr.msk.bf16.mxu1 %vm6476_vm2, %v5217_v56 }
 0x20d   :  { %5222 = vmatpush3.bf16.xpose.msk.msra.mxu1 %vm6476_vm2, %v5217_v56 }
 0x213   :  { %v5574_v59 = vpop.permute.xlu1 %5573 }
 0x214   :  { %v5576_v61 = vunpack.i.h.bf16 %v5574_v59  ;;  %v5575_v1 = vunpack.i.l.bf16 %v5574_v59 }
 0x216   :  { %v5229_v3 = vpack.c.bf16 %v5576_v61, %v5575_v1 }
 0x217   :  { %v5579_v12 = vpop.permute.xlu1 %5578  ;;  %v5584_v15 = vpop.permute.xlu0 %5583 }
 0x218   :  { %v5581_v32 = vunpack.i.h.bf16 %v5579_v12  ;;  %v5580_v33 = vunpack.i.l.bf16 %v5579_v12  ;;  %5231 = vmatprep.subr.msk.bf16.mxu0 %vm6476_vm2, %v5229_v3  ;;  %v5586_v38 = vunpack.i.h.bf16 %v5584_v15  ;;  %v5585_v40 = vunpack.i.l.bf16 %v5584_v15 }
 0x219   :  { %5234 = vmatpush3.bf16.xpose.msk.msra.mxu0 %vm6476_vm2, %v5229_v3 }
 0x21a   :  { %v5223_v43 = vpack.c.bf16 %v5581_v32, %v5580_v33  ;;  %v5235_v45 = vpack.c.bf16 %v5586_v38, %v5585_v40 }
 0x21b   :  { %v5589_v48 = vpop.permute.xlu1 %5588 }
 0x21c   :  { %v5591_v49 = vunpack.i.h.bf16 %v5589_v48  ;;  %v5590_v50 = vunpack.i.l.bf16 %v5589_v48  ;;  %5225 = vmatprep.subr.msk.bf16.mxu1 %vm6476_vm2, %v5223_v43  ;;  %5237 = vmatprep.subr.msk.bf16.mxu0 %vm6476_vm2, %v5235_v45 }
 0x21d   :  { %5228 = vmatpush3.bf16.xpose.msk.msra.mxu1 %vm6476_vm2, %v5223_v43 }
 0x21e   :  { %v5241_v52 = vpack.c.bf16 %v5591_v49, %v5590_v50 }
 0x21f   :  { %v5604_v56 = vpop.permute.xlu1 %5603  ;;  %v5594_v59 = vpop.permute.xlu0 %5593 }
 0x220   :  { %v5596_v61 = vunpack.i.h.bf16 %v5594_v59  ;;  %v5595_v1 = vunpack.i.l.bf16 %v5594_v59  ;;  %v5606_v33 = vunpack.i.h.bf16 %v5604_v56  ;;  %v5605_v38 = vunpack.i.l.bf16 %v5604_v56 }
 0x221   :  { %5240 = vmatpush3.bf16.xpose.msk.msra.mxu0 %vm6476_vm2, %v5235_v45 }
 0x222   :  { %5243 = vmatprep.subr.msk.bf16.mxu0 %vm6476_vm2, %v5241_v52  ;;  %v5247_v40 = vpack.c.bf16 %v5596_v61, %v5595_v1  ;;  %v5257_v56 = vpack.c.bf16 %v5606_v33, %v5605_v38 }
 0x223   :  { %v5609_v3 = vpop.permute.xlu1 %5608  ;;  %v5599_v12 = vpop.permute.xlu0 %5598 }
 0x224   :  { %v5601_v15 = vunpack.i.h.bf16 %v5599_v12  ;;  %v5600_v32 = vunpack.i.l.bf16 %v5599_v12  ;;  %4734 = vmatmul.mubr.msk.f32.vlgmr.msra.gmra.mrb[0].mxu1 %vm345_vm1, %v6368_v34  ;;  %v5611_v49 = vunpack.i.h.bf16 %v5609_v3  ;;  %v5610_v50 = vunpack.i.l.bf16 %v5609_v3 }
 0x225   :  { %4736 = vmatprep.mubr.msk.f32.mxu1 %vm345_vm1, %v6382_v41 }
 0x226   :  { %v5253_v43 = vpack.c.bf16 %v5601_v15, %v5600_v32  ;;  %v5261_v15 = vpack.c.bf16 %v5611_v49, %v5610_v50 }
 0x227   :  { %v5614_v45 = vpop.permute.xlu1 %5613  ;;  %v5619_v48 = vpop.permute.xlu0 %5618 }
 0x228   :  { %4737 = vmatmul.mubr.msk.f32.gmra.mrb[2].mxu1 %vm345_vm1, %v6380_v39  ;;  %5254 = vmatprep.subr.bf16.mxu1 %v5253_v43  ;;  %v5621_v61 = vunpack.i.h.bf16 %v5619_v48  ;;  %v5620_v1 = vunpack.i.l.bf16 %v5619_v48  ;;  %v5616_v12 = vunpack.i.h.bf16 %v5614_v45  ;;  %v5615_v3 = vunpack.i.l.bf16 %v5614_v45 }
 0x229   :  { %4739 = vmatprep.mubr.msk.f32.mxu1 %vm345_vm1, %v6392_v46  ;;  %5246 = vmatpush3.bf16.xpose.msk.msra.mxu0 %vm6476_vm2, %v5241_v52 }
 0x22a   :  { %5256 = vmatpush3.bf16.msra.mxu1 %v5253_v43  ;;  %5249 = vmatprep.subr.msk.bf16.mxu0 %vm6476_vm2, %v5247_v40  ;;  %v5269_v33 = vpack.c.bf16 %v5621_v61, %v5620_v1  ;;  %v5265_v48 = vpack.c.bf16 %v5616_v12, %v5615_v3 }
 0x22b   :  { %5258 = vmatprep.subr.bf16.mxu1 %v5257_v56  ;;  %v5624_v59 = vpop.permute.xlu1 %5623  ;;  %v5629_v32 = vpop.permute.xlu0 %5628 }
 0x22c   :  { %4740 = vmatmul.mubr.msk.f32.gmra.mrb[4].mxu1 %vm345_vm1, %v6390_v44  ;;  %v5631_v38 = vunpack.i.h.bf16 %v5629_v32  ;;  %v5630_v43 = vunpack.i.l.bf16 %v5629_v32  ;;  %v5626_v49 = vunpack.i.h.bf16 %v5624_v59  ;;  %v5625_v50 = vunpack.i.l.bf16 %v5624_v59 }
 0x22d   :  { %4742 = vmatprep.mubr.msk.f32.mxu1 %vm345_vm1, %v6406_v55 }
 0x22e   :  { %5260 = vmatpush3.bf16.msra.mxu1 %v5257_v56  ;;  %v6528_v56 = vpack.c.bf16 %v5631_v38, %v5630_v43  ;;  %v5273_v12 = vpack.c.bf16 %v5626_v49, %v5625_v50 }
 0x22f   :  { %5262 = vmatprep.subr.bf16.mxu1 %v5261_v15  ;;  %v5649_v52 = vpop.permute.xlu1 %5648  ;;  %v5634_v10 = vpop.permute.xlu0 %5633 }
 0x230   :  { %4743 = vmatmul.mubr.msk.f32.gmra.mrb[6].mxu1 %vm345_vm1, %v6404_v54  ;;  %v5636_v1 = vunpack.i.h.bf16 %v5634_v10  ;;  %v5650_v38 = vunpack.i.l.bf16 %v5649_v52 }
 0x231   :  { %5252 = vmatpush3.bf16.xpose.msk.msra.mxu0 %vm6476_vm2, %v5247_v40  ;;  %v5635_v40 = vunpack.i.l.bf16 %v5634_v10  ;;  %v5651_v10 = vunpack.i.h.bf16 %v5649_v52 }
 0x232   :  { %5264 = vmatpush3.bf16.msra.mxu1 %v5261_v15  ;;  %5270 = vmatprep.subr.bf16.mxu0 %v5269_v33 }
 0x233   :  { %5266 = vmatprep.subr.bf16.mxu1 %v5265_v48  ;;  %v6526_v45 = vpop.permute.xlu1 %5658  ;;  %v5277_v32 = vpack.c.bf16 %v5636_v1, %v5635_v40 }
 0x236   :  { %5268 = vmatpush3.bf16.msra.mxu1 %v5265_v48 }
 0x237   :  { %5287 = vmatprep.subr.msk.bf16.mxu1 %vm6476_vm2, %v6528_v56  ;;  %v6533_v61 = vpop.permute.xlu1 %5663 }
 0x238   :  { %4762 = vmatmul.mubr.msk.f32.vlgmr.msra.gmra.mrb[16].mxu0 %vm345_vm1, %v6400_v51 }
 0x239   :  { %4764 = vmatprep.mubr.msk.f32.mxu0 %vm345_vm1, %v6418_v60  ;;  %5272 = vmatpush3.bf16.msra.mxu0 %v5269_v33  ;;  %v6547_v33 = vpack.c.bf16 %v5651_v10, %v5650_v38 }
 0x23a   :  { %5274 = vmatprep.subr.bf16.mxu0 %v5273_v12 }
 0x23b   :  { %v5669_v59 = vpop.permute.xlu1 %5668 }
 0x23c   :  { %v5671_v3 = vunpack.i.h.bf16 %v5669_v59  ;;  %v5670_v15 = vunpack.i.l.bf16 %v5669_v59  ;;  %4765 = vmatmul.mubr.msk.f32.gmra.mrb[18].mxu0 %vm345_vm1, %v6414_v58 }
 0x23d   :  { %4767 = vmatprep.mubr.msk.f32.mxu0 %vm345_vm1, %v6430_v2  ;;  %5276 = vmatpush3.bf16.msra.mxu0 %v5273_v12 }
 0x23e   :  { %5278 = vmatprep.subr.bf16.mxu0 %v5277_v32  ;;  %v5281_v43 = vpack.c.bf16 %v5671_v3, %v5670_v15 }
 0x240   :  { %4768 = vmatmul.mubr.msk.f32.gmra.mrb[20].mxu0 %vm345_vm1, %v6428_v0 }
 0x241   :  { %4770 = vmatprep.mubr.msk.f32.mxu0 %vm345_vm1, %v6442_v13  ;;  %5280 = vmatpush3.bf16.msra.mxu0 %v5277_v32 }
 0x242   :  { %5282 = vmatprep.subr.bf16.mxu0 %v5281_v43 }
 0x244   :  { %4771 = vmatmul.mubr.msk.f32.gmra.mrb[22].mxu0 %vm345_vm1, %v6440_v11 }
 0x245   :  { %5284 = vmatpush3.bf16.msra.mxu0 %v5281_v43 }
 0x246   :  { %5311 = vmatprep.subr.msk.bf16.mxu0 %vm6476_vm2, %v6547_v33 }
 0x2f7   :  { %v4735_v52 = vpop.f32.mrb[0].mxu1 }
 0x2f8   :  { %v444_v48 = vpop.f32.mrb[1].mxu1  ;;  %v648_v49 = vsel %vm644_vm3, %v4735_v52, -inf }
 0x2f9   :  { %649 = vmax.xlane.f32.xlu0 %v648_v49  ;;  %v645_v50 = vsel %vm644_vm3, %v444_v48, -inf }
 0x2fa   :  { %646 = vmax.xlane.f32.xlu1 %v645_v50 }
 0x2fb   :  { %v4738_v1 = vpop.f32.mrb[2].mxu1 }
 0x2fc   :  { %v454_v40 = vpop.f32.mrb[3].mxu1  ;;  %v654_v12 = vsel %vm644_vm3, %v4738_v1, -inf }
 0x2fd   :  { %v651_v59 = vsel %vm644_vm3, %v454_v40, -inf }
 0x2fe   :  { %655 = vmax.xlane.f32.xlu1 %v654_v12  ;;  %652 = vmax.xlane.f32.xlu0 %v651_v59 }
 0x2ff   :  { %v4741_v3 = vpop.f32.mrb[4].mxu1 }
 0x300   :  { %v464_v15 = vpop.f32.mrb[5].mxu1  ;;  %v660_v32 = vsel %vm644_vm3, %v4741_v3, -inf }
 0x301   :  { %v657_v10 = vsel %vm644_vm3, %v464_v15, -inf }
 0x302   :  { %661 = vmax.xlane.f32.xlu1 %v660_v32  ;;  %658 = vmax.xlane.f32.xlu0 %v657_v10 }
 0x303   :  { %v6560_v38 = vpop.f32.mrb[6].mxu1 }
 0x304   :  { %v6562_v43 = vpop.f32.mrb[7].mxu1  ;;  %v666_v49 = vsel %vm644_vm3, %v6560_v38, -inf }
 0x305   :  { %v663_v50 = vsel %vm644_vm3, %v6562_v43, -inf }
 0x306   :  { %667 = vmax.xlane.f32.xlu1 %v666_v49  ;;  %664 = vmax.xlane.f32.xlu0 %v663_v50 }
 0x30b   :  { %v6568_v12 = vpop.f32.mrb[16].mxu0 }
 0x30c   :  { %v6570_v59 = vpop.f32.mrb[17].mxu0  ;;  %v672_v32 = vsel %vm644_vm3, %v6568_v12, -inf }
 0x30d   :  { %673 = vmax.xlane.f32.xlu1 %v672_v32  ;;  %v669_v10 = vsel %vm644_vm3, %v6570_v59, -inf }
 0x30e   :  { %670 = vmax.xlane.f32.xlu0 %v669_v10 }
 0x30f   :  { %v6576_v8 = vpop.f32.mrb[18].mxu0 }
 0x310   :  { %v6578_v31 = vpop.f32.mrb[19].mxu0  ;;  %v678_v49 = vsel %vm644_vm3, %v6576_v8, -inf }
 0x311   :  { %679 = vmax.xlane.f32.xlu1 %v678_v49  ;;  %v675_v50 = vsel %vm644_vm3, %v6578_v31, -inf }
 0x312   :  { %676 = vmax.xlane.f32.xlu0 %v675_v50 }
 0x313   :  { %v6584_v30 = vpop.f32.mrb[20].mxu0 }
 0x314   :  { %v6586_v29 = vpop.f32.mrb[21].mxu0  ;;  %v684_v32 = vsel %vm644_vm3, %v6584_v30, -inf }
 0x315   :  { %685 = vmax.xlane.f32.xlu1 %v684_v32  ;;  %v681_v10 = vsel %vm644_vm3, %v6586_v29, -inf  ;;  %v6604_v32 = vpop.permute.xlu0 %5638 }
 0x316   :  { %682 = vmax.xlane.f32.xlu0 %v681_v10 }
 0x317   :  { %v6592_v27 = vpop.f32.mrb[22].mxu0 }
 0x318   :  { %v6594_v24 = vpop.f32.mrb[23].mxu0  ;;  %v690_v49 = vsel %vm644_vm3, %v6592_v27, -inf }
 0x319   :  { %691 = vmax.xlane.f32.xlu1 %v690_v49  ;;  %v687_v50 = vsel %vm644_vm3, %v6594_v24, -inf  ;;  %v6606_v10 = vpop.permute.xlu0 %5643 }
 0x31a   :  { %688 = vmax.xlane.f32.xlu0 %v687_v50 }
 0x31d   :  { %v6608_v22 = vpop.permute.xlu0 %5653 }
 0x32a   :  { %1129 = vrot.lane.b32.xlu1 %v6368_v34, %s6223_s14 }
 0x330   :  { %1127 = vrot.lane.b32.xlu0 %v6370_v36, %s6223_s14 }
 0x386   :  { %v650_v19 = vpop.xlane.xlu0 %649 }
 0x387   :  { %v694_v17 = vsub.f32 %v4735_v52, %v650_v19  ;;  %v647_v49 = vpop.xlane.xlu1 %646 }
 0x388   :  { %v693_v28 = vsub.f32 %v444_v48, %v647_v49 }
 0x389   :  { %v711_v26 = vmul.f32 1.442695, %v694_v17 }
 0x38a   :  { %v709_v25 = vmul.f32 1.442695, %v693_v28 }
 0x38b   :  { %5887 = vpow2.f32 %v711_v26  ;;  %v656_v50 = vpop.xlane.xlu1 %655  ;;  %v653_v23 = vpop.xlane.xlu0 %652 }
 0x38c   :  { %5889 = vpow2.f32 %v709_v25  ;;  %v696_v21 = vsub.f32 %v4738_v1, %v656_v50  ;;  %v695_v20 = vsub.f32 %v454_v40, %v653_v23 }
 0x38e   :  { %v715_v18 = vmul.f32 1.442695, %v696_v21  ;;  %v713_v16 = vmul.f32 1.442695, %v695_v20 }
 0x38f   :  { %v662_v6 = vpop.xlane.xlu1 %661  ;;  %v659_v7 = vpop.xlane.xlu0 %658 }
 0x390   :  { %5891 = vpow2.f32 %v715_v18  ;;  %v698_v4 = vsub.f32 %v4741_v3, %v662_v6  ;;  %v697_v5 = vsub.f32 %v464_v15, %v659_v7 }
 0x391   :  { %5893 = vpow2.f32 %v713_v16 }
 0x392   :  { %v719_v36 = vmul.f32 1.442695, %v698_v4  ;;  %v717_v19 = vmul.f32 1.442695, %v697_v5 }
 0x393   :  { %v668_v52 = vpop.xlane.xlu1 %667  ;;  %v665_v48 = vpop.xlane.xlu0 %664 }
 0x394   :  { %5895 = vpow2.f32 %v719_v36  ;;  %v700_v17 = vsub.f32 %v6560_v38, %v668_v52  ;;  %v699_v26 = vsub.f32 %v6562_v43, %v665_v48 }
 0x395   :  { %v6612_v25 = vpop.eup %5887  ;;  %5897 = vpow2.f32 %v717_v19 }
 0x396   :  { %v6614_v23 = vpop.eup %5889  ;;  %v723_v20 = vmul.f32 1.442695, %v700_v17  ;;  %v721_v21 = vmul.f32 1.442695, %v699_v26  ;;  %v744_v6 = vsel %vm644_vm3, %v6612_v25, 0.0 }
 0x397   :  { %745 = vadd.xlane.f32.xlu1 %v744_v6  ;;  %v741_v4 = vsel %vm644_vm3, %v6614_v23, 0.0 }
 0x398   :  { %742 = vadd.xlane.f32.xlu0 %v741_v4  ;;  %5899 = vpow2.f32 %v721_v21 }
 0x399   :  { %5901 = vpow2.f32 %v723_v20 }
 0x39a   :  { %v6620_v5 = vpop.eup %5891  ;;  %v674_v7 = vpop.xlane.xlu1 %673 }
 0x39b   :  { %v702_v16 = vsub.f32 %v6568_v12, %v674_v7  ;;  %v671_v18 = vpop.xlane.xlu0 %670  ;;  %v750_v28 = vsel %vm644_vm3, %v6620_v5, 0.0  ;;  %v6625_v36 = vpop.eup %5893 }
 0x39c   :  { %v701_v1 = vsub.f32 %v6570_v59, %v671_v18  ;;  %751 = vadd.xlane.f32.xlu0 %v750_v28  ;;  %v747_v43 = vsel %vm644_vm3, %v6625_v36, 0.0 }
 0x39d   :  { %v727_v40 = vmul.f32 1.442695, %v702_v16 }
 0x39e   :  { %v6628_v3 = vpop.eup %5895  ;;  %v725_v15 = vmul.f32 1.442695, %v701_v1  ;;  %v680_v21 = vpop.xlane.xlu1 %679 }
 0x39f   :  { %5903 = vpow2.f32 %v727_v40  ;;  %v756_v38 = vsel %vm644_vm3, %v6628_v3, 0.0  ;;  %v6634_v12 = vpop.eup %5897  ;;  %v677_v6 = vpop.xlane.xlu0 %676  ;;  %v704_v7 = vsub.f32 %v6576_v8, %v680_v21 }
 0x3a0   :  { %5905 = vpow2.f32 %v725_v15  ;;  %757 = vadd.xlane.f32.xlu1 %v756_v38  ;;  %748 = vadd.xlane.f32.xlu0 %v747_v43  ;;  %v753_v59 = vsel %vm644_vm3, %v6634_v12, 0.0  ;;  %v703_v18 = vsub.f32 %v6578_v31, %v677_v6 }
 0x3a1   :  { %v731_v28 = vmul.f32 1.442695, %v704_v7 }
 0x3a2   :  { %v6636_v49 = vpop.eup %5899  ;;  %v686_v4 = vpop.xlane.xlu1 %685  ;;  %v729_v40 = vmul.f32 1.442695, %v703_v18 }
 0x3a3   :  { %v6640_v50 = vpop.eup %5901  ;;  %v759_v19 = vsel %vm644_vm3, %v6636_v49, 0.0  ;;  %v683_v16 = vpop.xlane.xlu0 %682  ;;  %v706_v1 = vsub.f32 %v6584_v30, %v686_v4  ;;  %5907 = vpow2.f32 %v731_v28 }
 0x3a4   :  { %754 = vadd.xlane.f32.xlu1 %v753_v59  ;;  %760 = vadd.xlane.f32.xlu0 %v759_v19  ;;  %v762_v52 = vsel %vm644_vm3, %v6640_v50, 0.0  ;;  %v705_v15 = vsub.f32 %v6586_v29, %v683_v16  ;;  %5909 = vpow2.f32 %v729_v40 }
 0x3a5   :  { %v735_v59 = vmul.f32 1.442695, %v706_v1 }
 0x3a6   :  { %v692_v38 = vpop.xlane.xlu1 %691 }
 0x3a7   :  { %v689_v43 = vpop.xlane.xlu0 %688  ;;  %v708_v19 = vsub.f32 %v6592_v27, %v692_v38  ;;  %5911 = vpow2.f32 %v735_v59 }
 0x3a8   :  { %763 = vadd.xlane.f32.xlu1 %v762_v52  ;;  %v733_v52 = vmul.f32 1.442695, %v705_v15 }
 0x3a9   :  { %v6646_v48 = vpop.eup %5903  ;;  %v739_v8 = vmul.f32 1.442695, %v708_v19 }
 0x3aa   :  { %v6648_v17 = vpop.eup %5905  ;;  %v768_v26 = vsel %vm644_vm3, %v6646_v48, 0.0  ;;  %5913 = vpow2.f32 %v733_v52  ;;  %v6720_v1 = vpop.permute.xlu1 %1129 }
 0x3ab   :  { %v765_v20 = vsel %vm644_vm3, %v6648_v17, 0.0  ;;  %5915 = vpow2.f32 %v739_v8  ;;  %v6722_v40 = vpop.permute.xlu0 %1127  ;;  %v5641_v8 = vunpack.i.h.bf16 %v6604_v32 }
 0x3ac   :  { %769 = vadd.xlane.f32.xlu1 %v768_v26  ;;  %766 = vadd.xlane.f32.xlu0 %v765_v20  ;;  %v707_v26 = vsub.f32 %v6594_v24, %v689_v43 }
 0x3ad   :  { %v6664_v30 = vpop.eup %5907 }
 0x3ae   :  { %v737_v31 = vmul.f32 1.442695, %v707_v26  ;;  %v6666_v20 = vpop.eup %5909  ;;  %v774_v21 = vsel %vm644_vm3, %v6664_v30, 0.0 }
 0x3af   :  { %v771_v27 = vsel %vm644_vm3, %v6666_v20, 0.0 }
 0x3b0   :  { %5917 = vpow2.f32 %v737_v31  ;;  %v5640_v31 = vunpack.i.l.bf16 %v6604_v32 }
 0x3b1   :  { %v6668_v29 = vpop.eup %5911 }
 0x3b2   :  { %v780_v4 = vsel %vm644_vm3, %v6668_v29, 0.0 }
 0x3b4   :  { %v6674_v6 = vpop.eup %5913 }
 0x3b5   :  { %v6676_v24 = vpop.eup %5915  ;;  %v777_v7 = vsel %vm644_vm3, %v6674_v6, 0.0 }
 0x3b6   :  { %v786_v18 = vsel %vm644_vm3, %v6676_v24, 0.0 }
 0x3ba   :  { %v6682_v16 = vpop.eup %5917 }
 0x3bb   :  { %v783_v28 = vsel %vm644_vm3, %v6682_v16, 0.0 }
 0x3bd   :  { %1296 = vrot.lane.b32.xlu1 %v6402_v53, %s6223_s14 }
 0x3c2   :  { %5673 = vrot.lane.b32.xlu0 %v6448_v14, %s6222_s13 }
 0x3e1   :  { %775 = vadd.xlane.f32.xlu0 %v774_v21  ;;  %772 = vadd.xlane.f32.xlu1 %v771_v27 }
 0x3e5   :  { %781 = vadd.xlane.f32.xlu1 %v780_v4  ;;  %778 = vadd.xlane.f32.xlu0 %v777_v7 }
 0x3e9   :  { %787 = vadd.xlane.f32.xlu0 %v786_v18  ;;  %784 = vadd.xlane.f32.xlu1 %v783_v28  ;;  %v5291_v18 = vpack.c.bf16 %v5641_v8, %v5640_v31  ;;  %v5646_v28 = vunpack.i.h.bf16 %v6606_v10 }
 0x3fa   :  { %1131 = vrot.lane.b32.xlu1 %v6382_v41, %s6223_s14 }
 0x3fe   :  { %1135 = vrot.lane.b32.xlu1 %v6392_v46, %s6223_s14 }
 0x3ff   :  { %1298 = vrot.lane.b32.xlu0 %v6400_v51, %s6223_s14 }
 0x402   :  { %1139 = vrot.lane.b32.xlu1 %v6406_v55, %s6223_s14 }
 0x403   :  { %1133 = vrot.lane.b32.xlu0 %v6380_v39, %s6223_s14 }
 0x406   :  { %1300 = vrot.lane.b32.xlu1 %v6418_v60, %s6223_s14 }
 0x407   :  { %1137 = vrot.lane.b32.xlu0 %v6390_v44, %s6223_s14 }
 0x40a   :  { %1304 = vrot.lane.b32.xlu1 %v6430_v2, %s6223_s14 }
 0x40b   :  { %1141 = vrot.lane.b32.xlu0 %v6404_v54, %s6223_s14 }
 0x40e   :  { %1308 = vrot.lane.b32.xlu1 %v6442_v13, %s6223_s14 }
 0x40f   :  { %1302 = vrot.lane.b32.xlu0 %v6414_v58, %s6223_s14 }
 0x412   :  { %5683 = vrot.lane.b32.xlu1 %v6386_v42, %s6224_s15 }
 0x413   :  { %1306 = vrot.lane.b32.xlu0 %v6428_v0, %s6223_s14 }
 0x416   :  { %5688 = vrot.lane.b32.xlu1 %v6396_v47, %s6224_s15 }
 0x417   :  { %1310 = vrot.lane.b32.xlu0 %v6440_v11, %s6223_s14 }
 0x41a   :  { %5693 = vrot.lane.b32.xlu1 %v6422_v62, %s6224_s15 }
 0x41b   :  { %5678 = vrot.lane.b32.xlu0 %v6376_v37, %s6224_s15 }
 0x41e   :  { %5703 = vrot.lane.b32.xlu1 %v6426_v63, %s6224_s15 }
 0x41f   :  { %5698 = vrot.lane.b32.xlu0 %v6412_v57, %s6224_s15 }
 0x422   :  { %5718 = vrot.lane.b32.xlu1 %v6448_v14, %s6224_s15 }
 0x423   :  { %5708 = vrot.lane.b32.xlu0 %v6376_v37, %s6225_s16 }
 0x424   :  { %v746_v15 = vpop.xlane.xlu1 %745 }
 0x425   :  { %5919 = vrcp.f32 %v746_v15  ;;  %v743_v38 = vpop.xlane.xlu0 %742  ;;  %v5645_v15 = vunpack.i.l.bf16 %v6606_v10 }
 0x426   :  { %5921 = vrcp.f32 %v743_v38  ;;  %5733 = vrot.lane.b32.xlu1 %v6412_v57, %s6225_s16 }
 0x427   :  { %5713 = vrot.lane.b32.xlu0 %v6438_v9, %s6224_s15  ;;  %v5297_v8 = vpack.c.bf16 %v5646_v28, %v5645_v15 }
 0x429   :  { %v752_v43 = vpop.xlane.xlu0 %751 }
 0x42a   :  { %5743 = vrot.lane.b32.xlu1 %v6426_v63, %s6225_s16  ;;  %5923 = vrcp.f32 %v752_v43 }
 0x42b   :  { %5723 = vrot.lane.b32.xlu0 %v6386_v42, %s6225_s16 }
 0x42d   :  { %v758_v59 = vpop.xlane.xlu1 %757  ;;  %v749_v19 = vpop.xlane.xlu0 %748 }
 0x42e   :  { %5748 = vrot.lane.b32.xlu1 %v6438_v9, %s6225_s16  ;;  %5925 = vrcp.f32 %v749_v19 }
 0x42f   :  { %v5920_v52 = vpop.eup %5919  ;;  %5728 = vrot.lane.b32.xlu0 %v6396_v47, %s6225_s16  ;;  %5927 = vrcp.f32 %v758_v59 }
 0x430   :  { %v5922_v26 = vpop.eup %5921  ;;  %v806_v4 = vmul.f32 %v5920_v52, %v6612_v25 }
 0x431   :  { %v755_v21 = vpop.xlane.xlu1 %754  ;;  %v805_v27 = vmul.f32 %v5922_v26, %v6614_v23  ;;  %v761_v7 = vpop.xlane.xlu0 %760 }
 0x432   :  { %5929 = vrcp.f32 %v755_v21  ;;  %v5656_v21 = vunpack.i.h.bf16 %v6608_v22 }
 0x433   :  { %5931 = vrcp.f32 %v761_v7  ;;  %5738 = vrot.lane.b32.xlu0 %v6422_v62, %s6225_s16  ;;  %4789 = vmatprep.mubr.msk.f32.mxu1 %vm644_vm3, %v805_v27  ;;  %v5655_v27 = vunpack.i.l.bf16 %v6608_v22 }
 0x434   :  { %4790 = vmatmul.mubr.msk.f32.vlgmr.msra.gmra.mrb[8].mxu1 %vm644_vm3, %v806_v4  ;;  %v5924_v25 = vpop.eup %5923 }
 0x435   :  { %5290 = vmatpush3.bf16.xpose.msk.msra.mxu1 %vm6476_vm2, %v6528_v56  ;;  %v764_v32 = vpop.xlane.xlu1 %763  ;;  %v808_v56 = vmul.f32 %v5924_v25, %v6620_v5 }
 0x436   :  { %5933 = vrcp.f32 %v764_v32  ;;  %5293 = vmatprep.subr.msk.bf16.mxu1 %vm6476_vm2, %v5291_v18  ;;  %v5660_v32 = vunpack.i.l.bf16 %v6526_v45 }
 0x438   :  { %v5926_v23 = vpop.eup %5925 }
 0x439   :  { %v770_v38 = vpop.xlane.xlu1 %769  ;;  %v767_v43 = vpop.xlane.xlu0 %766  ;;  %v807_v59 = vmul.f32 %v5926_v23, %v6625_v36 }
 0x43a   :  { %5935 = vrcp.f32 %v770_v38  ;;  %v5928_v19 = vpop.eup %5927 }
 0x43b   :  { %5937 = vrcp.f32 %v767_v43  ;;  %4792 = vmatprep.mubr.msk.f32.mxu1 %vm644_vm3, %v807_v59  ;;  %v810_v10 = vmul.f32 %v5928_v19, %v6628_v3  ;;  %v5303_v3 = vpack.c.bf16 %v5656_v21, %v5655_v27 }
 0x43c   :  { %v5930_v52 = vpop.eup %5929  ;;  %4793 = vmatmul.mubr.msk.f32.gmra.mrb[10].mxu1 %vm644_vm3, %v808_v56 }
 0x43d   :  { %v5932_v26 = vpop.eup %5931  ;;  %v809_v31 = vmul.f32 %v5930_v52, %v6634_v12  ;;  %5296 = vmatpush3.bf16.xpose.msk.msra.mxu1 %vm6476_vm2, %v5291_v18  ;;  %v5661_v18 = vunpack.i.h.bf16 %v6526_v45  ;;  %v5666_v45 = vunpack.i.h.bf16 %v6533_v61 }
 0x43e   :  { %5299 = vmatprep.subr.msk.bf16.mxu1 %vm6476_vm2, %v5297_v8  ;;  %v811_v36 = vmul.f32 %v5932_v26, %v6636_v49 }
 0x43f   :  { %4795 = vmatprep.mubr.msk.f32.mxu1 %vm644_vm3, %v809_v31  ;;  %v5315_v49 = vpack.c.bf16 %v5661_v18, %v5660_v32 }
 0x440   :  { %v5934_v5 = vpop.eup %5933  ;;  %4796 = vmatmul.mubr.msk.f32.gmra.mrb[12].mxu1 %vm644_vm3, %v810_v10 }
 0x441   :  { %v812_v12 = vmul.f32 %v5934_v5, %v6640_v50  ;;  %4798 = vmatprep.mubr.msk.f32.mxu1 %vm644_vm3, %v811_v36  ;;  %v5665_v50 = vunpack.i.l.bf16 %v6533_v61  ;;  %v1297_v61 = vpop.permute.xlu1 %1296 }
 0x444   :  { %v5936_v4 = vpop.eup %5935  ;;  %4799 = vmatmul.mubr.msk.f32.gmra.mrb[14].mxu1 %vm644_vm3, %v812_v12 }
 0x445   :  { %v5938_v7 = vpop.eup %5937  ;;  %v814_v25 = vmul.f32 %v5936_v4, %v6646_v48  ;;  %5302 = vmatpush3.bf16.xpose.msk.msra.mxu1 %vm6476_vm2, %v5297_v8  ;;  %4845 = vmatprep.mubr.msk.f32.mxu1 %vm345_vm1, %v6722_v40  ;;  %v5321_v48 = vpack.c.bf16 %v5666_v45, %v5665_v50 }
 0x446   :  { %v813_v22 = vmul.f32 %v5938_v7, %v6648_v17  ;;  %5305 = vmatprep.subr.msk.bf16.mxu1 %vm6476_vm2, %v5303_v3  ;;  %v5674_v17 = vpop.permute.xlu0 %5673 }
 0x447   :  { %v5676_v40 = vunpack.i.h.bf16 %v5674_v17 }
 0x448   :  { %4817 = vmatprep.mubr.msk.f32.mxu0 %vm644_vm3, %v813_v22 }
 0x449   :  { %4818 = vmatmul.mubr.msk.f32.vlgmr.msra.gmra.mrb[24].mxu0 %vm644_vm3, %v814_v25 }
 0x44a   :  { %5314 = vmatpush3.bf16.xpose.msk.msra.mxu0 %vm6476_vm2, %v6547_v33  ;;  %v5675_v33 = vunpack.i.l.bf16 %v5674_v17 }
 0x44b   :  { %5317 = vmatprep.subr.msk.bf16.mxu0 %vm6476_vm2, %v5315_v49 }
 0x44c   :  { %v5327_v23 = vpack.c.bf16 %v5676_v40, %v5675_v33 }
 0x44d   :  { %5308 = vmatpush3.bf16.xpose.msk.msra.mxu1 %vm6476_vm2, %v5303_v3 }
 0x452   :  { %5320 = vmatpush3.bf16.xpose.msk.msra.mxu0 %vm6476_vm2, %v5315_v49 }
 0x453   :  { %5323 = vmatprep.subr.msk.bf16.mxu0 %vm6476_vm2, %v5321_v48 }
 0x454   :  { %4846 = vmatmul.mubr.msk.f32.vlgmr.msra.gmra.mrb[16].mxu1 %vm345_vm1, %v6720_v1 }
 0x45a   :  { %5326 = vmatpush3.bf16.xpose.msk.msra.mxu0 %vm6476_vm2, %v5321_v48 }
 0x45b   :  { %5329 = vmatprep.subr.msk.bf16.mxu0 %vm6476_vm2, %v5327_v23 }
 0x462   :  { %5332 = vmatpush3.bf16.xpose.msk.msra.mxu0 %vm6476_vm2, %v5327_v23 }
 0x46e   :  { %v773_v28 = vpop.xlane.xlu1 %772  ;;  %v776_v15 = vpop.xlane.xlu0 %775 }
 0x46f   :  { %5939 = vrcp.f32 %v773_v28 }
 0x470   :  { %5941 = vrcp.f32 %v776_v15 }
 0x472   :  { %v782_v38 = vpop.xlane.xlu1 %781  ;;  %v779_v43 = vpop.xlane.xlu0 %778 }
 0x473   :  { %5943 = vrcp.f32 %v782_v38 }
 0x474   :  { %5945 = vrcp.f32 %v779_v43 }
 0x476   :  { %v785_v1 = vpop.xlane.xlu1 %784  ;;  %v788_v59 = vpop.xlane.xlu0 %787 }
 0x477   :  { %5947 = vrcp.f32 %v785_v1 }
 0x478   :  { %5949 = vrcp.f32 %v788_v59 }
 0x479   :  { %v5940_v19 = vpop.eup %5939 }
 0x47a   :  { %v5942_v56 = vpop.eup %5941  ;;  %v1132_v52 = vpop.permute.xlu1 %1131  ;;  %v815_v8 = vmul.f32 %v5940_v19, %v6666_v20 }
 0x47b   :  { %v1299_v26 = vpop.permute.xlu0 %1298  ;;  %4848 = vmatprep.mubr.msk.f32.mxu1 %vm345_vm1, %v1132_v52  ;;  %v816_v31 = vmul.f32 %v5942_v56, %v6664_v30 }
 0x47c   :  { %4820 = vmatprep.mubr.msk.f32.mxu0 %vm644_vm3, %v815_v8 }
 0x47d   :  { %v5944_v10 = vpop.eup %5943  ;;  %4821 = vmatmul.mubr.msk.f32.gmra.mrb[26].mxu0 %vm644_vm3, %v816_v31 }
 0x47e   :  { %v5946_v5 = vpop.eup %5945  ;;  %v1136_v36 = vpop.permute.xlu1 %1135  ;;  %v818_v27 = vmul.f32 %v5944_v10, %v6668_v29 }
 0x47f   :  { %v1134_v21 = vpop.permute.xlu0 %1133  ;;  %v817_v12 = vmul.f32 %v5946_v5, %v6674_v6 }
 0x480   :  { %4849 = vmatmul.mubr.msk.f32.gmra.mrb[18].mxu1 %vm345_vm1, %v1134_v21 }
 0x481   :  { %4851 = vmatprep.mubr.msk.f32.mxu1 %vm345_vm1, %v1136_v36  ;;  %v5948_v20 = vpop.eup %5947  ;;  %4823 = vmatprep.mubr.msk.f32.mxu0 %vm644_vm3, %v817_v12 }
 0x482   :  { %v5950_v30 = vpop.eup %5949  ;;  %4824 = vmatmul.mubr.msk.f32.gmra.mrb[28].mxu0 %vm644_vm3, %v818_v27  ;;  %v1140_v4 = vpop.permute.xlu1 %1139  ;;  %v819_v18 = vmul.f32 %v5948_v20, %v6682_v16 }
 0x483   :  { %v1138_v7 = vpop.permute.xlu0 %1137  ;;  %v820_v29 = vmul.f32 %v5950_v30, %v6676_v24 }
 0x484   :  { %4852 = vmatmul.mubr.msk.f32.gmra.mrb[20].mxu1 %vm345_vm1, %v1138_v7  ;;  %4826 = vmatprep.mubr.msk.f32.mxu0 %vm644_vm3, %v819_v18 }
 0x485   :  { %4854 = vmatprep.mubr.msk.f32.mxu1 %vm345_vm1, %v1140_v4 }
 0x486   :  { %4827 = vmatmul.mubr.msk.f32.gmra.mrb[30].mxu0 %vm644_vm3, %v820_v29  ;;  %v1301_v6 = vpop.permute.xlu1 %1300 }
 0x487   :  { %v1142_v32 = vpop.permute.xlu0 %1141  ;;  %4873 = vmatprep.mubr.msk.f32.mxu0 %vm345_vm1, %v1297_v61 }
 0x488   :  { %4855 = vmatmul.mubr.msk.f32.gmra.mrb[22].mxu1 %vm345_vm1, %v1142_v32 }
 0x48a   :  { %4874 = vmatmul.mubr.msk.f32.vlgmr.msra.gmra.mrb[32].mxu0 %vm345_vm1, %v1299_v26  ;;  %v1305_v3 = vpop.permute.xlu1 %1304 }
 0x48b   :  { %v1303_v16 = vpop.permute.xlu0 %1302  ;;  %4876 = vmatprep.mubr.msk.f32.mxu0 %vm345_vm1, %v1301_v6 }
 0x48e   :  { %4877 = vmatmul.mubr.msk.f32.gmra.mrb[34].mxu0 %vm345_vm1, %v1303_v16  ;;  %v1309_v24 = vpop.permute.xlu1 %1308 }
 0x48f   :  { %v1307_v25 = vpop.permute.xlu0 %1306  ;;  %4879 = vmatprep.mubr.msk.f32.mxu0 %vm345_vm1, %v1305_v3 }
 0x492   :  { %4880 = vmatmul.mubr.msk.f32.gmra.mrb[36].mxu0 %vm345_vm1, %v1307_v25  ;;  %v5684_v22 = vpop.permute.xlu1 %5683 }
 0x493   :  { %v1311_v49 = vpop.permute.xlu0 %1310  ;;  %4882 = vmatprep.mubr.msk.f32.mxu0 %vm345_vm1, %v1309_v24  ;;  %v5686_v45 = vunpack.i.h.bf16 %v5684_v22  ;;  %v5685_v50 = vunpack.i.l.bf16 %v5684_v22 }
 0x495   :  { %v5337_v15 = vpack.c.bf16 %v5686_v45, %v5685_v50 }
 0x496   :  { %4883 = vmatmul.mubr.msk.f32.gmra.mrb[38].mxu0 %vm345_vm1, %v1311_v49  ;;  %v5689_v48 = vpop.permute.xlu1 %5688 }
 0x497   :  { %v5679_v17 = vpop.permute.xlu0 %5678  ;;  %v5691_v38 = vunpack.i.h.bf16 %v5689_v48  ;;  %v5690_v43 = vunpack.i.l.bf16 %v5689_v48 }
 0x498   :  { %v5681_v40 = vunpack.i.h.bf16 %v5679_v17  ;;  %v5680_v33 = vunpack.i.l.bf16 %v5679_v17 }
 0x499   :  { %v5341_v5 = vpack.c.bf16 %v5691_v38, %v5690_v43 }
 0x49a   :  { %v5333_v23 = vpack.c.bf16 %v5681_v40, %v5680_v33  ;;  %v5694_v61 = vpop.permute.xlu1 %5693 }
 0x49b   :  { %v5699_v28 = vpop.permute.xlu0 %5698  ;;  %v5696_v56 = vunpack.i.h.bf16 %v5694_v61  ;;  %v5695_v52 = vunpack.i.l.bf16 %v5694_v61 }
 0x49c   :  { %v5701_v1 = vunpack.i.h.bf16 %v5699_v28  ;;  %v5700_v59 = vunpack.i.l.bf16 %v5699_v28  ;;  %5334 = vmatprep.subr.bf16.mxu1 %v5333_v23 }
 0x49d   :  { %5336 = vmatpush3.bf16.msra.mxu1 %v5333_v23  ;;  %v5345_v30 = vpack.c.bf16 %v5696_v56, %v5695_v52 }
 0x49e   :  { %5338 = vmatprep.subr.bf16.mxu1 %v5337_v15  ;;  %v5349_v19 = vpack.c.bf16 %v5701_v1, %v5700_v59  ;;  %v5704_v26 = vpop.permute.xlu1 %5703 }
 0x49f   :  { %v5709_v8 = vpop.permute.xlu0 %5708  ;;  %v5706_v31 = vunpack.i.h.bf16 %v5704_v26  ;;  %v5705_v10 = vunpack.i.l.bf16 %v5704_v26 }
 0x4a0   :  { %5350 = vmatprep.subr.bf16.mxu0 %v5349_v19  ;;  %v5711_v21 = vunpack.i.h.bf16 %v5709_v8  ;;  %v5710_v27 = vunpack.i.l.bf16 %v5709_v8 }
 0x4a1   :  { %5340 = vmatpush3.bf16.msra.mxu1 %v5337_v15  ;;  %5352 = vmatpush3.bf16.msra.mxu0 %v5349_v19  ;;  %v5353_v36 = vpack.c.bf16 %v5706_v31, %v5705_v10 }
 0x4a2   :  { %5342 = vmatprep.subr.bf16.mxu1 %v5341_v5  ;;  %v5719_v12 = vpop.permute.xlu1 %5718  ;;  %v6830_v3 = vpack.c.bf16 %v5711_v21, %v5710_v27 }
 0x4a3   :  { %v5714_v20 = vpop.permute.xlu0 %5713  ;;  %v5721_v4 = vunpack.i.h.bf16 %v5719_v12  ;;  %v5720_v7 = vunpack.i.l.bf16 %v5719_v12  ;;  %5354 = vmatprep.subr.bf16.mxu0 %v5353_v36 }
 0x4a4   :  { %v5716_v18 = vunpack.i.h.bf16 %v5714_v20  ;;  %v5715_v29 = vunpack.i.l.bf16 %v5714_v20 }
 0x4a5   :  { %5344 = vmatpush3.bf16.msra.mxu1 %v5341_v5  ;;  %5356 = vmatpush3.bf16.msra.mxu0 %v5353_v36  ;;  %v5361_v25 = vpack.c.bf16 %v5721_v4, %v5720_v7 }
 0x4a6   :  { %5346 = vmatprep.subr.bf16.mxu1 %v5345_v30  ;;  %v5357_v6 = vpack.c.bf16 %v5716_v18, %v5715_v29  ;;  %v5734_v32 = vpop.permute.xlu1 %5733 }
 0x4a7   :  { %v5736_v16 = vunpack.i.h.bf16 %v5734_v32  ;;  %v5735_v24 = vunpack.i.l.bf16 %v5734_v32 }
 0x4a8   :  { %5358 = vmatprep.subr.bf16.mxu0 %v5357_v6 }
 0x4a9   :  { %5348 = vmatpush3.bf16.msra.mxu1 %v5345_v30  ;;  %5360 = vmatpush3.bf16.msra.mxu0 %v5357_v6  ;;  %v6835_v22 = vpack.c.bf16 %v5736_v16, %v5735_v24 }
 0x4aa   :  { %5362 = vmatprep.subr.bf16.mxu0 %v5361_v25  ;;  %5367 = vmatprep.subr.msk.bf16.mxu1 %vm6476_vm2, %v6830_v3 }
 0x4ad   :  { %5364 = vmatpush3.bf16.msra.mxu0 %v5361_v25 }
 0x4ae   :  { %5391 = vmatprep.subr.msk.bf16.mxu0 %vm6476_vm2, %v6835_v22 }
 0x507   :  { %v6840_v49 = vpop.f32.mrb[8].mxu1 }
 0x508   :  { %8072 = vst [vmem:[#allocation32_spill] sm:$0xff] %v6840_v49  ;;  %v6842_v45 = vpop.f32.mrb[9].mxu1 }
 0x509   :  { %8073 = vst [vmem:[#allocation33_spill] sm:$0xff] %v6842_v45 }
 0x50f   :  { %v6844_v50 = vpop.f32.mrb[10].mxu1 }
 0x510   :  { %8074 = vst [vmem:[#allocation34_spill] sm:$0xff] %v6844_v50  ;;  %v6846_v48 = vpop.f32.mrb[11].mxu1 }
 0x511   :  { %8075 = vst [vmem:[#allocation35_spill] sm:$0xff] %v6846_v48 }
 0x513   :  { %v6848_v17 = vpop.f32.mrb[12].mxu1 }
 0x514   :  { %8076 = vst [vmem:[#allocation36_spill] sm:$0xff] %v6848_v17  ;;  %v6850_v40 = vpop.f32.mrb[13].mxu1 }
 0x515   :  { %8077 = vst [vmem:[#allocation37_spill] sm:$0xff] %v6850_v40 }
 0x517   :  { %v6852_v33 = vpop.f32.mrb[14].mxu1 }
 0x518   :  { %8078 = vst [vmem:[#allocation38_spill] sm:$0xff] %v6852_v33  ;;  %v6854_v23 = vpop.f32.mrb[15].mxu1 }
 0x519   :  { %8079 = vst [vmem:[#allocation39_spill] sm:$0xff] %v6854_v23 }
 0x51c   :  { %v6856_v61 = vpop.f32.mrb[24].mxu0 }
 0x51d   :  { %8080 = vst [vmem:[#allocation40_spill] sm:$0xff] %v6856_v61  ;;  %v6858_v28 = vpop.f32.mrb[25].mxu0 }
 0x51e   :  { %8081 = vst [vmem:[#allocation41_spill] sm:$0xff] %v6858_v28 }
 0x527   :  { %v6860_v15 = vpop.f32.mrb[16].mxu1 }
 0x528   :  { %v6862_v38 = vpop.f32.mrb[17].mxu1  ;;  %v1468_v43 = vsel %vm644_vm3, %v6860_v15, -inf }
 0x529   :  { %1469 = vmax.xlane.f32.xlu0 %v1468_v43  ;;  %v1465_v1 = vsel %vm644_vm3, %v6862_v38, -inf }
 0x52a   :  { %1466 = vmax.xlane.f32.xlu1 %v1465_v1 }
 0x550   :  { %v6868_v59 = vpop.f32.mrb[26].mxu0 }
 0x551   :  { %8082 = vst [vmem:[#allocation42_spill] sm:$0xff] %v6868_v59  ;;  %v6870_v19 = vpop.f32.mrb[27].mxu0 }
 0x552   :  { %8083 = vst [vmem:[#allocation43_spill] sm:$0xff] %v6870_v19 }
 0x553   :  { %v6872_v56 = vpop.f32.mrb[18].mxu1 }
 0x554   :  { %v6874_v52 = vpop.f32.mrb[19].mxu1  ;;  %v1474_v26 = vsel %vm644_vm3, %v6872_v56, -inf }
 0x555   :  { %1475 = vmax.xlane.f32.xlu1 %v1474_v26  ;;  %v1471_v8 = vsel %vm644_vm3, %v6874_v52, -inf  ;;  %v6880_v31 = vpop.f32.mrb[28].mxu0 }
 0x556   :  { %8084 = vst [vmem:[#allocation44_spill] sm:$0xff] %v6880_v31  ;;  %1472 = vmax.xlane.f32.xlu0 %v1471_v8  ;;  %v6882_v10 = vpop.f32.mrb[29].mxu0 }
 0x557   :  { %8085 = vst [vmem:[#allocation45_spill] sm:$0xff] %v6882_v10  ;;  %v6884_v5 = vpop.f32.mrb[20].mxu1 }
 0x558   :  { %v6886_v36 = vpop.f32.mrb[21].mxu1  ;;  %v1480_v21 = vsel %vm644_vm3, %v6884_v5, -inf }
 0x559   :  { %1481 = vmax.xlane.f32.xlu1 %v1480_v21  ;;  %v1477_v27 = vsel %vm644_vm3, %v6886_v36, -inf  ;;  %v6892_v12 = vpop.f32.mrb[30].mxu0 }
 0x55a   :  { %8086 = vst [vmem:[#allocation46_spill] sm:$0xff] %v6892_v12  ;;  %1478 = vmax.xlane.f32.xlu0 %v1477_v27  ;;  %v6894_v20 = vpop.f32.mrb[31].mxu0 }
 0x55b   :  { %8087 = vst [vmem:[#allocation47_spill] sm:$0xff] %v6894_v20  ;;  %v6896_v30 = vpop.f32.mrb[22].mxu1 }
 0x55c   :  { %v6898_v4 = vpop.f32.mrb[23].mxu1  ;;  %v1486_v7 = vsel %vm644_vm3, %v6896_v30, -inf }
 0x55d   :  { %1487 = vmax.xlane.f32.xlu1 %v1486_v7  ;;  %v1483_v18 = vsel %vm644_vm3, %v6898_v4, -inf  ;;  %v6904_v29 = vpop.f32.mrb[32].mxu0 }
 0x55e   :  { %1484 = vmax.xlane.f32.xlu0 %v1483_v18  ;;  %v6906_v6 = vpop.f32.mrb[33].mxu0  ;;  %v1492_v32 = vsel %vm644_vm3, %v6904_v29, -inf }
 0x55f   :  { %v1489_v16 = vsel %vm644_vm3, %v6906_v6, -inf }
 0x561   :  { %1493 = vmax.xlane.f32.xlu1 %v1492_v32  ;;  %v6912_v24 = vpop.f32.mrb[34].mxu0 }
 0x562   :  { %1490 = vmax.xlane.f32.xlu0 %v1489_v16  ;;  %v6914_v25 = vpop.f32.mrb[35].mxu0  ;;  %v1498_v43 = vsel %vm644_vm3, %v6912_v24, -inf }
 0x563   :  { %v1495_v1 = vsel %vm644_vm3, %v6914_v25, -inf }
 0x565   :  { %1499 = vmax.xlane.f32.xlu1 %v1498_v43  ;;  %v6920_v26 = vpop.f32.mrb[36].mxu0  ;;  %v8088_v43 = vld [vmem:[#allocation31_spill] sm:$0xff] }
 0x566   :  { %1496 = vmax.xlane.f32.xlu0 %v1495_v1  ;;  %v6922_v8 = vpop.f32.mrb[37].mxu0  ;;  %v1504_v21 = vsel %vm644_vm3, %v6920_v26, -inf  ;;  %v6940_v1 = vpop.permute.xlu0 %5723 }
 0x567   :  { %v1501_v27 = vsel %vm644_vm3, %v6922_v8, -inf }
 0x569   :  { %1505 = vmax.xlane.f32.xlu1 %v1504_v21  ;;  %v6928_v7 = vpop.f32.mrb[38].mxu0 }
 0x56a   :  { %1502 = vmax.xlane.f32.xlu0 %v1501_v27  ;;  %v6930_v18 = vpop.f32.mrb[39].mxu0  ;;  %v1510_v32 = vsel %vm644_vm3, %v6928_v7, -inf  ;;  %v6942_v21 = vpop.permute.xlu0 %5728 }
 0x56b   :  { %v1507_v16 = vsel %vm644_vm3, %v6930_v18, -inf  ;;  %v6944_v27 = vpop.permute.xlu1 %5743 }
 0x56d   :  { %1511 = vmax.xlane.f32.xlu1 %v1510_v32 }
 0x56e   :  { %1508 = vmax.xlane.f32.xlu0 %v1507_v16  ;;  %v6946_v12 = vpop.permute.xlu0 %5738 }
 0x56f   :  { %v6948_v32 = vpop.permute.xlu1 %5748 }
 0x57e   :  { %1949 = vrot.lane.b32.xlu1 %v6368_v34, %s6226_s17 }
 0x584   :  { %1947 = vrot.lane.b32.xlu0 %v8088_v43, %s6226_s17 }
 0x5b6   :  { %v1470_v17 = vpop.xlane.xlu0 %1469 }
 0x5b7   :  { %v1514_v16 = vsub.f32 %v6860_v15, %v1470_v17  ;;  %v1467_v40 = vpop.xlane.xlu1 %1466 }
 0x5b8   :  { %v1513_v50 = vsub.f32 %v6862_v38, %v1467_v40 }
 0x5b9   :  { %v1531_v48 = vmul.f32 1.442695, %v1514_v16 }
 0x5ba   :  { %v1529_v49 = vmul.f32 1.442695, %v1513_v50 }
 0x5bb   :  { %5951 = vpow2.f32 %v1531_v48 }
 0x5bc   :  { %5953 = vpow2.f32 %v1529_v49 }
 0x5c5   :  { %v6952_v45 = vpop.eup %5951 }
 0x5c6   :  { %v6954_v31 = vpop.eup %5953  ;;  %v1564_v10 = vsel %vm644_vm3, %v6952_v45, 0.0 }
 0x5c7   :  { %1565 = vadd.xlane.f32.xlu1 %v1564_v10  ;;  %v1561_v20 = vsel %vm644_vm3, %v6954_v31, 0.0 }
 0x5c8   :  { %1562 = vadd.xlane.f32.xlu0 %v1561_v20 }
 0x5e2   :  { %v1476_v17 = vpop.xlane.xlu1 %1475 }
 0x5e3   :  { %v1516_v15 = vsub.f32 %v6872_v56, %v1476_v17  ;;  %v1473_v40 = vpop.xlane.xlu0 %1472 }
 0x5e4   :  { %v1515_v50 = vsub.f32 %v6874_v52, %v1473_v40 }
 0x5e5   :  { %v1535_v48 = vmul.f32 1.442695, %v1516_v15 }
 0x5e6   :  { %v1533_v49 = vmul.f32 1.442695, %v1515_v50  ;;  %v1482_v38 = vpop.xlane.xlu1 %1481 }
 0x5e7   :  { %5955 = vpow2.f32 %v1535_v48  ;;  %v1518_v16 = vsub.f32 %v6884_v5, %v1482_v38  ;;  %v1479_v59 = vpop.xlane.xlu0 %1478 }
 0x5e8   :  { %v1517_v19 = vsub.f32 %v6886_v36, %v1479_v59  ;;  %5957 = vpow2.f32 %v1533_v49 }
 0x5e9   :  { %v1539_v10 = vmul.f32 1.442695, %v1518_v16 }
 0x5ea   :  { %v1537_v61 = vmul.f32 1.442695, %v1517_v19  ;;  %v1488_v28 = vpop.xlane.xlu1 %1487 }
 0x5eb   :  { %5959 = vpow2.f32 %v1539_v10  ;;  %v1520_v20 = vsub.f32 %v6896_v30, %v1488_v28  ;;  %v1485_v56 = vpop.xlane.xlu0 %1484 }
 0x5ec   :  { %v1519_v17 = vsub.f32 %v6898_v4, %v1485_v56  ;;  %5961 = vpow2.f32 %v1537_v61 }
 0x5ed   :  { %v1543_v52 = vmul.f32 1.442695, %v1520_v20 }
 0x5ee   :  { %v1541_v15 = vmul.f32 1.442695, %v1519_v17  ;;  %v1494_v40 = vpop.xlane.xlu1 %1493 }
 0x5ef   :  { %v1522_v50 = vsub.f32 %v6904_v29, %v1494_v40  ;;  %v1491_v5 = vpop.xlane.xlu0 %1490 }
 0x5f0   :  { %5963 = vpow2.f32 %v1541_v15  ;;  %v1521_v59 = vsub.f32 %v6906_v6, %v1491_v5 }
 0x5f1   :  { %v6968_v36 = vpop.eup %5955  ;;  %5965 = vpow2.f32 %v1543_v52  ;;  %v1547_v19 = vmul.f32 1.442695, %v1522_v50 }
 0x5f2   :  { %v1545_v48 = vmul.f32 1.442695, %v1521_v59  ;;  %v1570_v28 = vsel %vm644_vm3, %v6968_v36, 0.0  ;;  %v6972_v30 = vpop.eup %5957  ;;  %v1500_v40 = vpop.xlane.xlu1 %1499 }
 0x5f3   :  { %1571 = vadd.xlane.f32.xlu0 %v1570_v28  ;;  %v1567_v29 = vsel %vm644_vm3, %v6972_v30, 0.0  ;;  %v1497_v50 = vpop.xlane.xlu0 %1496  ;;  %v1524_v59 = vsub.f32 %v6912_v24, %v1500_v40 }
 0x5f4   :  { %5967 = vpow2.f32 %v1545_v48  ;;  %v1523_v48 = vsub.f32 %v6914_v25, %v1497_v50 }
 0x5f5   :  { %v6974_v61 = vpop.eup %5959  ;;  %5969 = vpow2.f32 %v1547_v19  ;;  %v1551_v28 = vmul.f32 1.442695, %v1524_v59 }
 0x5f6   :  { %v1576_v4 = vsel %vm644_vm3, %v6974_v61, 0.0  ;;  %v6980_v6 = vpop.eup %5961  ;;  %v1506_v5 = vpop.xlane.xlu1 %1505 }
 0x5f7   :  { %1577 = vadd.xlane.f32.xlu1 %v1576_v4  ;;  %1568 = vadd.xlane.f32.xlu0 %v1567_v29  ;;  %v1573_v38 = vsel %vm644_vm3, %v6980_v6, 0.0  ;;  %v1503_v19 = vpop.xlane.xlu0 %1502  ;;  %5971 = vpow2.f32 %v1551_v28 }
 0x5f8   :  { %v1525_v4 = vsub.f32 %v6922_v8, %v1503_v19 }
 0x5fa   :  { %v6982_v49 = vpop.eup %5963  ;;  %v1512_v29 = vpop.xlane.xlu1 %1511 }
 0x5fb   :  { %v6986_v16 = vpop.eup %5965  ;;  %1574 = vadd.xlane.f32.xlu1 %v1573_v38  ;;  %v1579_v10 = vsel %vm644_vm3, %v6982_v49, 0.0  ;;  %v1549_v38 = vmul.f32 1.442695, %v1523_v48 }
 0x5fc   :  { %1580 = vadd.xlane.f32.xlu0 %v1579_v10  ;;  %v1582_v56 = vsel %vm644_vm3, %v6986_v16, 0.0  ;;  %v1526_v10 = vsub.f32 %v6920_v26, %v1506_v5 }
 0x5fd   :  { %5973 = vpow2.f32 %v1549_v38 }
 0x5fe   :  { %v6990_v20 = vpop.eup %5967  ;;  %v1555_v33 = vmul.f32 1.442695, %v1526_v10  ;;  %v7036_v28 = vpop.permute.xlu1 %1949 }
 0x5ff   :  { %v6994_v17 = vpop.eup %5969  ;;  %1583 = vadd.xlane.f32.xlu1 %v1582_v56  ;;  %v1585_v52 = vsel %vm644_vm3, %v6990_v20, 0.0  ;;  %v1553_v56 = vmul.f32 1.442695, %v1525_v4 }
 0x600   :  { %1586 = vadd.xlane.f32.xlu0 %v1585_v52  ;;  %v1588_v15 = vsel %vm644_vm3, %v6994_v17, 0.0  ;;  %v1528_v52 = vsub.f32 %v6928_v7, %v1512_v29 }
 0x601   :  { %5975 = vpow2.f32 %v1553_v56  ;;  %v7010_v40 = vpop.eup %5971 }
 0x602   :  { %v1559_v24 = vmul.f32 1.442695, %v1528_v52  ;;  %5977 = vpow2.f32 %v1555_v33  ;;  %v1594_v26 = vsel %vm644_vm3, %v7010_v40, 0.0  ;;  %v5726_v52 = vunpack.i.h.bf16 %v6940_v1 }
 0x603   :  { %1589 = vadd.xlane.f32.xlu1 %v1588_v15  ;;  %v1509_v15 = vpop.xlane.xlu0 %1508 }
 0x604   :  { %v1527_v23 = vsub.f32 %v6930_v18, %v1509_v15  ;;  %5979 = vpow2.f32 %v1559_v24  ;;  %v5725_v15 = vunpack.i.l.bf16 %v6940_v1 }
 0x606   :  { %v1557_v25 = vmul.f32 1.442695, %v1527_v23 }
 0x607   :  { %v7012_v8 = vpop.eup %5973  ;;  %v7038_v4 = vpop.permute.xlu0 %1947 }
 0x608   :  { %5981 = vpow2.f32 %v1557_v25  ;;  %v1591_v7 = vsel %vm644_vm3, %v7012_v8, 0.0 }
 0x60b   :  { %v7016_v50 = vpop.eup %5975 }
 0x60c   :  { %v7020_v18 = vpop.eup %5977  ;;  %v1597_v33 = vsel %vm644_vm3, %v7016_v50, 0.0 }
 0x60d   :  { %v1600_v5 = vsel %vm644_vm3, %v7020_v18, 0.0 }
 0x60e   :  { %v7024_v23 = vpop.eup %5979 }
 0x60f   :  { %v1606_v19 = vsel %vm644_vm3, %v7024_v23, 0.0 }
 0x612   :  { %v7028_v59 = vpop.eup %5981 }
 0x613   :  { %v1603_v48 = vsel %vm644_vm3, %v7028_v59, 0.0 }
 0x614   :  { %2116 = vrot.lane.b32.xlu1 %v6402_v53, %s6226_s17 }
 0x616   :  { %5753 = vrot.lane.b32.xlu0 %v6448_v14, %s6225_s16 }
 0x635   :  { %1595 = vadd.xlane.f32.xlu0 %v1594_v26  ;;  %v5371_v26 = vpack.c.bf16 %v5726_v52, %v5725_v15 }
 0x638   :  { %1592 = vadd.xlane.f32.xlu1 %v1591_v7 }
 0x639   :  { %1598 = vadd.xlane.f32.xlu0 %v1597_v33 }
 0x63c   :  { %1601 = vadd.xlane.f32.xlu1 %v1600_v5 }
 0x63d   :  { %1607 = vadd.xlane.f32.xlu0 %v1606_v19 }
 0x640   :  { %1604 = vadd.xlane.f32.xlu1 %v1603_v48 }
 0x651   :  { %1951 = vrot.lane.b32.xlu1 %v6382_v41, %s6226_s17 }
 0x653   :  { %2118 = vrot.lane.b32.xlu0 %v6400_v51, %s6226_s17 }
 0x654   :  { %v1566_v29 = vpop.xlane.xlu1 %1565 }
 0x655   :  { %1955 = vrot.lane.b32.xlu1 %v6392_v46, %s6226_s17  ;;  %5983 = vrcp.f32 %v1566_v29  ;;  %v1563_v38 = vpop.xlane.xlu0 %1562 }
 0x656   :  { %5985 = vrcp.f32 %v1563_v38 }
 0x657   :  { %1953 = vrot.lane.b32.xlu0 %v6380_v39, %s6226_s17 }
 0x659   :  { %1959 = vrot.lane.b32.xlu1 %v6406_v55, %s6226_s17 }
 0x65b   :  { %1957 = vrot.lane.b32.xlu0 %v6390_v44, %s6226_s17 }
 0x65d   :  { %2120 = vrot.lane.b32.xlu1 %v6418_v60, %s6226_s17 }
 0x65f   :  { %1961 = vrot.lane.b32.xlu0 %v6404_v54, %s6226_s17  ;;  %v5984_v10 = vpop.eup %5983 }
 0x660   :  { %v5986_v56 = vpop.eup %5985  ;;  %v1626_v25 = vmul.f32 %v5984_v10, %v6952_v45  ;;  %v5731_v45 = vunpack.i.h.bf16 %v6942_v21 }
 0x661   :  { %2124 = vrot.lane.b32.xlu1 %v6430_v2, %s6226_s17  ;;  %v1625_v24 = vmul.f32 %v5986_v56, %v6954_v31  ;;  %v5730_v31 = vunpack.i.l.bf16 %v6942_v21  ;;  %v5740_v21 = vunpack.i.l.bf16 %v6946_v12 }
 0x663   :  { %2122 = vrot.lane.b32.xlu0 %v6414_v58, %s6226_s17  ;;  %4901 = vmatprep.mubr.msk.f32.mxu1 %vm644_vm3, %v1625_v24  ;;  %v5377_v1 = vpack.c.bf16 %v5731_v45, %v5730_v31  ;;  %v5746_v31 = vunpack.i.h.bf16 %v6944_v27 }
 0x664   :  { %4902 = vmatmul.mubr.msk.f32.vlgmr.msra.gmra.mrb[24].mxu1 %vm644_vm3, %v1626_v25 }
 0x665   :  { %2128 = vrot.lane.b32.xlu1 %v6442_v13, %s6226_s17  ;;  %5370 = vmatpush3.bf16.xpose.msk.msra.mxu1 %vm6476_vm2, %v6830_v3  ;;  %v5741_v3 = vunpack.i.h.bf16 %v6946_v12 }
 0x666   :  { %5373 = vmatprep.subr.msk.bf16.mxu1 %vm6476_vm2, %v5371_v26 }
 0x667   :  { %2126 = vrot.lane.b32.xlu0 %v6428_v0, %s6226_s17  ;;  %v5383_v7 = vpack.c.bf16 %v5741_v3, %v5740_v21 }
 0x669   :  { %5763 = vrot.lane.b32.xlu1 %v6386_v42, %s6227_s18 }
 0x66b   :  { %2130 = vrot.lane.b32.xlu0 %v6440_v11, %s6226_s17 }
 0x66d   :  { %5768 = vrot.lane.b32.xlu1 %v6396_v47, %s6227_s18  ;;  %5376 = vmatpush3.bf16.xpose.msk.msra.mxu1 %vm6476_vm2, %v5371_v26 }
 0x66e   :  { %5379 = vmatprep.subr.msk.bf16.mxu1 %vm6476_vm2, %v5377_v1 }
 0x66f   :  { %5758 = vrot.lane.b32.xlu0 %v6376_v37, %s6227_s18 }
 0x671   :  { %5773 = vrot.lane.b32.xlu1 %v6422_v62, %s6227_s18 }
 0x673   :  { %5778 = vrot.lane.b32.xlu0 %v6412_v57, %s6227_s18 }
 0x675   :  { %5783 = vrot.lane.b32.xlu1 %v6426_v63, %s6227_s18  ;;  %5382 = vmatpush3.bf16.xpose.msk.msra.mxu1 %vm6476_vm2, %v5377_v1 }
 0x676   :  { %5385 = vmatprep.subr.msk.bf16.mxu1 %vm6476_vm2, %v5383_v7 }
 0x677   :  { %5788 = vrot.lane.b32.xlu0 %v6376_v37, %s6228_s19 }
 0x679   :  { %5798 = vrot.lane.b32.xlu1 %v6448_v14, %s6227_s18 }
 0x67b   :  { %5793 = vrot.lane.b32.xlu0 %v6438_v9, %s6227_s18 }
 0x67d   :  { %5813 = vrot.lane.b32.xlu1 %v6412_v57, %s6228_s19  ;;  %5388 = vmatpush3.bf16.xpose.msk.msra.mxu1 %vm6476_vm2, %v5383_v7 }
 0x67f   :  { %5803 = vrot.lane.b32.xlu0 %v6386_v42, %s6228_s19 }
 0x680   :  { %v1572_v12 = vpop.xlane.xlu0 %1571 }
 0x681   :  { %5823 = vrot.lane.b32.xlu1 %v6426_v63, %s6228_s19  ;;  %5987 = vrcp.f32 %v1572_v12 }
 0x683   :  { %5808 = vrot.lane.b32.xlu0 %v6396_v47, %s6228_s19 }
 0x684   :  { %v1578_v33 = vpop.xlane.xlu1 %1577  ;;  %v1569_v5 = vpop.xlane.xlu0 %1568 }
 0x685   :  { %5828 = vrot.lane.b32.xlu1 %v6438_v9, %s6228_s19  ;;  %5989 = vrcp.f32 %v1569_v5 }
 0x686   :  { %5991 = vrcp.f32 %v1578_v33 }
 0x687   :  { %5818 = vrot.lane.b32.xlu0 %v6422_v62, %s6228_s19 }
 0x688   :  { %v1575_v19 = vpop.xlane.xlu1 %1574 }
 0x689   :  { %5993 = vrcp.f32 %v1575_v19  ;;  %2769 = vrot.lane.b32.xlu1 %v6368_v34, %s6229_s20  ;;  %v1581_v48 = vpop.xlane.xlu0 %1580 }
 0x68a   :  { %5995 = vrcp.f32 %v1581_v48 }
 0x68b   :  { %2767 = vrot.lane.b32.xlu0 %v8088_v43, %s6229_s20  ;;  %v5988_v10 = vpop.eup %5987 }
 0x68c   :  { %v1584_v29 = vpop.xlane.xlu1 %1583  ;;  %v1628_v15 = vmul.f32 %v5988_v10, %v6968_v36 }
 0x68d   :  { %5997 = vrcp.f32 %v1584_v29  ;;  %2773 = vrot.lane.b32.xlu1 %v6380_v39, %s6229_s20  ;;  %v1587_v38 = vpop.xlane.xlu0 %1586 }
 0x68e   :  { %5999 = vrcp.f32 %v1587_v38 }
 0x68f   :  { %2771 = vrot.lane.b32.xlu0 %v6382_v41, %s6229_s20  ;;  %v5990_v56 = vpop.eup %5989 }
 0x690   :  { %v1590_v52 = vpop.xlane.xlu1 %1589  ;;  %v1627_v34 = vmul.f32 %v5990_v56, %v6972_v30  ;;  %v5992_v43 = vpop.eup %5991 }
 0x691   :  { %6001 = vrcp.f32 %v1590_v52  ;;  %2775 = vrot.lane.b32.xlu1 %v6392_v46, %s6229_s20  ;;  %v1630_v46 = vmul.f32 %v5992_v43, %v6974_v61 }
 0x692   :  { %4904 = vmatprep.mubr.msk.f32.mxu1 %vm644_vm3, %v1627_v34 }
 0x693   :  { %v5994_v24 = vpop.eup %5993  ;;  %5833 = vrot.lane.b32.xlu0 %v6448_v14, %s6228_s19  ;;  %4905 = vmatmul.mubr.msk.f32.gmra.mrb[26].mxu1 %vm644_vm3, %v1628_v15 }
 0x694   :  { %v5996_v39 = vpop.eup %5995  ;;  %v1629_v41 = vmul.f32 %v5994_v24, %v6980_v6  ;;  %v5745_v6 = vunpack.i.l.bf16 %v6944_v27  ;;  %v5751_v27 = vunpack.i.h.bf16 %v6948_v32 }
 0x695   :  { %v1631_v25 = vmul.f32 %v5996_v39, %v6982_v49 }
 0x696   :  { %4907 = vmatprep.mubr.msk.f32.mxu1 %vm644_vm3, %v1629_v41  ;;  %v5395_v61 = vpack.c.bf16 %v5746_v31, %v5745_v6 }
 0x697   :  { %v5998_v30 = vpop.eup %5997  ;;  %4908 = vmatmul.mubr.msk.f32.gmra.mrb[28].mxu1 %vm644_vm3, %v1630_v46 }
 0x698   :  { %v6000_v26 = vpop.eup %5999  ;;  %v1632_v36 = vmul.f32 %v5998_v30, %v6986_v16  ;;  %4910 = vmatprep.mubr.msk.f32.mxu1 %vm644_vm3, %v1631_v25  ;;  %v5750_v16 = vunpack.i.l.bf16 %v6948_v32  ;;  %v2117_v32 = vpop.permute.xlu1 %2116 }
 0x699   :  { %v1633_v45 = vmul.f32 %v6000_v26, %v6990_v20 }
 0x69a   :  { %v5401_v20 = vpack.c.bf16 %v5751_v27, %v5750_v16 }
 0x69b   :  { %v6002_v1 = vpop.eup %6001  ;;  %4929 = vmatprep.mubr.msk.f32.mxu0 %vm644_vm3, %v1633_v45  ;;  %4911 = vmatmul.mubr.msk.f32.gmra.mrb[30].mxu1 %vm644_vm3, %v1632_v36 }
 0x69c   :  { %v1634_v49 = vmul.f32 %v6002_v1, %v6994_v17  ;;  %4957 = vmatprep.mubr.msk.f32.mxu1 %vm345_vm1, %v7038_v4  ;;  %v5754_v17 = vpop.permute.xlu0 %5753 }
 0x69d   :  { %v5756_v4 = vunpack.i.h.bf16 %v5754_v17 }
 0x69e   :  { %4930 = vmatmul.mubr.msk.f32.vlgmr.msra.gmra.mrb[40].mxu0 %vm644_vm3, %v1634_v49 }
 0x69f   :  { %5394 = vmatpush3.bf16.xpose.msk.msra.mxu0 %vm6476_vm2, %v6835_v22  ;;  %4958 = vmatmul.mubr.msk.f32.vlgmr.msra.gmra.mrb[32].mxu1 %vm345_vm1, %v7036_v28  ;;  %v5755_v22 = vunpack.i.l.bf16 %v5754_v17 }
 0x6a0   :  { %5397 = vmatprep.subr.msk.bf16.mxu0 %vm6476_vm2, %v5395_v61 }
 0x6a1   :  { %v5407_v3 = vpack.c.bf16 %v5756_v4, %v5755_v22 }
 0x6a7   :  { %5400 = vmatpush3.bf16.xpose.msk.msra.mxu0 %vm6476_vm2, %v5395_v61 }
 0x6a8   :  { %5403 = vmatprep.subr.msk.bf16.mxu0 %vm6476_vm2, %v5401_v20 }
 0x6af   :  { %5406 = vmatpush3.bf16.xpose.msk.msra.mxu0 %vm6476_vm2, %v5401_v20 }
 0x6b0   :  { %5409 = vmatprep.subr.msk.bf16.mxu0 %vm6476_vm2, %v5407_v3 }
 0x6b7   :  { %5412 = vmatpush3.bf16.xpose.msk.msra.mxu0 %vm6476_vm2, %v5407_v3 }
 0x6c2   :  { %v1596_v28 = vpop.xlane.xlu0 %1595 }
 0x6c3   :  { %6003 = vrcp.f32 %v1596_v28 }
 0x6c5   :  { %v1593_v21 = vpop.xlane.xlu1 %1592 }
 0x6c6   :  { %6005 = vrcp.f32 %v1593_v21  ;;  %v1599_v7 = vpop.xlane.xlu0 %1598 }
 0x6c7   :  { %6007 = vrcp.f32 %v1599_v7 }
 0x6c9   :  { %v1602_v12 = vpop.xlane.xlu1 %1601 }
 0x6ca   :  { %6009 = vrcp.f32 %v1602_v12  ;;  %v1608_v33 = vpop.xlane.xlu0 %1607 }
 0x6cb   :  { %6011 = vrcp.f32 %v1608_v33 }
 0x6cd   :  { %v1605_v5 = vpop.xlane.xlu1 %1604  ;;  %v6004_v48 = vpop.eup %6003 }
 0x6ce   :  { %6013 = vrcp.f32 %v1605_v5  ;;  %v2119_v19 = vpop.permute.xlu0 %2118  ;;  %v1636_v34 = vmul.f32 %v6004_v48, %v7010_v40 }
 0x6d0   :  { %v6006_v29 = vpop.eup %6005 }
 0x6d1   :  { %v6008_v38 = vpop.eup %6007  ;;  %v1952_v10 = vpop.permute.xlu1 %1951  ;;  %v1635_v56 = vmul.f32 %v6006_v29, %v7012_v8 }
 0x6d2   :  { %4960 = vmatprep.mubr.msk.f32.mxu1 %vm345_vm1, %v1952_v10  ;;  %v1954_v52 = vpop.permute.xlu0 %1953  ;;  %v1637_v43 = vmul.f32 %v6008_v38, %v7016_v50 }
 0x6d3   :  { %4932 = vmatprep.mubr.msk.f32.mxu0 %vm644_vm3, %v1635_v56  ;;  %4961 = vmatmul.mubr.msk.f32.gmra.mrb[34].mxu1 %vm345_vm1, %v1954_v52 }
 0x6d4   :  { %v6010_v15 = vpop.eup %6009  ;;  %4933 = vmatmul.mubr.msk.f32.gmra.mrb[42].mxu0 %vm644_vm3, %v1636_v34 }
 0x6d5   :  { %v1956_v24 = vpop.permute.xlu1 %1955  ;;  %4935 = vmatprep.mubr.msk.f32.mxu0 %vm644_vm3, %v1637_v43  ;;  %v1638_v39 = vmul.f32 %v6010_v15, %v7020_v18  ;;  %v6012_v41 = vpop.eup %6011 }
 0x6d6   :  { %4963 = vmatprep.mubr.msk.f32.mxu1 %vm345_vm1, %v1956_v24  ;;  %v1958_v8 = vpop.permute.xlu0 %1957  ;;  %v1640_v30 = vmul.f32 %v6012_v41, %v7024_v23 }
 0x6d7   :  { %4964 = vmatmul.mubr.msk.f32.gmra.mrb[36].mxu1 %vm345_vm1, %v1958_v8 }
 0x6d8   :  { %v6014_v40 = vpop.eup %6013  ;;  %4936 = vmatmul.mubr.msk.f32.gmra.mrb[44].mxu0 %vm644_vm3, %v1638_v39 }
 0x6d9   :  { %v1960_v50 = vpop.permute.xlu1 %1959  ;;  %v1639_v25 = vmul.f32 %v6014_v40, %v7028_v59 }
 0x6da   :  { %4966 = vmatprep.mubr.msk.f32.mxu1 %vm345_vm1, %v1960_v50  ;;  %v1962_v46 = vpop.permute.xlu0 %1961 }
 0x6db   :  { %4938 = vmatprep.mubr.msk.f32.mxu0 %vm644_vm3, %v1639_v25  ;;  %4967 = vmatmul.mubr.msk.f32.gmra.mrb[38].mxu1 %vm345_vm1, %v1962_v46 }
 0x6dc   :  { %4939 = vmatmul.mubr.msk.f32.gmra.mrb[46].mxu0 %vm644_vm3, %v1640_v30 }
 0x6dd   :  { %v2121_v18 = vpop.permute.xlu1 %2120  ;;  %4985 = vmatprep.mubr.msk.f32.mxu0 %vm345_vm1, %v2117_v32 }
 0x6de   :  { %v2123_v26 = vpop.permute.xlu0 %2122 }
 0x6e0   :  { %4986 = vmatmul.mubr.msk.f32.vlgmr.msra.gmra.mrb[48].mxu0 %vm345_vm1, %v2119_v19 }
 0x6e1   :  { %v2125_v36 = vpop.permute.xlu1 %2124  ;;  %4988 = vmatprep.mubr.msk.f32.mxu0 %vm345_vm1, %v2121_v18 }
 0x6e2   :  { %v2127_v59 = vpop.permute.xlu0 %2126 }
 0x6e4   :  { %4989 = vmatmul.mubr.msk.f32.gmra.mrb[50].mxu0 %vm345_vm1, %v2123_v26 }
 0x6e5   :  { %v2129_v45 = vpop.permute.xlu1 %2128  ;;  %4991 = vmatprep.mubr.msk.f32.mxu0 %vm345_vm1, %v2125_v36 }
 0x6e6   :  { %v2131_v23 = vpop.permute.xlu0 %2130 }
 0x6e8   :  { %4992 = vmatmul.mubr.msk.f32.gmra.mrb[52].mxu0 %vm345_vm1, %v2127_v59 }
 0x6e9   :  { %v5764_v31 = vpop.permute.xlu1 %5763  ;;  %4994 = vmatprep.mubr.msk.f32.mxu0 %vm345_vm1, %v2129_v45 }
 0x6ea   :  { %v5766_v6 = vunpack.i.h.bf16 %v5764_v31  ;;  %v5765_v1 = vunpack.i.l.bf16 %v5764_v31  ;;  %v5759_v49 = vpop.permute.xlu0 %5758 }
 0x6eb   :  { %v5761_v61 = vunpack.i.h.bf16 %v5759_v49  ;;  %v5760_v27 = vunpack.i.l.bf16 %v5759_v49 }
 0x6ec   :  { %4995 = vmatmul.mubr.msk.f32.gmra.mrb[54].mxu0 %vm345_vm1, %v2131_v23  ;;  %v5417_v4 = vpack.c.bf16 %v5766_v6, %v5765_v1 }
 0x6ed   :  { %v5769_v16 = vpop.permute.xlu1 %5768  ;;  %v5413_v20 = vpack.c.bf16 %v5761_v61, %v5760_v27 }
 0x6ee   :  { %v5779_v17 = vpop.permute.xlu0 %5778  ;;  %v5771_v22 = vunpack.i.h.bf16 %v5769_v16  ;;  %v5770_v3 = vunpack.i.l.bf16 %v5769_v16 }
 0x6ef   :  { %v5781_v32 = vunpack.i.h.bf16 %v5779_v17  ;;  %v5780_v28 = vunpack.i.l.bf16 %v5779_v17  ;;  %5414 = vmatprep.subr.bf16.mxu1 %v5413_v20 }
 0x6f0   :  { %5416 = vmatpush3.bf16.msra.mxu1 %v5413_v20  ;;  %v5421_v19 = vpack.c.bf16 %v5771_v22, %v5770_v3 }
 0x6f1   :  { %v5774_v21 = vpop.permute.xlu1 %5773  ;;  %5418 = vmatprep.subr.bf16.mxu1 %v5417_v4  ;;  %v5429_v7 = vpack.c.bf16 %v5781_v32, %v5780_v28 }
 0x6f2   :  { %v5789_v12 = vpop.permute.xlu0 %5788  ;;  %v5776_v33 = vunpack.i.h.bf16 %v5774_v21  ;;  %v5775_v5 = vunpack.i.l.bf16 %v5774_v21 }
 0x6f3   :  { %5430 = vmatprep.subr.bf16.mxu0 %v5429_v7  ;;  %v5791_v29 = vunpack.i.h.bf16 %v5789_v12  ;;  %v5790_v52 = vunpack.i.l.bf16 %v5789_v12 }
 0x6f4   :  { %5420 = vmatpush3.bf16.msra.mxu1 %v5417_v4  ;;  %5432 = vmatpush3.bf16.msra.mxu0 %v5429_v7  ;;  %v5425_v15 = vpack.c.bf16 %v5776_v33, %v5775_v5 }
 0x6f5   :  { %v5784_v48 = vpop.permute.xlu1 %5783  ;;  %5422 = vmatprep.subr.bf16.mxu1 %v5421_v19  ;;  %v7188_v50 = vpack.c.bf16 %v5791_v29, %v5790_v52 }
 0x6f6   :  { %v5786_v38 = vunpack.i.h.bf16 %v5784_v48  ;;  %v5785_v10 = vunpack.i.l.bf16 %v5784_v48  ;;  %v5794_v56 = vpop.permute.xlu0 %5793 }
 0x6f7   :  { %v5796_v34 = vunpack.i.h.bf16 %v5794_v56  ;;  %v5795_v43 = vunpack.i.l.bf16 %v5794_v56 }
 0x6f8   :  { %5424 = vmatpush3.bf16.msra.mxu1 %v5421_v19  ;;  %v5433_v24 = vpack.c.bf16 %v5786_v38, %v5785_v10 }
 0x6f9   :  { %v5799_v39 = vpop.permute.xlu1 %5798  ;;  %5426 = vmatprep.subr.bf16.mxu1 %v5425_v15  ;;  %v5437_v8 = vpack.c.bf16 %v5796_v34, %v5795_v43 }
 0x6fa   :  { %v5801_v41 = vunpack.i.h.bf16 %v5799_v39  ;;  %v5800_v40 = vunpack.i.l.bf16 %v5799_v39  ;;  %5434 = vmatprep.subr.bf16.mxu0 %v5433_v24 }
 0x6fb   :  { %5436 = vmatpush3.bf16.msra.mxu0 %v5433_v24 }
 0x6fc   :  { %5428 = vmatpush3.bf16.msra.mxu1 %v5425_v15  ;;  %5438 = vmatprep.subr.bf16.mxu0 %v5437_v8  ;;  %v5441_v18 = vpack.c.bf16 %v5801_v41, %v5800_v40 }
 0x6fd   :  { %v5814_v25 = vpop.permute.xlu1 %5813  ;;  %5447 = vmatprep.subr.msk.bf16.mxu1 %vm6476_vm2, %v7188_v50 }
 0x6fe   :  { %v5816_v46 = vunpack.i.h.bf16 %v5814_v25  ;;  %v5815_v30 = vunpack.i.l.bf16 %v5814_v25 }
 0x6ff   :  { %5440 = vmatpush3.bf16.msra.mxu0 %v5437_v8 }
 0x700   :  { %5442 = vmatprep.subr.bf16.mxu0 %v5441_v18  ;;  %v7193_v26 = vpack.c.bf16 %v5816_v46, %v5815_v30 }
 0x703   :  { %5444 = vmatpush3.bf16.msra.mxu0 %v5441_v18 }
 0x704   :  { %5471 = vmatprep.subr.msk.bf16.mxu0 %vm6476_vm2, %v7193_v26 }
 0x737   :  { %v7198_v36 = vpop.f32.mrb[24].mxu1 }
 0x738   :  { %v7200_v59 = vpop.f32.mrb[25].mxu1 }
 0x766   :  { %v7202_v45 = vpop.f32.mrb[26].mxu1 }
 0x767   :  { %8089 = vst [vmem:[#allocation31_spill] sm:$0xff] %v7202_v45  ;;  %v7204_v23 = vpop.f32.mrb[27].mxu1 }
 0x768   :  { %8090 = vst [vmem:[#allocation48_spill] sm:$0xff] %v7204_v23 }
 0x76a   :  { %v7206_v31 = vpop.f32.mrb[28].mxu1 }
 0x76b   :  { %8091 = vst [vmem:[#allocation49_spill] sm:$0xff] %v7206_v31  ;;  %v7208_v6 = vpop.f32.mrb[29].mxu1 }
 0x76c   :  { %8092 = vst [vmem:[#allocation50_spill] sm:$0xff] %v7208_v6 }
 0x76e   :  { %v7210_v1 = vpop.f32.mrb[30].mxu1 }
 0x76f   :  { %8093 = vst [vmem:[#allocation51_spill] sm:$0xff] %v7210_v1  ;;  %v7212_v49 = vpop.f32.mrb[31].mxu1 }
 0x771   :  { %v7214_v61 = vpop.f32.mrb[40].mxu0 }
 0x772   :  { %8094 = vst [vmem:[#allocation52_spill] sm:$0xff] %v7214_v61  ;;  %v7216_v27 = vpop.f32.mrb[41].mxu0  ;;  %v7218_v16 = vpop.f32.mrb[32].mxu1 }
 0x773   :  { %8095 = vst [vmem:[#allocation53_spill] sm:$0xff] %v7216_v27  ;;  %v7220_v20 = vpop.f32.mrb[33].mxu1  ;;  %v2288_v17 = vsel %vm644_vm3, %v7218_v16, -inf }
 0x774   :  { %2289 = vmax.xlane.f32.xlu0 %v2288_v17  ;;  %v2285_v4 = vsel %vm644_vm3, %v7220_v20, -inf }
 0x775   :  { %2286 = vmax.xlane.f32.xlu1 %v2285_v4 }
 0x7a6   :  { %v7226_v22 = vpop.f32.mrb[34].mxu1 }
 0x7a7   :  { %v7228_v3 = vpop.f32.mrb[42].mxu0  ;;  %v7230_v32 = vpop.f32.mrb[35].mxu1  ;;  %v2294_v28 = vsel %vm644_vm3, %v7226_v22, -inf }
 0x7a8   :  { %8096 = vst [vmem:[#allocation54_spill] sm:$0xff] %v7228_v3  ;;  %v7234_v21 = vpop.f32.mrb[43].mxu0  ;;  %2295 = vmax.xlane.f32.xlu1 %v2294_v28  ;;  %v2291_v7 = vsel %vm644_vm3, %v7230_v32, -inf }
 0x7a9   :  { %8097 = vst [vmem:[#allocation55_spill] sm:$0xff] %v7234_v21  ;;  %2292 = vmax.xlane.f32.xlu0 %v2291_v7 }
 0x7aa   :  { %v7238_v12 = vpop.f32.mrb[36].mxu1 }
 0x7ab   :  { %v7240_v33 = vpop.f32.mrb[44].mxu0  ;;  %v7242_v5 = vpop.f32.mrb[37].mxu1  ;;  %v2300_v19 = vsel %vm644_vm3, %v7238_v12, -inf }
 0x7ac   :  { %8098 = vst [vmem:[#allocation56_spill] sm:$0xff] %v7240_v33  ;;  %v7246_v48 = vpop.f32.mrb[45].mxu0  ;;  %2301 = vmax.xlane.f32.xlu1 %v2300_v19  ;;  %v2297_v29 = vsel %vm644_vm3, %v7242_v5, -inf }
 0x7ad   :  { %8099 = vst [vmem:[#allocation57_spill] sm:$0xff] %v7246_v48  ;;  %2298 = vmax.xlane.f32.xlu0 %v2297_v29 }
 0x7ae   :  { %v7250_v38 = vpop.f32.mrb[38].mxu1 }
 0x7af   :  { %v7252_v10 = vpop.f32.mrb[46].mxu0  ;;  %v7254_v56 = vpop.f32.mrb[39].mxu1  ;;  %v2306_v52 = vsel %vm644_vm3, %v7250_v38, -inf }
 0x7b0   :  { %8100 = vst [vmem:[#allocation58_spill] sm:$0xff] %v7252_v10  ;;  %v7258_v34 = vpop.f32.mrb[47].mxu0  ;;  %2307 = vmax.xlane.f32.xlu1 %v2306_v52  ;;  %v2303_v43 = vsel %vm644_vm3, %v7254_v56, -inf  ;;  %v7298_v52 = vpop.permute.xlu0 %5803 }
 0x7b1   :  { %8101 = vst [vmem:[#allocation59_spill] sm:$0xff] %v7258_v34  ;;  %2304 = vmax.xlane.f32.xlu0 %v2303_v43 }
 0x7b3   :  { %v7262_v15 = vpop.f32.mrb[48].mxu0 }
 0x7b4   :  { %v7264_v24 = vpop.f32.mrb[49].mxu0  ;;  %v2312_v39 = vsel %vm644_vm3, %v7262_v15, -inf  ;;  %v7300_v43 = vpop.permute.xlu0 %5808 }
 0x7b5   :  { %2313 = vmax.xlane.f32.xlu1 %v2312_v39  ;;  %v2309_v8 = vsel %vm644_vm3, %v7264_v24, -inf  ;;  %v7302_v39 = vpop.permute.xlu1 %5823 }
 0x7b6   :  { %2310 = vmax.xlane.f32.xlu0 %v2309_v8 }
 0x7b7   :  { %v7270_v41 = vpop.f32.mrb[50].mxu0 }
 0x7b8   :  { %v7272_v40 = vpop.f32.mrb[51].mxu0  ;;  %v2318_v25 = vsel %vm644_vm3, %v7270_v41, -inf  ;;  %v7304_v8 = vpop.permute.xlu0 %5818 }
 0x7b9   :  { %2319 = vmax.xlane.f32.xlu1 %v2318_v25  ;;  %v2315_v46 = vsel %vm644_vm3, %v7272_v40, -inf  ;;  %v7306_v25 = vpop.permute.xlu1 %5828 }
 0x7ba   :  { %2316 = vmax.xlane.f32.xlu0 %v2315_v46 }
 0x7bb   :  { %v7278_v30 = vpop.f32.mrb[52].mxu0 }
 0x7bc   :  { %v7280_v18 = vpop.f32.mrb[53].mxu0  ;;  %v2324_v17 = vsel %vm644_vm3, %v7278_v30, -inf  ;;  %v7308_v46 = vpop.permute.xlu0 %2767 }
 0x7bd   :  { %2325 = vmax.xlane.f32.xlu1 %v2324_v17  ;;  %v2321_v4 = vsel %vm644_vm3, %v7280_v18, -inf  ;;  %v7310_v17 = vpop.permute.xlu1 %2769 }
 0x7be   :  { %2322 = vmax.xlane.f32.xlu0 %v2321_v4 }
 0x7bf   :  { %v7286_v28 = vpop.f32.mrb[54].mxu0 }
 0x7c0   :  { %v7288_v7 = vpop.f32.mrb[55].mxu0  ;;  %v2330_v19 = vsel %vm644_vm3, %v7286_v28, -inf  ;;  %v7312_v4 = vpop.permute.xlu0 %2771 }
 0x7c1   :  { %2331 = vmax.xlane.f32.xlu1 %v2330_v19  ;;  %v2327_v29 = vsel %vm644_vm3, %v7288_v7, -inf }
 0x7c2   :  { %2328 = vmax.xlane.f32.xlu0 %v2327_v29 }
 0x7c4   :  { %v7316_v19 = vpop.permute.xlu0 %5833 }
 0x7d2   :  { %2779 = vrot.lane.b32.xlu1 %v6406_v55, %s6229_s20  ;;  %v7314_v55 = vpop.permute.xlu1 %2773 }
 0x7d8   :  { %2777 = vrot.lane.b32.xlu0 %v6390_v44, %s6229_s20  ;;  %v7318_v44 = vpop.permute.xlu1 %2775 }
 0x801   :  { %v2290_v29 = vpop.xlane.xlu0 %2289 }
 0x802   :  { %v2334_v10 = vsub.f32 %v7218_v16, %v2290_v29  ;;  %v2287_v33 = vpop.xlane.xlu1 %2286 }
 0x803   :  { %v2333_v48 = vsub.f32 %v7220_v20, %v2287_v33 }
 0x804   :  { %v2351_v34 = vmul.f32 1.442695, %v2334_v10 }
 0x805   :  { %v2349_v3 = vmul.f32 1.442695, %v2333_v48 }
 0x806   :  { %6015 = vpow2.f32 %v2351_v34 }
 0x807   :  { %6017 = vpow2.f32 %v2349_v3 }
 0x810   :  { %v7322_v21 = vpop.eup %6015 }
 0x811   :  { %v7324_v31 = vpop.eup %6017  ;;  %v2384_v6 = vsel %vm644_vm3, %v7322_v21, 0.0 }
 0x812   :  { %2385 = vadd.xlane.f32.xlu1 %v2384_v6  ;;  %v2381_v61 = vsel %vm644_vm3, %v7324_v31, 0.0 }
 0x813   :  { %2382 = vadd.xlane.f32.xlu0 %v2381_v61 }
 0x835   :  { %v2296_v16 = vpop.xlane.xlu1 %2295 }
 0x836   :  { %v2336_v29 = vsub.f32 %v7226_v22, %v2296_v16  ;;  %v2293_v20 = vpop.xlane.xlu0 %2292 }
 0x837   :  { %v2335_v33 = vsub.f32 %v7230_v32, %v2293_v20 }
 0x838   :  { %v2355_v48 = vmul.f32 1.442695, %v2336_v29 }
 0x839   :  { %v2353_v3 = vmul.f32 1.442695, %v2335_v33  ;;  %v2302_v10 = vpop.xlane.xlu1 %2301 }
 0x83a   :  { %6019 = vpow2.f32 %v2355_v48  ;;  %v2338_v34 = vsub.f32 %v7238_v12, %v2302_v10  ;;  %v2299_v27 = vpop.xlane.xlu0 %2298 }
 0x83b   :  { %v2337_v45 = vsub.f32 %v7242_v5, %v2299_v27  ;;  %6021 = vpow2.f32 %v2353_v3 }
 0x83c   :  { %v2359_v6 = vmul.f32 1.442695, %v2338_v34 }
 0x83d   :  { %v2357_v23 = vmul.f32 1.442695, %v2337_v45  ;;  %v2308_v1 = vpop.xlane.xlu1 %2307 }
 0x83e   :  { %6023 = vpow2.f32 %v2359_v6  ;;  %v2340_v61 = vsub.f32 %v7250_v38, %v2308_v1  ;;  %v2305_v22 = vpop.xlane.xlu0 %2304 }
 0x83f   :  { %v2339_v16 = vsub.f32 %v7254_v56, %v2305_v22  ;;  %6025 = vpow2.f32 %v2357_v23 }
 0x840   :  { %v2363_v32 = vmul.f32 1.442695, %v2340_v61 }
 0x841   :  { %v2361_v29 = vmul.f32 1.442695, %v2339_v16 }
 0x842   :  { %v2314_v20 = vpop.xlane.xlu1 %2313 }
 0x843   :  { %6027 = vpow2.f32 %v2361_v29  ;;  %v2342_v12 = vsub.f32 %v7262_v15, %v2314_v20  ;;  %v2311_v33 = vpop.xlane.xlu0 %2310 }
 0x844   :  { %v7337_v48 = vpop.eup %6019  ;;  %6029 = vpow2.f32 %v2363_v32  ;;  %v2341_v45 = vsub.f32 %v7264_v24, %v2311_v33 }
 0x845   :  { %v2367_v27 = vmul.f32 1.442695, %v2342_v12  ;;  %v2390_v1 = vsel %vm644_vm3, %v7337_v48, 0.0  ;;  %v7342_v5 = vpop.eup %6021 }
 0x846   :  { %v2365_v38 = vmul.f32 1.442695, %v2341_v45  ;;  %v2320_v23 = vpop.xlane.xlu1 %2319  ;;  %2391 = vadd.xlane.f32.xlu0 %v2390_v1  ;;  %v2387_v6 = vsel %vm644_vm3, %v7342_v5, 0.0 }
 0x847   :  { %6031 = vpow2.f32 %v2367_v27  ;;  %v2344_v56 = vsub.f32 %v7270_v41, %v2320_v23  ;;  %v2317_v3 = vpop.xlane.xlu0 %2316 }
 0x848   :  { %v7345_v15 = vpop.eup %6023  ;;  %6033 = vpow2.f32 %v2365_v38  ;;  %v2343_v10 = vsub.f32 %v7272_v40, %v2317_v3 }
 0x849   :  { %v2371_v34 = vmul.f32 1.442695, %v2344_v56  ;;  %v2396_v24 = vsel %vm644_vm3, %v7345_v15, 0.0  ;;  %v7352_v61 = vpop.eup %6025 }
 0x84a   :  { %v2369_v22 = vmul.f32 1.442695, %v2343_v10  ;;  %v2326_v16 = vpop.xlane.xlu1 %2325  ;;  %2397 = vadd.xlane.f32.xlu1 %v2396_v24  ;;  %2388 = vadd.xlane.f32.xlu0 %v2387_v6  ;;  %v2393_v12 = vsel %vm644_vm3, %v7352_v61, 0.0 }
 0x84b   :  { %6035 = vpow2.f32 %v2371_v34  ;;  %v2346_v41 = vsub.f32 %v7278_v30, %v2326_v16  ;;  %v2323_v32 = vpop.xlane.xlu0 %2322 }
 0x84c   :  { %6037 = vpow2.f32 %v2369_v22  ;;  %v2345_v40 = vsub.f32 %v7280_v18, %v2323_v32 }
 0x84d   :  { %v7356_v29 = vpop.eup %6027  ;;  %v2375_v20 = vmul.f32 1.442695, %v2346_v41 }
 0x84e   :  { %v7360_v33 = vpop.eup %6029  ;;  %v2373_v45 = vmul.f32 1.442695, %v2345_v40  ;;  %2394 = vadd.xlane.f32.xlu1 %v2393_v12  ;;  %v2399_v27 = vsel %vm644_vm3, %v7356_v29, 0.0  ;;  %v2332_v41 = vpop.xlane.xlu1 %2331 }
 0x84f   :  { %6039 = vpow2.f32 %v2375_v20  ;;  %2400 = vadd.xlane.f32.xlu0 %v2399_v27  ;;  %v2402_v18 = vsel %vm644_vm3, %v7360_v33, 0.0  ;;  %v2329_v32 = vpop.xlane.xlu0 %2328  ;;  %v2348_v40 = vsub.f32 %v7286_v28, %v2332_v41 }
 0x850   :  { %6041 = vpow2.f32 %v2373_v45  ;;  %v2347_v20 = vsub.f32 %v7288_v7, %v2329_v32 }
 0x851   :  { %v7364_v30 = vpop.eup %6031  ;;  %v2379_v12 = vmul.f32 1.442695, %v2348_v40 }
 0x852   :  { %v7368_v1 = vpop.eup %6033  ;;  %2403 = vadd.xlane.f32.xlu1 %v2402_v18  ;;  %v2408_v56 = vsel %vm644_vm3, %v7364_v30, 0.0  ;;  %v2377_v45 = vmul.f32 1.442695, %v2347_v20 }
 0x853   :  { %v2405_v38 = vsel %vm644_vm3, %v7368_v1, 0.0  ;;  %6043 = vpow2.f32 %v2379_v12  ;;  %v7406_v28 = vpop.permute.xlu0 %2777 }
 0x854   :  { %2406 = vadd.xlane.f32.xlu0 %v2405_v38  ;;  %6045 = vpow2.f32 %v2377_v45  ;;  %v7404_v38 = vpop.permute.xlu1 %2779 }
 0x855   :  { %v7372_v23 = vpop.eup %6035 }
 0x856   :  { %v7376_v3 = vpop.eup %6037  ;;  %2409 = vadd.xlane.f32.xlu1 %v2408_v56  ;;  %v2414_v10 = vsel %vm644_vm3, %v7372_v23, 0.0 }
 0x857   :  { %v2411_v24 = vsel %vm644_vm3, %v7376_v3, 0.0 }
 0x858   :  { %2415 = vadd.xlane.f32.xlu0 %v2414_v10 }
 0x859   :  { %v7380_v34 = vpop.eup %6039 }
 0x85a   :  { %v7384_v6 = vpop.eup %6041  ;;  %2412 = vadd.xlane.f32.xlu1 %v2411_v24  ;;  %v2420_v16 = vsel %vm644_vm3, %v7380_v34, 0.0 }
 0x85b   :  { %v2417_v22 = vsel %vm644_vm3, %v7384_v6, 0.0 }
 0x85c   :  { %2418 = vadd.xlane.f32.xlu0 %v2417_v22  ;;  %v5806_v22 = vunpack.i.h.bf16 %v7298_v52 }
 0x85d   :  { %v7396_v27 = vpop.eup %6043 }
 0x85e   :  { %2421 = vadd.xlane.f32.xlu1 %v2420_v16  ;;  %v7398_v18 = vpop.eup %6045  ;;  %v5805_v16 = vunpack.i.l.bf16 %v7298_v52 }
 0x86f   :  { %2936 = vrot.lane.b32.xlu1 %v6402_v53, %s6229_s20  ;;  %v2426_v53 = vsel %vm644_vm3, %v7396_v27, 0.0 }
 0x872   :  { %2781 = vrot.lane.b32.xlu0 %v6404_v54, %s6229_s20  ;;  %v2423_v54 = vsel %vm644_vm3, %v7398_v18, 0.0 }
 0x891   :  { %2427 = vadd.xlane.f32.xlu0 %v2426_v53 }
 0x893   :  { %2424 = vadd.xlane.f32.xlu1 %v2423_v54 }
 0x89f   :  { %v2386_v7 = vpop.xlane.xlu1 %2385 }
 0x8a0   :  { %6047 = vrcp.f32 %v2386_v7  ;;  %v2383_v56 = vpop.xlane.xlu0 %2382 }
 0x8a1   :  { %6049 = vrcp.f32 %v2383_v56 }
 0x8a4   :  { %2940 = vrot.lane.b32.xlu1 %v6418_v60, %s6229_s20 }
 0x8a7   :  { %2938 = vrot.lane.b32.xlu0 %v6400_v51, %s6229_s20  ;;  %v5451_v51 = vpack.c.bf16 %v5806_v22, %v5805_v16 }
 0x8a8   :  { %2944 = vrot.lane.b32.xlu1 %v6430_v2, %s6229_s20 }
 0x8aa   :  { %v6048_v10 = vpop.eup %6047 }
 0x8ab   :  { %2942 = vrot.lane.b32.xlu0 %v6414_v58, %s6229_s20  ;;  %v6050_v24 = vpop.eup %6049  ;;  %v2446_v41 = vmul.f32 %v6048_v10, %v7322_v21  ;;  %v5811_v58 = vunpack.i.h.bf16 %v7300_v43 }
 0x8ac   :  { %2948 = vrot.lane.b32.xlu1 %v6442_v13, %s6229_s20  ;;  %v2445_v60 = vmul.f32 %v6050_v24, %v7324_v31  ;;  %v5820_v13 = vunpack.i.l.bf16 %v7304_v8 }
 0x8ae   :  { %5013 = vmatprep.mubr.msk.f32.mxu1 %vm644_vm3, %v2445_v60 }
 0x8af   :  { %2946 = vrot.lane.b32.xlu0 %v6428_v0, %s6229_s20  ;;  %5014 = vmatmul.mubr.msk.f32.vlgmr.msra.gmra.mrb[40].mxu1 %vm644_vm3, %v2446_v41  ;;  %v5810_v0 = vunpack.i.l.bf16 %v7300_v43 }
 0x8b0   :  { %5843 = vrot.lane.b32.xlu1 %v6386_v42, %s6230_s21  ;;  %5450 = vmatpush3.bf16.xpose.msk.msra.mxu1 %vm6476_vm2, %v7188_v50  ;;  %v5821_v42 = vunpack.i.h.bf16 %v7304_v8 }
 0x8b1   :  { %5453 = vmatprep.subr.msk.bf16.mxu1 %vm6476_vm2, %v5451_v51  ;;  %v5457_v2 = vpack.c.bf16 %v5811_v58, %v5810_v0 }
 0x8b2   :  { %v5463_v50 = vpack.c.bf16 %v5821_v42, %v5820_v13 }
 0x8b3   :  { %2950 = vrot.lane.b32.xlu0 %v6440_v11, %s6229_s20 }
 0x8b7   :  { %5838 = vrot.lane.b32.xlu0 %v6376_v37, %s6230_s21 }
 0x8b8   :  { %5456 = vmatpush3.bf16.xpose.msk.msra.mxu1 %vm6476_vm2, %v5451_v51 }
 0x8b9   :  { %5459 = vmatprep.subr.msk.bf16.mxu1 %vm6476_vm2, %v5457_v2 }
 0x8c0   :  { %5462 = vmatpush3.bf16.xpose.msk.msra.mxu1 %vm6476_vm2, %v5457_v2 }
 0x8c1   :  { %5465 = vmatprep.subr.msk.bf16.mxu1 %vm6476_vm2, %v5463_v50 }
 0x8c8   :  { %5468 = vmatpush3.bf16.xpose.msk.msra.mxu1 %vm6476_vm2, %v5463_v50 }
 0x8d3   :  { %v2392_v37 = vpop.xlane.xlu0 %2391 }
 0x8d4   :  { %6051 = vrcp.f32 %v2392_v37 }
 0x8d7   :  { %v2398_v11 = vpop.xlane.xlu1 %2397  ;;  %v2389_v31 = vpop.xlane.xlu0 %2388 }
 0x8d8   :  { %6053 = vrcp.f32 %v2389_v31 }
 0x8d9   :  { %6055 = vrcp.f32 %v2398_v11 }
 0x8db   :  { %v2395_v21 = vpop.xlane.xlu1 %2394 }
 0x8dc   :  { %6057 = vrcp.f32 %v2395_v21  ;;  %v2401_v52 = vpop.xlane.xlu0 %2400 }
 0x8dd   :  { %6059 = vrcp.f32 %v2401_v52 }
 0x8de   :  { %v6052_v32 = vpop.eup %6051 }
 0x8df   :  { %v2404_v43 = vpop.xlane.xlu1 %2403  ;;  %v2448_v54 = vmul.f32 %v6052_v32, %v7337_v48 }
 0x8e0   :  { %6061 = vrcp.f32 %v2404_v43 }
 0x8e1   :  { %v2407_v8 = vpop.xlane.xlu0 %2406 }
 0x8e2   :  { %6063 = vrcp.f32 %v2407_v8  ;;  %v6054_v40 = vpop.eup %6053 }
 0x8e3   :  { %v2410_v20 = vpop.xlane.xlu1 %2409  ;;  %v2447_v12 = vmul.f32 %v6054_v40, %v7342_v5  ;;  %v6056_v45 = vpop.eup %6055 }
 0x8e4   :  { %6065 = vrcp.f32 %v2410_v20  ;;  %v2450_v16 = vmul.f32 %v6056_v45, %v7345_v15 }
 0x8e5   :  { %v2416_v53 = vpop.xlane.xlu0 %2415  ;;  %5016 = vmatprep.mubr.msk.f32.mxu1 %vm644_vm3, %v2447_v12 }
 0x8e6   :  { %v6058_v7 = vpop.eup %6057  ;;  %6067 = vrcp.f32 %v2416_v53  ;;  %5017 = vmatmul.mubr.msk.f32.gmra.mrb[42].mxu1 %vm644_vm3, %v2448_v54 }
 0x8e7   :  { %v6060_v56 = vpop.eup %6059  ;;  %v2413_v10 = vpop.xlane.xlu1 %2412  ;;  %v2449_v24 = vmul.f32 %v6058_v7, %v7352_v61  ;;  %v5826_v61 = vunpack.i.h.bf16 %v7302_v39 }
 0x8e8   :  { %6069 = vrcp.f32 %v2413_v10  ;;  %v2451_v22 = vmul.f32 %v6060_v56, %v7356_v29  ;;  %v5825_v29 = vunpack.i.l.bf16 %v7302_v39 }
 0x8e9   :  { %5019 = vmatprep.mubr.msk.f32.mxu1 %vm644_vm3, %v2449_v24  ;;  %v2419_v5 = vpop.xlane.xlu0 %2418 }
 0x8ea   :  { %v6062_v60 = vpop.eup %6061  ;;  %6071 = vrcp.f32 %v2419_v5  ;;  %5020 = vmatmul.mubr.msk.f32.gmra.mrb[44].mxu1 %vm644_vm3, %v2450_v16  ;;  %v5475_v2 = vpack.c.bf16 %v5826_v61, %v5825_v29 }
 0x8eb   :  { %v2422_v48 = vpop.xlane.xlu1 %2421  ;;  %v2452_v41 = vmul.f32 %v6062_v60, %v7360_v33  ;;  %5022 = vmatprep.mubr.msk.f32.mxu1 %vm644_vm3, %v2451_v22 }
 0x8ec   :  { %v6064_v51 = vpop.eup %6063  ;;  %6073 = vrcp.f32 %v2422_v48 }
 0x8ed   :  { %v2453_v58 = vmul.f32 %v6064_v51, %v7368_v1 }
 0x8ee   :  { %v6066_v0 = vpop.eup %6065  ;;  %5023 = vmatmul.mubr.msk.f32.gmra.mrb[46].mxu1 %vm644_vm3, %v2452_v41 }
 0x8ef   :  { %v2454_v15 = vmul.f32 %v6066_v0, %v7364_v30  ;;  %5041 = vmatprep.mubr.msk.f32.mxu0 %vm644_vm3, %v2453_v58  ;;  %5069 = vmatprep.mubr.msk.f32.mxu1 %vm345_vm1, %v7308_v46 }
 0x8f0   :  { %v6068_v33 = vpop.eup %6067 }
 0x8f1   :  { %5042 = vmatmul.mubr.msk.f32.vlgmr.msra.gmra.mrb[56].mxu0 %vm644_vm3, %v2454_v15  ;;  %v2456_v46 = vmul.f32 %v6068_v33, %v7372_v23 }
 0x8f2   :  { %v6070_v42 = vpop.eup %6069  ;;  %5474 = vmatpush3.bf16.xpose.msk.msra.mxu0 %vm6476_vm2, %v7193_v26  ;;  %5070 = vmatmul.mubr.msk.f32.vlgmr.msra.gmra.mrb[48].mxu1 %vm345_vm1, %v7310_v17  ;;  %v5831_v26 = vunpack.i.h.bf16 %v7306_v25  ;;  %v5830_v17 = vunpack.i.l.bf16 %v7306_v25  ;;  %v5836_v25 = vunpack.i.h.bf16 %v7316_v19 }
 0x8f3   :  { %5477 = vmatprep.subr.msk.bf16.mxu0 %vm6476_vm2, %v5475_v2  ;;  %v2455_v39 = vmul.f32 %v6070_v42, %v7376_v3  ;;  %5072 = vmatprep.mubr.msk.f32.mxu1 %vm345_vm1, %v7312_v4 }
 0x8f4   :  { %v6072_v30 = vpop.eup %6071  ;;  %v5481_v23 = vpack.c.bf16 %v5831_v26, %v5830_v17 }
 0x8f5   :  { %5044 = vmatprep.mubr.msk.f32.mxu0 %vm644_vm3, %v2455_v39  ;;  %v2457_v1 = vmul.f32 %v6072_v30, %v7384_v6 }
 0x8f6   :  { %v6074_v13 = vpop.eup %6073  ;;  %5045 = vmatmul.mubr.msk.f32.gmra.mrb[58].mxu0 %vm644_vm3, %v2456_v46  ;;  %5073 = vmatmul.mubr.msk.f32.gmra.mrb[50].mxu1 %vm345_vm1, %v7314_v55  ;;  %v5835_v55 = vunpack.i.l.bf16 %v7316_v19 }
 0x8f7   :  { %5047 = vmatprep.mubr.msk.f32.mxu0 %vm644_vm3, %v2457_v1  ;;  %v2458_v4 = vmul.f32 %v6074_v13, %v7380_v34  ;;  %5075 = vmatprep.mubr.msk.f32.mxu1 %vm345_vm1, %v7318_v44  ;;  %v2782_v44 = vpop.permute.xlu0 %2781  ;;  %v2937_v34 = vpop.permute.xlu1 %2936 }
 0x8f8   :  { %v5487_v3 = vpack.c.bf16 %v5836_v25, %v5835_v55 }
 0x8fa   :  { %5480 = vmatpush3.bf16.xpose.msk.msra.mxu0 %vm6476_vm2, %v5475_v2  ;;  %5076 = vmatmul.mubr.msk.f32.gmra.mrb[52].mxu1 %vm345_vm1, %v7406_v28 }
 0x8fb   :  { %5048 = vmatmul.mubr.msk.f32.gmra.mrb[60].mxu0 %vm644_vm3, %v2458_v4  ;;  %5483 = vmatprep.subr.msk.bf16.mxu0 %vm6476_vm2, %v5481_v23 }
 0x8fc   :  { %5078 = vmatprep.mubr.msk.f32.mxu1 %vm345_vm1, %v7404_v38 }
 0x8fe   :  { %5079 = vmatmul.mubr.msk.f32.gmra.mrb[54].mxu1 %vm345_vm1, %v2782_v44 }
 0x902   :  { %5486 = vmatpush3.bf16.xpose.msk.msra.mxu0 %vm6476_vm2, %v5481_v23 }
 0x903   :  { %5489 = vmatprep.subr.msk.bf16.mxu0 %vm6476_vm2, %v5487_v3 }
 0x90a   :  { %5492 = vmatpush3.bf16.xpose.msk.msra.mxu0 %vm6476_vm2, %v5487_v3 }
 0x91e   :  { %v2428_v6 = vpop.xlane.xlu0 %2427 }
 0x91f   :  { %6075 = vrcp.f32 %v2428_v6 }
 0x920   :  { %v2425_v38 = vpop.xlane.xlu1 %2424 }
 0x921   :  { %6077 = vrcp.f32 %v2425_v38 }
 0x922   :  { %v2939_v28 = vpop.permute.xlu0 %2938 }
 0x924   :  { %v2941_v19 = vpop.permute.xlu1 %2940 }
 0x926   :  { %v2943_v50 = vpop.permute.xlu0 %2942 }
 0x928   :  { %v2945_v37 = vpop.permute.xlu1 %2944 }
 0x929   :  { %v6076_v11 = vpop.eup %6075 }
 0x92a   :  { %v2947_v31 = vpop.permute.xlu0 %2946  ;;  %v2460_v8 = vmul.f32 %v6076_v11, %v7396_v27 }
 0x92b   :  { %v6078_v21 = vpop.eup %6077 }
 0x92c   :  { %v2949_v52 = vpop.permute.xlu1 %2948  ;;  %v2459_v43 = vmul.f32 %v6078_v21, %v7398_v18 }
 0x92e   :  { %5050 = vmatprep.mubr.msk.f32.mxu0 %vm644_vm3, %v2459_v43  ;;  %v2951_v35 = vpop.permute.xlu0 %2950 }
 0x92f   :  { %5051 = vmatmul.mubr.msk.f32.gmra.mrb[62].mxu0 %vm644_vm3, %v2460_v8 }
 0x930   :  { %v5844_v32 = vpop.permute.xlu1 %5843  ;;  %5097 = vmatprep.mubr.msk.f32.mxu0 %vm345_vm1, %v2937_v34 }
 0x931   :  { %v5846_v20 = vunpack.i.h.bf16 %v5844_v32  ;;  %v5845_v12 = vunpack.i.l.bf16 %v5844_v32 }
 0x932   :  { %v5839_v40 = vpop.permute.xlu0 %5838 }
 0x933   :  { %v5841_v45 = vunpack.i.h.bf16 %v5839_v40  ;;  %v5840_v53 = vunpack.i.l.bf16 %v5839_v40  ;;  %5098 = vmatmul.mubr.msk.f32.vlgmr.msra.gmra.mrb[64].mxu0 %vm345_vm1, %v2939_v28  ;;  %v5497_v27 = vpack.c.bf16 %v5846_v20, %v5845_v12 }
 0x934   :  { %5100 = vmatprep.mubr.msk.f32.mxu0 %vm345_vm1, %v2941_v19 }
 0x935   :  { %v5493_v18 = vpack.c.bf16 %v5841_v45, %v5840_v53 }
 0x937   :  { %5101 = vmatmul.mubr.msk.f32.gmra.mrb[66].mxu0 %vm345_vm1, %v2943_v50  ;;  %5494 = vmatprep.subr.bf16.mxu1 %v5493_v18 }
 0x938   :  { %5103 = vmatprep.mubr.msk.f32.mxu0 %vm345_vm1, %v2945_v37  ;;  %5496 = vmatpush3.bf16.msra.mxu1 %v5493_v18 }
 0x939   :  { %5498 = vmatprep.subr.bf16.mxu1 %v5497_v27 }
 0x93b   :  { %5104 = vmatmul.mubr.msk.f32.gmra.mrb[68].mxu0 %vm345_vm1, %v2947_v31 }
 0x93c   :  { %5106 = vmatprep.mubr.msk.f32.mxu0 %vm345_vm1, %v2949_v52  ;;  %5500 = vmatpush3.bf16.msra.mxu1 %v5497_v27 }
 0x93f   :  { %5107 = vmatmul.mubr.msk.f32.gmra.mrb[70].mxu0 %vm345_vm1, %v2951_v35 }
 0x982   :  { %v7523_v54 = vpop.f32.mrb[40].mxu1 }
 0x983   :  { %v7525_v7 = vpop.f32.mrb[41].mxu1 }
 0x9b9   :  { %v7527_v56 = vpop.f32.mrb[42].mxu1 }
 0x9ba   :  { %v7529_v10 = vpop.f32.mrb[43].mxu1 }
 0x9bd   :  { %v7531_v24 = vpop.f32.mrb[44].mxu1 }
 0x9be   :  { %v7533_v22 = vpop.f32.mrb[45].mxu1 }
 0x9c1   :  { %v7535_v5 = vpop.f32.mrb[46].mxu1 }
 0x9c2   :  { %v7537_v16 = vpop.f32.mrb[47].mxu1 }
 0x9c4   :  { %v7539_v60 = vpop.f32.mrb[56].mxu0 }
 0x9c5   :  { %v7541_v48 = vpop.f32.mrb[57].mxu0  ;;  %v5071_v41 = vpop.f32.mrb[48].mxu1 }
 0x9c6   :  { %v2897_v51 = vpop.f32.mrb[49].mxu1  ;;  %v3108_v61 = vsel %vm644_vm3, %v5071_v41, -inf }
 0x9c7   :  { %3109 = vmax.xlane.f32.xlu0 %v3108_v61  ;;  %v3105_v29 = vsel %vm644_vm3, %v2897_v51, -inf }
 0x9c8   :  { %3106 = vmax.xlane.f32.xlu1 %v3105_v29 }
 0x9c9   :  { %v7545_v58 = vpop.f32.mrb[58].mxu0  ;;  %v5074_v0 = vpop.f32.mrb[50].mxu1 }
 0x9ca   :  { %v7547_v15 = vpop.f32.mrb[59].mxu0  ;;  %v2907_v33 = vpop.f32.mrb[51].mxu1  ;;  %v3114_v2 = vsel %vm644_vm3, %v5074_v0, -inf }
 0x9cb   :  { %v3111_v42 = vsel %vm644_vm3, %v2907_v33, -inf }
 0x9cc   :  { %3115 = vmax.xlane.f32.xlu1 %v3114_v2  ;;  %3112 = vmax.xlane.f32.xlu0 %v3111_v42 }
 0x9cd   :  { %v5077_v30 = vpop.f32.mrb[52].mxu1 }
 0x9ce   :  { %v7551_v39 = vpop.f32.mrb[60].mxu0  ;;  %v2917_v1 = vpop.f32.mrb[53].mxu1  ;;  %v3120_v13 = vsel %vm644_vm3, %v5077_v30, -inf }
 0x9cf   :  { %v7553_v46 = vpop.f32.mrb[61].mxu0  ;;  %v3117_v26 = vsel %vm644_vm3, %v2917_v1, -inf }
 0x9d0   :  { %3121 = vmax.xlane.f32.xlu1 %v3120_v13  ;;  %3118 = vmax.xlane.f32.xlu0 %v3117_v26 }
 0x9d1   :  { %v7557_v17 = vpop.f32.mrb[54].mxu1 }
 0x9d2   :  { %v7559_v4 = vpop.f32.mrb[55].mxu1  ;;  %v3126_v23 = vsel %vm644_vm3, %v7557_v17, -inf }
 0x9d3   :  { %v3123_v25 = vsel %vm644_vm3, %v7559_v4, -inf }
 0x9d4   :  { %3127 = vmax.xlane.f32.xlu1 %v3126_v23  ;;  %3124 = vmax.xlane.f32.xlu0 %v3123_v25 }
 0xa02   :  { %v7565_v55 = vpop.f32.mrb[62].mxu0 }
 0xa03   :  { %v7567_v44 = vpop.f32.mrb[63].mxu0 }
 0xa06   :  { %v7569_v3 = vpop.f32.mrb[64].mxu0 }
 0xa07   :  { %v7571_v34 = vpop.f32.mrb[65].mxu0  ;;  %v3132_v6 = vsel %vm644_vm3, %v7569_v3, -inf }
 0xa08   :  { %3133 = vmax.xlane.f32.xlu1 %v3132_v6  ;;  %v3129_v38 = vsel %vm644_vm3, %v7571_v34, -inf }
 0xa09   :  { %3130 = vmax.xlane.f32.xlu0 %v3129_v38 }
 0xa0a   :  { %v7577_v28 = vpop.f32.mrb[66].mxu0 }
 0xa0b   :  { %v7579_v19 = vpop.f32.mrb[67].mxu0  ;;  %v3138_v50 = vsel %vm644_vm3, %v7577_v28, -inf }
 0xa0c   :  { %3139 = vmax.xlane.f32.xlu1 %v3138_v50  ;;  %v3135_v37 = vsel %vm644_vm3, %v7579_v19, -inf }
 0xa0d   :  { %3136 = vmax.xlane.f32.xlu0 %v3135_v37 }
 0xa0e   :  { %v7585_v11 = vpop.f32.mrb[68].mxu0 }
 0xa0f   :  { %v7587_v31 = vpop.f32.mrb[69].mxu0  ;;  %v3144_v21 = vsel %vm644_vm3, %v7585_v11, -inf }
 0xa10   :  { %3145 = vmax.xlane.f32.xlu1 %v3144_v21  ;;  %v3141_v52 = vsel %vm644_vm3, %v7587_v31, -inf }
 0xa11   :  { %3142 = vmax.xlane.f32.xlu0 %v3141_v52 }
 0xa12   :  { %v7593_v43 = vpop.f32.mrb[70].mxu0 }
 0xa13   :  { %v7595_v8 = vpop.f32.mrb[71].mxu0  ;;  %v3150_v35 = vsel %vm644_vm3, %v7593_v43, -inf }
 0xa14   :  { %3151 = vmax.xlane.f32.xlu1 %v3150_v35  ;;  %v3147_v32 = vsel %vm644_vm3, %v7595_v8, -inf }
 0xa15   :  { %3148 = vmax.xlane.f32.xlu0 %v3147_v32 }
 0xa25   :  { %5853 = vrot.lane.b32.xlu1 %v6422_v62, %s6230_s21 }
 0xa2b   :  { %5848 = vrot.lane.b32.xlu0 %v6396_v47, %s6230_s21 }
 0xa54   :  { %v3110_v40 = vpop.xlane.xlu0 %3109 }
 0xa55   :  { %v3154_v20 = vsub.f32 %v5071_v41, %v3110_v40  ;;  %v3107_v12 = vpop.xlane.xlu1 %3106 }
 0xa56   :  { %v3153_v45 = vsub.f32 %v2897_v51, %v3107_v12 }
 0xa57   :  { %v3171_v53 = vmul.f32 1.442695, %v3154_v20 }
 0xa58   :  { %v3169_v18 = vmul.f32 1.442695, %v3153_v45 }
 0xa59   :  { %6079 = vpow2.f32 %v3171_v53  ;;  %v3116_v27 = vpop.xlane.xlu1 %3115  ;;  %v3113_v61 = vpop.xlane.xlu0 %3112 }
 0xa5a   :  { %6081 = vpow2.f32 %v3169_v18  ;;  %v3156_v29 = vsub.f32 %v5074_v0, %v3116_v27  ;;  %v3155_v2 = vsub.f32 %v2907_v33, %v3113_v61 }
 0xa5c   :  { %v3175_v42 = vmul.f32 1.442695, %v3156_v29  ;;  %v3173_v13 = vmul.f32 1.442695, %v3155_v2 }
 0xa5d   :  { %v3122_v26 = vpop.xlane.xlu1 %3121  ;;  %v3119_v23 = vpop.xlane.xlu0 %3118 }
 0xa5e   :  { %6083 = vpow2.f32 %v3175_v42  ;;  %v3158_v62 = vsub.f32 %v5077_v30, %v3122_v26  ;;  %v3157_v25 = vsub.f32 %v2917_v1, %v3119_v23 }
 0xa5f   :  { %6085 = vpow2.f32 %v3173_v13 }
 0xa60   :  { %v3179_v47 = vmul.f32 1.442695, %v3158_v62  ;;  %v3177_v41 = vmul.f32 1.442695, %v3157_v25 }
 0xa61   :  { %v3128_v6 = vpop.xlane.xlu1 %3127  ;;  %v3125_v51 = vpop.xlane.xlu0 %3124 }
 0xa62   :  { %6087 = vpow2.f32 %v3179_v47  ;;  %v3160_v38 = vsub.f32 %v7557_v17, %v3128_v6  ;;  %v3159_v50 = vsub.f32 %v7559_v4, %v3125_v51 }
 0xa63   :  { %v7607_v37 = vpop.eup %6079  ;;  %6089 = vpow2.f32 %v3177_v41 }
 0xa64   :  { %v7609_v0 = vpop.eup %6081  ;;  %v3183_v33 = vmul.f32 1.442695, %v3160_v38  ;;  %v3181_v21 = vmul.f32 1.442695, %v3159_v50  ;;  %v3204_v30 = vsel %vm644_vm3, %v7607_v37, 0.0 }
 0xa65   :  { %3205 = vadd.xlane.f32.xlu1 %v3204_v30  ;;  %v3201_v1 = vsel %vm644_vm3, %v7609_v0, 0.0 }
 0xa66   :  { %6091 = vpow2.f32 %v3183_v33  ;;  %3202 = vadd.xlane.f32.xlu0 %v3201_v1 }
 0xa67   :  { %6093 = vpow2.f32 %v3181_v21 }
 0xa68   :  { %v7615_v52 = vpop.eup %6083 }
 0xa69   :  { %v7617_v17 = vpop.eup %6085  ;;  %v3210_v4 = vsel %vm644_vm3, %v7615_v52, 0.0 }
 0xa6a   :  { %3211 = vadd.xlane.f32.xlu1 %v3210_v4  ;;  %v3207_v35 = vsel %vm644_vm3, %v7617_v17, 0.0 }
 0xa6b   :  { %3208 = vadd.xlane.f32.xlu0 %v3207_v35 }
 0xa6c   :  { %v7623_v32 = vpop.eup %6087 }
 0xa6d   :  { %v7625_v40 = vpop.eup %6089  ;;  %v3216_v20 = vsel %vm644_vm3, %v7623_v32, 0.0 }
 0xa6e   :  { %3217 = vadd.xlane.f32.xlu1 %v3216_v20  ;;  %v3213_v12 = vsel %vm644_vm3, %v7625_v40, 0.0 }
 0xa6f   :  { %3214 = vadd.xlane.f32.xlu0 %v3213_v12 }
 0xa70   :  { %v7631_v45 = vpop.eup %6091 }
 0xa71   :  { %v3222_v53 = vsel %vm644_vm3, %v7631_v45, 0.0  ;;  %v7635_v18 = vpop.eup %6093 }
 0xa72   :  { %3223 = vadd.xlane.f32.xlu1 %v3222_v53  ;;  %v3219_v27 = vsel %vm644_vm3, %v7635_v18, 0.0 }
 0xa76   :  { %3220 = vadd.xlane.f32.xlu1 %v3219_v27 }
 0xa95   :  { %v3134_v61 = vpop.xlane.xlu1 %3133 }
 0xa96   :  { %v3162_v29 = vsub.f32 %v7569_v3, %v3134_v61  ;;  %v3131_v2 = vpop.xlane.xlu0 %3130 }
 0xa97   :  { %v3161_v42 = vsub.f32 %v7571_v34, %v3131_v2 }
 0xa98   :  { %v3187_v13 = vmul.f32 1.442695, %v3162_v29 }
 0xa99   :  { %v3185_v26 = vmul.f32 1.442695, %v3161_v42  ;;  %v3140_v23 = vpop.xlane.xlu1 %3139 }
 0xa9a   :  { %6095 = vpow2.f32 %v3187_v13  ;;  %v3164_v62 = vsub.f32 %v7577_v28, %v3140_v23  ;;  %v3137_v25 = vpop.xlane.xlu0 %3136 }
 0xa9b   :  { %6097 = vpow2.f32 %v3185_v26  ;;  %v3163_v47 = vsub.f32 %v7579_v19, %v3137_v25 }
 0xa9c   :  { %v3191_v41 = vmul.f32 1.442695, %v3164_v62 }
 0xa9d   :  { %v3189_v6 = vmul.f32 1.442695, %v3163_v47  ;;  %v3146_v51 = vpop.xlane.xlu1 %3145 }
 0xa9e   :  { %6099 = vpow2.f32 %v3191_v41  ;;  %v3166_v38 = vsub.f32 %v7585_v11, %v3146_v51  ;;  %v3143_v3 = vpop.xlane.xlu0 %3142 }
 0xa9f   :  { %v3165_v50 = vsub.f32 %v7587_v31, %v3143_v3  ;;  %6101 = vpow2.f32 %v3189_v6 }
 0xaa0   :  { %v3195_v34 = vmul.f32 1.442695, %v3166_v38 }
 0xaa1   :  { %v3193_v33 = vmul.f32 1.442695, %v3165_v50  ;;  %v3152_v21 = vpop.xlane.xlu1 %3151 }
 0xaa2   :  { %v3149_v30 = vpop.xlane.xlu0 %3148  ;;  %v3168_v47 = vsub.f32 %v7593_v43, %v3152_v21 }
 0xaa3   :  { %6103 = vpow2.f32 %v3193_v33  ;;  %v3167_v6 = vsub.f32 %v7595_v8, %v3149_v30 }
 0xaa4   :  { %v7645_v28 = vpop.eup %6095  ;;  %6105 = vpow2.f32 %v3195_v34  ;;  %v3199_v41 = vmul.f32 1.442695, %v3168_v47 }
 0xaa5   :  { %v7647_v1 = vpop.eup %6097  ;;  %v5854_v19 = vpop.permute.xlu1 %5853  ;;  %v3228_v4 = vsel %vm644_vm3, %v7645_v28, 0.0  ;;  %v3197_v51 = vmul.f32 1.442695, %v3167_v6 }
 0xaa6   :  { %3229 = vadd.xlane.f32.xlu1 %v3228_v4  ;;  %v5849_v11 = vpop.permute.xlu0 %5848  ;;  %v3225_v31 = vsel %vm644_vm3, %v7647_v1, 0.0  ;;  %v5856_v35 = vunpack.i.h.bf16 %v5854_v19  ;;  %v5855_v20 = vunpack.i.l.bf16 %v5854_v19  ;;  %6107 = vpow2.f32 %v3199_v41  ;;  %v8102_v4 = vld [vmem:[#allocation12_spill] sm:$0xff] }
 0xaa7   :  { %v5851_v12 = vunpack.i.h.bf16 %v5849_v11  ;;  %v5850_v53 = vunpack.i.l.bf16 %v5849_v11  ;;  %3226 = vadd.xlane.f32.xlu0 %v3225_v31  ;;  %6109 = vpow2.f32 %v3197_v51  ;;  %v8103_v11 = vld [vmem:[#allocation11_spill] sm:$0xff] }
 0xaa8   :  { %v7653_v27 = vpop.eup %6099  ;;  %v5505_v42 = vpack.c.bf16 %v5856_v35, %v5855_v20  ;;  %v8104_v31 = vpack.i.bf16 %v8102_v4, %v8103_v11  ;;  %v8121_v4 = vld [vmem:[#allocation39_spill] sm:$0xff] }
 0xaa9   :  { %v5501_v61 = vpack.c.bf16 %v5851_v12, %v5850_v53  ;;  %v3234_v29 = vsel %vm644_vm3, %v7653_v27, 0.0  ;;  %v7657_v2 = vpop.eup %6101  ;;  %v8105_v12 = vld [vmem:[#allocation14_spill] sm:$0xff]  ;;  %v8106_v53 = vld [vmem:[#allocation13_spill] sm:$0xff] }
 0xaaa   :  { %3235 = vadd.xlane.f32.xlu1 %v3234_v29  ;;  %v3231_v26 = vsel %vm644_vm3, %v7657_v2, 0.0 }
 0xaab   :  { %5502 = vmatprep.subr.bf16.mxu1 %v5501_v61 }
 0xaac   :  { %5504 = vmatpush3.bf16.msra.mxu1 %v5501_v61  ;;  %v8107_v61 = vpack.i.bf16 %v8105_v12, %v8106_v53 }
 0xaad   :  { %v7659_v13 = vpop.eup %6103  ;;  %5506 = vmatprep.subr.bf16.mxu1 %v5505_v42 }
 0xaae   :  { %v7663_v23 = vpop.eup %6105  ;;  %3232 = vadd.xlane.f32.xlu1 %v3231_v26  ;;  %v3237_v62 = vsel %vm644_vm3, %v7659_v13, 0.0 }
 0xaaf   :  { %3238 = vadd.xlane.f32.xlu0 %v3237_v62  ;;  %v3240_v25 = vsel %vm644_vm3, %v7663_v23, 0.0 }
 0xab0   :  { %5508 = vmatpush3.bf16.msra.mxu1 %v5505_v42  ;;  %v7677_v38 = vpop.eup %6107  ;;  %v8108_v42 = vld [vmem:[#allocation51_spill] sm:$0xff] }
 0xab1   :  { %v3246_v3 = vsel %vm644_vm3, %v7677_v38, 0.0 }
 0xab2   :  { %3241 = vadd.xlane.f32.xlu1 %v3240_v25  ;;  %v8112_v25 = vld [vmem:[#allocation52_spill] sm:$0xff] }
 0xac3   :  { %5863 = vrot.lane.b32.xlu1 %v6426_v63, %s6230_s21  ;;  %v7681_v63 = vpop.eup %6109 }
 0xac5   :  { %5858 = vrot.lane.b32.xlu0 %v6412_v57, %s6230_s21  ;;  %v3243_v57 = vsel %vm644_vm3, %v7681_v63, 0.0 }
 0xac7   :  { %5868 = vrot.lane.b32.xlu1 %v6438_v9, %s6230_s21 }
 0xae4   :  { %3247 = vadd.xlane.f32.xlu0 %v3246_v3 }
 0xaeb   :  { %3244 = vadd.xlane.f32.xlu1 %v3243_v57 }
 0xaf2   :  { %v3206_v9 = vpop.xlane.xlu1 %3205 }
 0xaf3   :  { %6111 = vrcp.f32 %v3206_v9  ;;  %v3203_v43 = vpop.xlane.xlu0 %3202 }
 0xaf4   :  { %6113 = vrcp.f32 %v3203_v43 }
 0xaf7   :  { %v3212_v8 = vpop.xlane.xlu1 %3211 }
 0xaf8   :  { %6115 = vrcp.f32 %v3212_v8  ;;  %v3209_v50 = vpop.xlane.xlu0 %3208 }
 0xaf9   :  { %6117 = vrcp.f32 %v3209_v50 }
 0xafa   :  { %3615 = vrot.lane.b32.xlu0 %v7212_v49, %s6218_s23 }
 0xafb   :  { %v3218_v34 = vpop.xlane.xlu1 %3217 }
 0xafc   :  { %5873 = vrot.lane.b32.xlu1 %v6448_v14, %s6230_s21  ;;  %6119 = vrcp.f32 %v3218_v34  ;;  %v3215_v33 = vpop.xlane.xlu0 %3214  ;;  %v8120_v34 = vld [vmem:[#allocation58_spill] sm:$0xff] }
 0xafd   :  { %v6112_v21 = vpop.eup %6111  ;;  %6121 = vrcp.f32 %v3215_v33 }
 0xafe   :  { %3603 = vrot.lane.b32.xlu0 %v7200_v59, %s6218_s23  ;;  %v6114_v30 = vpop.eup %6113  ;;  %v3266_v35 = vmul.f32 %v6112_v21, %v7607_v37 }
 0xaff   :  { %v3224_v19 = vpop.xlane.xlu1 %3223  ;;  %v3265_v49 = vmul.f32 %v6114_v30, %v7609_v0 }
 0xb00   :  { %5878 = vrot.lane.b32.xlu1 %v8104_v31, %s6231_s24  ;;  %6123 = vrcp.f32 %v3224_v19 }
 0xb01   :  { %5125 = vmatprep.mubr.msk.f32.mxu1 %vm644_vm3, %v3265_v49 }
 0xb02   :  { %3605 = vrot.lane.b32.xlu0 %v7198_v36, %s6218_s23  ;;  %v6116_v14 = vpop.eup %6115  ;;  %5126 = vmatmul.mubr.msk.f32.vlgmr.msra.gmra.mrb[56].mxu1 %vm644_vm3, %v3266_v35 }
 0xb03   :  { %v6118_v59 = vpop.eup %6117  ;;  %v3221_v20 = vpop.xlane.xlu1 %3220  ;;  %v3268_v0 = vmul.f32 %v6116_v14, %v7615_v52 }
 0xb04   :  { %5883 = vrot.lane.b32.xlu1 %v8107_v61, %s6231_s24  ;;  %6125 = vrcp.f32 %v3221_v20  ;;  %v3267_v37 = vmul.f32 %v6118_v59, %v7617_v17  ;;  %v8109_v17 = vld [vmem:[#allocation48_spill] sm:$0xff] }
 0xb06   :  { %3667 = vrot.lane.b32.xlu0 %v7525_v7, %s6232_s25  ;;  %v6120_v36 = vpop.eup %6119  ;;  %5128 = vmatprep.mubr.msk.f32.mxu1 %vm644_vm3, %v3267_v37 }
 0xb07   :  { %v6122_v29 = vpop.eup %6121  ;;  %5129 = vmatmul.mubr.msk.f32.gmra.mrb[58].mxu1 %vm644_vm3, %v3268_v0  ;;  %v3270_v26 = vmul.f32 %v6120_v36, %v7623_v32 }
 0xb08   :  { %3617 = vrot.lane.b32.xlu1 %v8108_v42, %s6218_s23  ;;  %v3269_v52 = vmul.f32 %v6122_v29, %v7625_v40 }
 0xb0a   :  { %3669 = vrot.lane.b32.xlu0 %v7523_v54, %s6232_s25  ;;  %5131 = vmatprep.mubr.msk.f32.mxu1 %vm644_vm3, %v3269_v52  ;;  %v6124_v7 = vpop.eup %6123  ;;  %v8110_v54 = vld [vmem:[#allocation31_spill] sm:$0xff] }
 0xb0b   :  { %5132 = vmatmul.mubr.msk.f32.gmra.mrb[60].mxu1 %vm644_vm3, %v3270_v26  ;;  %v3272_v40 = vmul.f32 %v6124_v7, %v7631_v45  ;;  %v8114_v45 = vld [vmem:[#allocation49_spill] sm:$0xff] }
 0xb0c   :  { %3679 = vrot.lane.b32.xlu1 %v7537_v16, %s6232_s25  ;;  %v8111_v16 = vld [vmem:[#allocation53_spill] sm:$0xff] }
 0xb0e   :  { %3607 = vrot.lane.b32.xlu0 %v8109_v17, %s6218_s23  ;;  %v6126_v62 = vpop.eup %6125 }
 0xb0f   :  { %v3271_v32 = vmul.f32 %v6126_v62, %v7635_v18 }
 0xb10   :  { %3681 = vrot.lane.b32.xlu1 %v7535_v5, %s6232_s25  ;;  %v8113_v5 = vld [vmem:[#allocation50_spill] sm:$0xff] }
 0xb11   :  { %5134 = vmatprep.mubr.msk.f32.mxu1 %vm644_vm3, %v3271_v32 }
 0xb12   :  { %3609 = vrot.lane.b32.xlu0 %v8110_v54, %s6218_s23  ;;  %5135 = vmatmul.mubr.msk.f32.gmra.mrb[62].mxu1 %vm644_vm3, %v3272_v40 }
 0xb14   :  { %3619 = vrot.lane.b32.xlu1 %v8111_v16, %s6218_s23 }
 0xb16   :  { %3671 = vrot.lane.b32.xlu0 %v7529_v10, %s6232_s25  ;;  %v8115_v10 = vld [vmem:[#allocation55_spill] sm:$0xff] }
 0xb18   :  { %3621 = vrot.lane.b32.xlu1 %v8112_v25, %s6218_s23 }
 0xb1a   :  { %3673 = vrot.lane.b32.xlu0 %v7527_v56, %s6232_s25  ;;  %v8116_v56 = vld [vmem:[#allocation54_spill] sm:$0xff] }
 0xb1c   :  { %3683 = vrot.lane.b32.xlu1 %v7541_v48, %s6232_s25 }
 0xb1e   :  { %3611 = vrot.lane.b32.xlu0 %v8113_v5, %s6218_s23 }
 0xb20   :  { %3685 = vrot.lane.b32.xlu1 %v7539_v60, %s6232_s25  ;;  %v8117_v60 = vld [vmem:[#allocation59_spill] sm:$0xff] }
 0xb22   :  { %3613 = vrot.lane.b32.xlu0 %v8114_v45, %s6218_s23 }
 0xb24   :  { %3623 = vrot.lane.b32.xlu1 %v8115_v10, %s6218_s23  ;;  %v8122_v10 = vld [vmem:[#allocation38_spill] sm:$0xff] }
 0xb26   :  { %3675 = vrot.lane.b32.xlu0 %v7533_v22, %s6232_s25  ;;  %v8118_v22 = vld [vmem:[#allocation57_spill] sm:$0xff] }
 0xb28   :  { %3625 = vrot.lane.b32.xlu1 %v8116_v56, %s6218_s23 }
 0xb2a   :  { %3677 = vrot.lane.b32.xlu0 %v7531_v24, %s6232_s25  ;;  %v8119_v24 = vld [vmem:[#allocation56_spill] sm:$0xff] }
 0xb2c   :  { %3687 = vrot.lane.b32.xlu1 %v7547_v15, %s6232_s25 }
 0xb2e   :  { %3631 = vrot.lane.b32.xlu0 %v8117_v60, %s6218_s23 }
 0xb30   :  { %3689 = vrot.lane.b32.xlu1 %v7545_v58, %s6232_s25 }
 0xb32   :  { %3695 = vrot.lane.b32.xlu0 %v7567_v44, %s6232_s25 }
 0xb33   :  { %v3230_v48 = vpop.xlane.xlu1 %3229 }
 0xb34   :  { %3627 = vrot.lane.b32.xlu1 %v8118_v22, %s6218_s23  ;;  %v3227_v18 = vpop.xlane.xlu0 %3226 }
 0xb35   :  { %6127 = vrcp.f32 %v3227_v18 }
 0xb36   :  { %6129 = vrcp.f32 %v3230_v48 }
 0xb37   :  { %v3236_v47 = vpop.xlane.xlu1 %3235 }
 0xb38   :  { %3629 = vrot.lane.b32.xlu1 %v8119_v24, %s6218_s23 }
 0xb3b   :  { %v3233_v15 = vpop.xlane.xlu1 %3232 }
 0xb3c   :  { %3691 = vrot.lane.b32.xlu1 %v7553_v46, %s6232_s25  ;;  %v3239_v41 = vpop.xlane.xlu0 %3238  ;;  %6131 = vrcp.f32 %v3233_v15 }
 0xb3d   :  { %6133 = vrcp.f32 %v3236_v47 }
 0xb3e   :  { %6135 = vrcp.f32 %v3239_v41  ;;  %v8123_v41 = vld [vmem:[#allocation41_spill] sm:$0xff] }
 0xb3f   :  { %v6128_v6 = vpop.eup %6127  ;;  %v3242_v58 = vpop.xlane.xlu1 %3241 }
 0xb40   :  { %3693 = vrot.lane.b32.xlu1 %v7551_v39, %s6232_s25  ;;  %v5859_v44 = vpop.permute.xlu0 %5858  ;;  %v3273_v51 = vmul.f32 %v6128_v6, %v7647_v1  ;;  %6137 = vrcp.f32 %v3242_v58  ;;  %v6130_v53 = vpop.eup %6129 }
 0xb41   :  { %v5861_v3 = vunpack.i.h.bf16 %v5859_v44  ;;  %v5860_v57 = vunpack.i.l.bf16 %v5859_v44  ;;  %v3274_v42 = vmul.f32 %v6130_v53, %v7645_v28  ;;  %v8124_v44 = vld [vmem:[#allocation40_spill] sm:$0xff] }
 0xb42   :  { %5153 = vmatprep.mubr.msk.f32.mxu0 %vm644_vm3, %v3273_v51 }
 0xb43   :  { %v5509_v9 = vpack.c.bf16 %v5861_v3, %v5860_v57  ;;  %v5864_v43 = vpop.permute.xlu1 %5863 }
 0xb44   :  { %v5866_v8 = vunpack.i.h.bf16 %v5864_v43  ;;  %v5865_v50 = vunpack.i.l.bf16 %v5864_v43  ;;  %3633 = vrot.lane.b32.xlu1 %v8120_v34, %s6218_s23 }
 0xb45   :  { %5510 = vmatprep.subr.bf16.mxu0 %v5509_v9 }
 0xb46   :  { %v5513_v46 = vpack.c.bf16 %v5866_v8, %v5865_v50  ;;  %5512 = vmatpush3.bf16.msra.mxu0 %v5509_v9  ;;  %v6132_v0 = vpop.eup %6131 }
 0xb47   :  { %v5869_v33 = vpop.permute.xlu1 %5868  ;;  %v6134_v52 = vpop.eup %6133  ;;  %v3275_v17 = vmul.f32 %v6132_v0, %v7657_v2 }
 0xb48   :  { %v5871_v21 = vunpack.i.h.bf16 %v5869_v33  ;;  %v5870_v39 = vunpack.i.l.bf16 %v5869_v33  ;;  %5514 = vmatprep.subr.bf16.mxu0 %v5513_v46  ;;  %v6136_v62 = vpop.eup %6135  ;;  %v3276_v25 = vmul.f32 %v6134_v52, %v7653_v27 }
 0xb49   :  { %v3277_v45 = vmul.f32 %v6136_v62, %v7659_v13 }
 0xb4a   :  { %v5517_v30 = vpack.c.bf16 %v5871_v21, %v5870_v39  ;;  %5516 = vmatpush3.bf16.msra.mxu0 %v5513_v46  ;;  %v6138_v28 = vpop.eup %6137  ;;  %v8125_v46 = vld [vmem:[#allocation43_spill] sm:$0xff] }
 0xb4b   :  { %v3278_v27 = vmul.f32 %v6138_v28, %v7663_v23 }
 0xb4c   :  { %5518 = vmatprep.subr.bf16.mxu0 %v5517_v30 }
 0xb4e   :  { %5520 = vmatpush3.bf16.msra.mxu0 %v5517_v30  ;;  %v8126_v30 = vld [vmem:[#allocation42_spill] sm:$0xff] }
 0xb71   :  { %v3248_v1 = vpop.xlane.xlu0 %3247 }
 0xb75   :  { %v3616_v19 = vpop.permute.xlu0 %3615 }
 0xb76   :  { %v7777_v11 = vsel %vm345_vm1, %v8121_v4, %v3616_v19  ;;  %v8127_v4 = vld [vmem:[#allocation47_spill] sm:$0xff] }
 0xb78   :  { %v3245_v31 = vpop.xlane.xlu1 %3244 }
 0xb79   :  { %v7779_v49 = vpop.permute.xlu0 %3603  ;;  %6139 = vrcp.f32 %v3245_v31 }
 0xb7a   :  { %6141 = vrcp.f32 %v3248_v1 }
 0xb7c   :  { %v5874_v35 = vpop.permute.xlu1 %5873 }
 0xb7d   :  { %v5876_v14 = vunpack.i.h.bf16 %v5874_v35  ;;  %v5875_v59 = vunpack.i.l.bf16 %v5874_v35  ;;  %v7781_v20 = vpop.permute.xlu0 %3605 }
 0xb7f   :  { %v5521_v12 = vpack.c.bf16 %v5876_v14, %v5875_v59 }
 0xb80   :  { %v5879_v61 = vpop.permute.xlu1 %5878 }
 0xb81   :  { %v5881_v37 = vunpack.i.h.bf16 %v5879_v61  ;;  %v5880_v36 = vunpack.i.l.bf16 %v5879_v61  ;;  %v7783_v29 = vpop.permute.xlu0 %3667  ;;  %5522 = vmatprep.subr.bf16.mxu0 %v5521_v12  ;;  %v8128_v61 = vld [vmem:[#allocation45_spill] sm:$0xff] }
 0xb82   :  { %5524 = vmatpush3.bf16.msra.mxu0 %v5521_v12 }
 0xb83   :  { %v5525_v26 = vpack.c.bf16 %v5881_v37, %v5880_v36  ;;  %v6140_v2 = vpop.eup %6139  ;;  %v8129_v36 = vld [vmem:[#allocation44_spill] sm:$0xff] }
 0xb84   :  { %v5884_v7 = vpop.permute.xlu1 %5883  ;;  %v6142_v48 = vpop.eup %6141  ;;  %v3279_v13 = vmul.f32 %v6140_v2, %v7681_v63 }
 0xb85   :  { %v5886_v32 = vunpack.i.h.bf16 %v5884_v7  ;;  %v5885_v40 = vunpack.i.l.bf16 %v5884_v7  ;;  %v7787_v54 = vpop.permute.xlu0 %3669  ;;  %5154 = vmatmul.mubr.msk.f32.vlgmr.msra.gmra.mrb[72].mxu0 %vm644_vm3, %v3274_v42  ;;  %5526 = vmatprep.subr.bf16.mxu0 %v5525_v26  ;;  %v3280_v47 = vmul.f32 %v6142_v48, %v7677_v38 }
 0xb86   :  { %5156 = vmatprep.mubr.msk.f32.mxu0 %vm644_vm3, %v3275_v17  ;;  %5528 = vmatpush3.bf16.msra.mxu0 %v5525_v26 }
 0xb87   :  { %v5529_v16 = vpack.c.bf16 %v5886_v32, %v5885_v40  ;;  %5533 = vmatprep.subr.bf16.mxu1 %v5525_v26 }
 0xb88   :  { %v3618_v5 = vpop.permute.xlu1 %3617  ;;  %5535 = vmatpush3.bf16.msra.mxu1 %v5525_v26 }
 0xb89   :  { %v7795_v56 = vsel %vm345_vm1, %v8122_v10, %v3618_v5  ;;  %v7797_v60 = vpop.permute.xlu0 %3607  ;;  %5157 = vmatmul.mubr.msk.f32.gmra.mrb[74].mxu0 %vm644_vm3, %v3276_v25  ;;  %5530 = vmatprep.subr.bf16.mxu0 %v5529_v16 }
 0xb8a   :  { %5159 = vmatprep.mubr.msk.f32.mxu0 %vm644_vm3, %v3277_v45  ;;  %5532 = vmatpush3.bf16.msra.mxu0 %v5529_v16 }
 0xb8b   :  { %5534 = vmatprep.subr.bf16.mxu1 %v5529_v16 }
 0xb8c   :  { %v7802_v22 = vpop.permute.xlu1 %3679  ;;  %5536 = vmatpush3.bf16.msra.mxu1 %v5529_v16 }
 0xb8d   :  { %v7805_v18 = vpop.permute.xlu0 %3609  ;;  %5160 = vmatmul.mubr.msk.f32.gmra.mrb[76].mxu0 %vm644_vm3, %v3278_v27  ;;  %v8130_v27 = vld [vmem:[#allocation33_spill] sm:$0xff] }
 0xb8e   :  { %5162 = vmatprep.mubr.msk.f32.mxu0 %vm644_vm3, %v3279_v13  ;;  %v3779_v48 = vsel %vm345_vm1, %v8130_v27, %v7779_v49  ;;  %v8131_v13 = vld [vmem:[#allocation32_spill] sm:$0xff] }
 0xb90   :  { %v7810_v24 = vpop.permute.xlu1 %3681 }
 0xb91   :  { %v7812_v15 = vpop.permute.xlu0 %3671  ;;  %5163 = vmatmul.mubr.msk.f32.gmra.mrb[78].mxu0 %vm644_vm3, %v3280_v47  ;;  %v3780_v47 = vsel %vm345_vm1, %v8131_v13, %v7781_v20 }
 0xb94   :  { %v3620_v23 = vpop.permute.xlu1 %3619 }
 0xb95   :  { %v3787_v6 = vsel %vm345_vm1, %v8123_v41, %v3620_v23  ;;  %v7817_v63 = vpop.permute.xlu0 %3673  ;;  %v3796_v23 = vsel %vm3795_vm4, %v3779_v48, %v7783_v29  ;;  %v8136_v48 = vld [vmem:[#allocation46_spill] sm:$0xff] }
 0xb98   :  { %v3622_v58 = vpop.permute.xlu1 %3621 }
 0xb99   :  { %v3788_v51 = vsel %vm345_vm1, %v8124_v44, %v3622_v58  ;;  %v7821_v3 = vpop.permute.xlu0 %3611 }
 0xb9c   :  { %v3684_v38 = vpop.permute.xlu1 %3683 }
 0xb9d   :  { %v7824_v57 = vsel %vm3795_vm4, %v3787_v6, %v3684_v38  ;;  %v7826_v9 = vpop.permute.xlu0 %3613  ;;  %v3797_v6 = vsel %vm3795_vm4, %v3780_v47, %v7787_v54  ;;  %v8133_v38 = vld [vmem:[#allocation34_spill] sm:$0xff] }
 0xb9e   :  { %v3782_v29 = vsel %vm345_vm1, %v8133_v38, %v7805_v18  ;;  %v8139_v38 = vld [vmem:[#allocation19_spill] sm:$0xff] }
 0xba0   :  { %v3686_v43 = vpop.permute.xlu1 %3685 }
 0xba1   :  { %v7829_v8 = vsel %vm3795_vm4, %v3788_v51, %v3686_v43  ;;  %v7831_v50 = vpop.permute.xlu0 %3675  ;;  %v8132_v51 = vld [vmem:[#allocation35_spill] sm:$0xff] }
 0xba2   :  { %v3781_v20 = vsel %vm345_vm1, %v8132_v51, %v7797_v60 }
 0xba3   :  { %v3798_v54 = vsel %vm3795_vm4, %v3781_v20, %v7812_v15 }
 0xba4   :  { %v3624_v34 = vpop.permute.xlu1 %3623 }
 0xba5   :  { %v3789_v33 = vsel %vm345_vm1, %v8125_v46, %v3624_v34  ;;  %v7835_v21 = vpop.permute.xlu0 %3677  ;;  %v3799_v46 = vsel %vm3795_vm4, %v3782_v29, %v7817_v63  ;;  %v3802_v63 = vsel %vm3795_vm4, %v7777_v11, %v7802_v22 }
 0xba8   :  { %v3626_v39 = vpop.permute.xlu1 %3625 }
 0xba9   :  { %v3790_v1 = vsel %vm345_vm1, %v8126_v30, %v3626_v39  ;;  %v3632_v19 = vpop.permute.xlu0 %3631 }
 0xbaa   :  { %v7841_v31 = vsel %vm345_vm1, %v8127_v4, %v3632_v19 }
 0xbac   :  { %v3688_v35 = vpop.permute.xlu1 %3687 }
 0xbad   :  { %v7844_v14 = vsel %vm3795_vm4, %v3789_v33, %v3688_v35  ;;  %v7867_v2 = vpop.permute.xlu0 %3695  ;;  %v8135_v35 = vld [vmem:[#allocation36_spill] sm:$0xff] }
 0xbb0   :  { %v3690_v59 = vpop.permute.xlu1 %3689 }
 0xbb1   :  { %v7847_v12 = vsel %vm3795_vm4, %v3790_v1, %v3690_v59  ;;  %v8134_v1 = vld [vmem:[#allocation37_spill] sm:$0xff]  ;;  %v3784_v59 = vsel %vm345_vm1, %v8135_v35, %v7826_v9 }
 0xbb2   :  { %v3783_v19 = vsel %vm345_vm1, %v8134_v1, %v7821_v3  ;;  %v3803_v3 = vsel %vm3795_vm4, %v7795_v56, %v7810_v24 }
 0xbb4   :  { %v3628_v53 = vpop.permute.xlu1 %3627 }
 0xbb5   :  { %v3791_v0 = vsel %vm345_vm1, %v8128_v61, %v3628_v53  ;;  %v3800_v53 = vsel %vm3795_vm4, %v3783_v19, %v7831_v50 }
 0xbb8   :  { %v3630_v37 = vpop.permute.xlu1 %3629 }
 0xbb9   :  { %v3792_v42 = vsel %vm345_vm1, %v8129_v36, %v3630_v37  ;;  %v3801_v37 = vsel %vm3795_vm4, %v3784_v59, %v7835_v21  ;;  %v8143_v59 = vld [vmem:[#allocation25_spill] sm:$0xff] }
 0xbbc   :  { %v3692_v26 = vpop.permute.xlu1 %3691 }
 0xbbd   :  { %v7854_v52 = vsel %vm3795_vm4, %v3791_v0, %v3692_v26  ;;  %v6143_v26 = vld [vmem:[%s8025_s2] ss:$0 sm:$0xff]  ;;  %s6234_s2 = smov [#allocation7]  }
 0xbbe   :  { %s4151_s29 = sshll.u32 %s6234_s2, 4  ;;  %s4152_s29 = int_to_ptr.vmem [resolvable:$true] %s4151_s29 }
 0xbbf   :  { %s6188_s30 = scalar_lea.vmem %s4152_s29, 1024  ;;  %p6193_p3 = scmp.lt.s32.totalorder %s4152_s29, %s4152_s29 }
 0xbc0   :  { %v3694_v7 = vpop.permute.xlu1 %3693  ;;  %p6189_p2 = scmp.ne.s32.totalorder %s4152_s29, %s6188_s30  ;;  %p6194_p4 = scmp.lt.s32.totalorder %s6188_s30, %s6188_s30 }
 0xbc1   :  { %v7857_v17 = vsel %vm3795_vm4, %v3792_v42, %v3694_v7 }
 0xbc2   :  { %p6195_p5 = por %p6194_p4, %p6193_p3 }
 0xbc4   :  { %v7891_v43 = vpop.permute.xlu1 %3633  ;;  %p6196_p6 = pnand %p6195_p5, %p6189_p2 }
 0xbd5   :  { %v5127_v62 = vpop.f32.mrb[56].mxu1 }
 0xbd6   :  { %3733 = vrot.lane.b32.xlu0 %v5127_v62, %s6233_s26  ;;  %v3395_v32 = vpop.f32.mrb[57].mxu1 }
 0xbda   :  { %v5130_v40 = vpop.f32.mrb[58].mxu1  ;;  %3731 = vrot.lane.b32.xlu0 %v3395_v32, %s6233_s26 }
 0xbdb   :  { %v3405_v16 = vpop.f32.mrb[59].mxu1 }
 0xbde   :  { %v5133_v25 = vpop.f32.mrb[60].mxu1  ;;  %3737 = vrot.lane.b32.xlu0 %v5130_v40, %s6233_s26 }
 0xbdf   :  { %v3415_v28 = vpop.f32.mrb[61].mxu1 }
 0xbe2   :  { %3735 = vrot.lane.b32.xlu0 %v3405_v16, %s6233_s26 }
 0xbe5   :  { %v5136_v5 = vpop.f32.mrb[62].mxu1 }
 0xbe6   :  { %3741 = vrot.lane.b32.xlu0 %v5133_v25, %s6233_s26  ;;  %3745 = vrot.lane.b32.xlu1 %v5136_v5, %s6233_s26  ;;  %v3425_v45 = vpop.f32.mrb[63].mxu1 }
 0xbea   :  { %3739 = vrot.lane.b32.xlu0 %v3415_v28, %s6233_s26  ;;  %3743 = vrot.lane.b32.xlu1 %v3425_v45, %s6233_s26 }
 0xc48   :  { %v3734_v10 = vpop.permute.xlu0 %3733 }
 0xc49   :  { %v3814_v44 = vsel %vm3812_vm5, %v3797_v6, %v3734_v10  ;;  %v3810_v10 = vsel %vm3795_vm4, %v7841_v31, %v7867_v2 }
 0xc4c   :  { %v3732_v41 = vpop.permute.xlu0 %3731 }
 0xc4d   :  { %v3813_v58 = vsel %vm3812_vm5, %v3796_v23, %v3732_v41  ;;  %v8137_v23 = vld [vmem:[#allocation15_spill] sm:$0xff] }
 0xc4e   :  { %5173 = vmatprep.mubr.msk.f32.mxu0 %vm127_vm0, %v3813_v58 }
 0xc4f   :  { %5174 = vmatmul.mubr.msk.f32.vlgmr.msra.gmra.mrb[80].mxu0 %vm127_vm0, %v3814_v44  ;;  %v8138_v44 = vld [vmem:[#allocation17_spill] sm:$0xff] }
 0xc50   :  { %v3738_v49 = vpop.permute.xlu0 %3737 }
 0xc51   :  { %v3816_v39 = vsel %vm3812_vm5, %v3799_v46, %v3738_v49 }
 0xc54   :  { %v3736_v34 = vpop.permute.xlu0 %3735 }
 0xc55   :  { %v3815_v33 = vsel %vm3812_vm5, %v3798_v54, %v3736_v34  ;;  %v8140_v34 = vld [vmem:[#allocation20_spill] sm:$0xff] }
 0xc56   :  { %5176 = vmatprep.mubr.msk.f32.mxu0 %vm127_vm0, %v3815_v33 }
 0xc57   :  { %5177 = vmatmul.mubr.msk.f32.gmra.mrb[82].mxu0 %vm127_vm0, %v3816_v39 }
 0xc58   :  { %v5155_v60 = vpop.f32.mrb[72].mxu0  ;;  %v3742_v30 = vpop.permute.xlu0 %3741 }
 0xc59   :  { %v3746_v18 = vpop.permute.xlu1 %3745  ;;  %3749 = vrot.lane.b32.xlu1 %v5155_v60, %s6233_s26  ;;  %v3548_v15 = vpop.f32.mrb[73].mxu0  ;;  %v3818_v9 = vsel %vm3812_vm5, %v3801_v37, %v3742_v30  ;;  %v8141_v30 = vld [vmem:[#allocation22_spill] sm:$0xff] }
 0xc5a   :  { %v3820_v50 = vsel %vm3812_vm5, %v3803_v3, %v3746_v18 }
 0xc5c   :  { %v5158_v4 = vpop.f32.mrb[74].mxu0  ;;  %v3740_v61 = vpop.permute.xlu0 %3739 }
 0xc5d   :  { %v3744_v0 = vpop.permute.xlu1 %3743  ;;  %3747 = vrot.lane.b32.xlu1 %v3548_v15, %s6233_s26  ;;  %v3817_v11 = vsel %vm3812_vm5, %v3800_v53, %v3740_v61  ;;  %v3558_v36 = vpop.f32.mrb[75].mxu0 }
 0xc5e   :  { %v3819_v22 = vsel %vm3812_vm5, %v3802_v63, %v3744_v0  ;;  %5179 = vmatprep.mubr.msk.f32.mxu0 %vm127_vm0, %v3817_v11  ;;  %v8144_v0 = vld [vmem:[#allocation27_spill] sm:$0xff] }
 0xc5f   :  { %5182 = vmatprep.mubr.msk.f32.mxu1 %vm127_vm0, %v3819_v22  ;;  %5180 = vmatmul.mubr.msk.f32.gmra.mrb[84].mxu0 %vm127_vm0, %v3818_v9  ;;  %v8145_v22 = vld [vmem:[#allocation16_spill] sm:$0xff] }
 0xc60   :  { %5183 = vmatmul.mubr.msk.f32.vlgmr.msra.gmra.mrb[64].mxu1 %vm127_vm0, %v3820_v50  ;;  %v5161_v56 = vpop.f32.mrb[76].mxu0 }
 0xc61   :  { %v3568_v24 = vpop.f32.mrb[77].mxu0  ;;  %3753 = vrot.lane.b32.xlu1 %v5158_v4, %s6233_s26  ;;  %v8142_v4 = vld [vmem:[#allocation24_spill] sm:$0xff] }
 0xc64   :  { %v5164_v21 = vpop.f32.mrb[78].mxu0 }
 0xc65   :  { %v3578_v42 = vpop.f32.mrb[79].mxu0  ;;  %3751 = vrot.lane.b32.xlu1 %v3558_v36, %s6233_s26 }
 0xc66   :  { %3759 = vrot.lane.b32.xlu0 %v3578_v42, %s6233_s26 }
 0xc69   :  { %3757 = vrot.lane.b32.xlu1 %v5161_v56, %s6233_s26  ;;  %v8146_v56 = vld [vmem:[#allocation18_spill] sm:$0xff] }
 0xc6a   :  { %3829 = vrot.lane.b32.xlu0 %v6143_v26, %s6231_s24 }
 0xc6d   :  { %3755 = vrot.lane.b32.xlu1 %v3568_v24, %s6233_s26 }
 0xc71   :  { %3697 = vrot.lane.b32.xlu1 %v7565_v55, %s6232_s25 }
 0xc75   :  { %3761 = vrot.lane.b32.xlu1 %v5164_v21, %s6233_s26 }
 0xccb   :  { %v3750_v7 = vpop.permute.xlu1 %3749 }
 0xccc   :  { %v3822_v40 = vsel %vm3812_vm5, %v7829_v8, %v3750_v7  ;;  %v8147_v7 = vld [vmem:[#allocation21_spill] sm:$0xff] }
 0xccf   :  { %v3748_v62 = vpop.permute.xlu1 %3747 }
 0xcd0   :  { %v3821_v32 = vsel %vm3812_vm5, %v7824_v57, %v3748_v62 }
 0xcd1   :  { %5185 = vmatprep.mubr.msk.f32.mxu1 %vm127_vm0, %v3821_v32 }
 0xcd2   :  { %5186 = vmatmul.mubr.msk.f32.gmra.mrb[66].mxu1 %vm127_vm0, %v3822_v40 }
 0xcd3   :  { %v3754_v16 = vpop.permute.xlu1 %3753 }
 0xcd4   :  { %v3824_v55 = vsel %vm3812_vm5, %v7847_v12, %v3754_v16 }
 0xcd7   :  { %v3752_v25 = vpop.permute.xlu1 %3751 }
 0xcd8   :  { %v3823_v28 = vsel %vm3812_vm5, %v7844_v14, %v3752_v25  ;;  %v3760_v5 = vpop.permute.xlu0 %3759  ;;  %v8148_v25 = vld [vmem:[#allocation23_spill] sm:$0xff] }
 0xcd9   :  { %5188 = vmatprep.mubr.msk.f32.mxu1 %vm127_vm0, %v3823_v28  ;;  %v3827_v12 = vsel %vm3812_vm5, %v3810_v10, %v3760_v5 }
 0xcda   :  { %5189 = vmatmul.mubr.msk.f32.gmra.mrb[68].mxu1 %vm127_vm0, %v3824_v55 }
 0xcdb   :  { %v3758_v57 = vpop.permute.xlu1 %3757 }
 0xcdc   :  { %v3826_v14 = vsel %vm3812_vm5, %v7857_v17, %v3758_v57  ;;  %v7966_v17 = vpop.permute.xlu0 %3829 }
 0xcdd   :  { %v3832_v41 = vadd.f32 %v7966_v17, %v8137_v23  ;;  %v3833_v49 = vadd.f32 %v7966_v17, %v8138_v44  ;;  %v3834_v29 = vadd.f32 %v7966_v17, %v8139_v38  ;;  %v3835_v46 = vadd.f32 %v7966_v17, %v8140_v34 }
 0xcde   :  { %v3836_v18 = vadd.f32 %v7966_v17, %v8141_v30  ;;  %v3837_v63 = vadd.f32 %v7966_v17, %v8142_v4  ;;  %v3838_v53 = vadd.f32 %v7966_v17, %v8143_v59  ;;  %v3839_v3 = vadd.f32 %v7966_v17, %v8144_v0 }
 0xcdf   :  { %v3756_v45 = vpop.permute.xlu1 %3755  ;;  %v3840_v36 = vadd.f32 %v7966_v17, %v8145_v22  ;;  %v3841_v24 = vadd.f32 %v7966_v17, %v8146_v56  ;;  %v3842_v62 = vadd.f32 %v7966_v17, %v8147_v7  ;;  %v3843_v28 = vadd.f32 %v7966_v17, %v8148_v25 }
 0xce0   :  { %v3825_v8 = vsel %vm3812_vm5, %v7854_v52, %v3756_v45  ;;  %v3794_v52 = vsel %vm345_vm1, %v8136_v48, %v7891_v43  ;;  %v8149_v45 = vld [vmem:[#allocation26_spill] sm:$0xff] }
 0xce1   :  { %5191 = vmatprep.mubr.msk.f32.mxu1 %vm127_vm0, %v3825_v8  ;;  %v3844_v8 = vadd.f32 %v7966_v17, %v8149_v45 }
 0xce2   :  { %5192 = vmatmul.mubr.msk.f32.gmra.mrb[70].mxu1 %vm127_vm0, %v3826_v14 }
 0xce3   :  { %5194 = vmatprep.mubr.msk.f32.mxu1 %vm127_vm0, %v3827_v12  ;;  %v3698_v27 = vpop.permute.xlu1 %3697 }
 0xce4   :  { %v3811_v13 = vsel %vm3795_vm4, %v3794_v52, %v3698_v27  ;;  %v8150_v27 = vld [vmem:[#allocation28_spill] sm:$0xff] }
 0xce5   :  { %v3845_v48 = vadd.f32 %v7966_v17, %v8150_v27 }
 0xce7   :  { %v3762_v47 = vpop.permute.xlu1 %3761 }
 0xce8   :  { %v3828_v31 = vsel %vm3812_vm5, %v3811_v13, %v3762_v47  ;;  %v8151_v47 = vld [vmem:[#allocation29_spill] sm:$0xff] }
 0xce9   :  { %5195 = vmatmul.mubr.msk.f32.gmra.mrb[72].mxu1 %vm127_vm0, %v3828_v31  ;;  %v3846_v31 = vadd.f32 %v7966_v17, %v8151_v47 }
 0xd22   :  { %v5175_v2 = vpop.f32.mrb[80].mxu0 }
 0xd23   :  { %v3978_v6 = vpop.f32.mrb[81].mxu0  ;;  %v4058_v51 = vadd.f32 %v5175_v2, %v3833_v49 }
 0xd24   :  { %v4057_v58 = vadd.f32 %v3978_v6, %v3832_v41  ;;  %v8152_v41 = vld [vmem:[#allocation30_spill] sm:$0xff] }
 0xd25   :  { %v3847_v6 = vadd.f32 %v7966_v17, %v8152_v41 }
 0xd26   :  { %4073 = vxpose.xlu1.b32.start [1/8] (short) (narrow) %v4057_v58, 32 }
 0xd2a   :  { %v5178_v20 = vpop.f32.mrb[82].mxu0  ;;  %4074 = vxpose.xlu1.b32.cont [2/8] (short) (narrow) %v4058_v51, 32 }
 0xd2b   :  { %v3988_v54 = vpop.f32.mrb[83].mxu0  ;;  %v4060_v33 = vadd.f32 %v5178_v20, %v3835_v46 }
 0xd2c   :  { %v4059_v43 = vadd.f32 %v3988_v54, %v3834_v29 }
 0xd2e   :  { %4075 = vxpose.xlu1.b32.cont [3/8] (short) (narrow) %v4059_v43, 32 }
 0xd32   :  { %v5181_v39 = vpop.f32.mrb[84].mxu0  ;;  %4076 = vxpose.xlu1.b32.cont [4/8] (short) (narrow) %v4060_v33, 32 }
 0xd33   :  { %v5184_v60 = vpop.f32.mrb[64].mxu1  ;;  %v3998_v15 = vpop.f32.mrb[85].mxu0  ;;  %v4062_v35 = vadd.f32 %v5181_v39, %v3837_v63 }
 0xd34   :  { %v4008_v1 = vpop.f32.mrb[65].mxu1  ;;  %v4061_v19 = vadd.f32 %v3998_v15, %v3836_v18  ;;  %v4064_v37 = vadd.f32 %v5184_v60, %v3839_v3 }
 0xd35   :  { %v4063_v61 = vadd.f32 %v4008_v1, %v3838_v53 }
 0xd36   :  { %4077 = vxpose.xlu1.b32.cont [5/8] (short) (narrow) %v4061_v19, 32 }
 0xd3a   :  { %4078 = vxpose.xlu1.b32.cont [6/8] (short) (narrow) %v4062_v35, 32 }
 0xd3e   :  { %4079 = vxpose.xlu1.b32.cont [7/8] (short) (narrow) %v4063_v61, 32 }
 0xd42   :  { %4080 = vxpose.xlu1.b32.end [8/8] (short) (narrow) %v4064_v37, 32 }
 0xda5   :  { %v5187_v11 = vpop.f32.mrb[66].mxu1 }
 0xda6   :  { %v4018_v9 = vpop.f32.mrb[67].mxu1  ;;  %v4089_v21 = vpop.trf.xlu1  ;;  %v4066_v42 = vadd.f32 %v5187_v11, %v3841_v24 }
 0xda7   :  { %v4065_v50 = vadd.f32 %v4018_v9, %v3840_v36  ;;  %4105 = vst.msk [vmem:[#allocation7] sm:$0xff] %vm644_vm3, %v4089_v21 }
 0xda9   :  { %4109 = vxpose.xlu0.b32.start [1/8] (short) (narrow) %v4065_v50, 32 }
 0xdaa   :  { %v4090_v40 = vpop.trf.xlu1 }
 0xdab   :  { %4106 = vst.msk [vmem:[#allocation7 + $0x8] sm:$0xff] %vm644_vm3, %v4090_v40 }
 0xdad   :  { %4110 = vxpose.xlu0.b32.cont [2/8] (short) (narrow) %v4066_v42, 32  ;;  %v5190_v26 = vpop.f32.mrb[68].mxu1 }
 0xdae   :  { %v4028_v32 = vpop.f32.mrb[69].mxu1  ;;  %v4091_v55 = vpop.trf.xlu1  ;;  %v4068_v57 = vadd.f32 %v5190_v26, %v3843_v28 }
 0xdaf   :  { %v4067_v16 = vadd.f32 %v4028_v32, %v3842_v62  ;;  %4107 = vst.msk [vmem:[#allocation7 + $0x10] sm:$0xff] %vm644_vm3, %v4091_v55 }
 0xdb1   :  { %4111 = vxpose.xlu0.b32.cont [3/8] (short) (narrow) %v4067_v16, 32 }
 0xdb2   :  { %v4092_v14 = vpop.trf.xlu1 }
 0xdb3   :  { %4108 = vst.msk [vmem:[#allocation7 + $0x18] sm:$0xff] %vm644_vm3, %v4092_v14 }
 0xdb5   :  { %4112 = vxpose.xlu0.b32.cont [4/8] (short) (narrow) %v4068_v57, 32  ;;  %v5193_v5 = vpop.f32.mrb[70].mxu1 }
 0xdb6   :  { %v4038_v10 = vpop.f32.mrb[71].mxu1  ;;  %v4070_v52 = vadd.f32 %v5193_v5, %v3845_v48 }
 0xdb7   :  { %v4069_v12 = vadd.f32 %v4038_v10, %v3844_v8 }
 0xdb9   :  { %4113 = vxpose.xlu0.b32.cont [5/8] (short) (narrow) %v4069_v12, 32 }
 0xdbc   :  { %v5196_v13 = vpop.f32.mrb[72].mxu1 }
 0xdbd   :  { %4114 = vxpose.xlu0.b32.cont [6/8] (short) (narrow) %v4070_v52, 32  ;;  %v4048_v2 = vpop.f32.mrb[73].mxu1  ;;  %v4072_v58 = vadd.f32 %v5196_v13, %v3847_v6 }
 0xdbe   :  { %v4071_v23 = vadd.f32 %v4048_v2, %v3846_v31 }
 0xdc1   :  { %4115 = vxpose.xlu0.b32.cont [7/8] (short) (narrow) %v4071_v23, 32 }
 0xdc5   :  { %4116 = vxpose.xlu0.b32.end [8/8] (short) (narrow) %v4072_v58, 32 }
 0xe29   :  { %v4125_v44 = vpop.trf.xlu0 }
 0xe2a   :  { %4142 = vst.msk [vmem:[#allocation7 + $0x20] sm:$0xff] %vm644_vm3, %v4125_v44 }
 0xe2d   :  { %v4126_v49 = vpop.trf.xlu0 }
 0xe2e   :  { %4143 = vst.msk [vmem:[#allocation7 + $0x28] sm:$0xff] %vm644_vm3, %v4126_v49 }
 0xe31   :  { %v4127_v51 = vpop.trf.xlu0 }
 0xe32   :  { %4144 = vst.msk [vmem:[#allocation7 + $0x30] sm:$0xff] %vm644_vm3, %v4127_v51 }
 0xe35   :  { %v4128_v20 = vpop.trf.xlu0 }
 0xe36   :  { %4145 = vst.msk [vmem:[#allocation7 + $0x38] sm:$0xff] %vm644_vm3, %v4128_v20 }
 0xe37   :  { %6199 = shalt.err (!%p6196_p6)
}
 0xe38   :  { %s6200_s6 = scalar_lea.hbm %s8026_s3, 1024 }
 0xe39   :  { %p6201_p7 = scmp.ne.s32.totalorder %s8026_s3, %s6200_s6  ;;  %p6204_p8 = scmp.lt.u32.totalorder %s6200_s6, %s8026_s3 }
 0xe3b   :  { %p6206_p9 = pnand %p6204_p8, %p6201_p7 }
 0xe3d   :  { %6209 = shalt.err (!%p6206_p9)
}
 0xe3e   :  { %4157 = dma.vmem_to_hbm [thread:$0]  %s4152_s29, 1024, %s8026_s3, [#allocation4], %s6217_s22, %s6217_s22, %s6218_s23  }
 0xe3f   :  { %6214 = dma.done.wait [#allocation4], 1024  }
 0xe40   :  { %6215 = vsyncadd [#allocation4], 4294966272 }
 0xe41   :  { %4161 = vsyncpa [#allocation3], 1 }
 0xe42   :  { %4162 = vsyncpa [#allocation6], 1 }
 0xe43   :  { %4163 = vsyncpa [#allocation4], 1 }

</bundles_post_ra>
